<compile_context>
chip_gen: v7x
topology: tpu7x:2x2x1
jax: 0.10.0
libtpu: 0.0.40
codegen_flags: <defaults>
</compile_context>

<pallas_src>
import functools
import jax
import jax.numpy as jnp
from jax import lax
from jax.experimental import pallas as pl
from jax.experimental.pallas import tpu as pltpu


# ----------------------------- Pallas kernels -----------------------------

def _proj_kernel(x_ref, w_ref, b_ref, o_ref):
    """Channels-major 1x1-conv / Linear: x:(Cin,Nt) , w:(Cin,Nout) bf16 -> out:(Nt,Nout) f32."""
    o_ref[0] = lax.dot_general(
        x_ref[0].astype(jnp.bfloat16), w_ref[...],
        (((0,), (0,)), ((), ())), preferred_element_type=jnp.float32) + b_ref[...]


def proj(x_cm, w, b):
    """x_cm:(B,Cin,Nt) channels-major, w:(Cin,Nout) bf16, b:(1,Nout) -> (B,Nt,Nout) token layout."""
    B, Cin, Nt = x_cm.shape
    Nout = w.shape[1]
    return pl.pallas_call(
        _proj_kernel,
        out_shape=jax.ShapeDtypeStruct((B, Nt, Nout), jnp.float32),
        grid=(B,),
        in_specs=[pl.BlockSpec((1, Cin, Nt), lambda i: (i, 0, 0)),
                  pl.BlockSpec((Cin, Nout), lambda i: (0, 0)),
                  pl.BlockSpec((1, Nout), lambda i: (0, 0))],
        out_specs=pl.BlockSpec((1, Nt, Nout), lambda i: (i, 0, 0)),
        compiler_params=pltpu.CompilerParams(dimension_semantics=("parallel",)),
    )(x_cm, w, b)


def _srkv_kernel(x_ref, w1_ref, b1_ref, lng_ref, lnb_ref, w2_ref, b2_ref, o_ref, *, eps):
    """sr conv (as channels-major matmul) -> LayerNorm -> exact GELU -> kv Linear, fused."""
    h = lax.dot_general(
        x_ref[0].astype(jnp.bfloat16), w1_ref[...],
        (((0,), (0,)), ((), ())), preferred_element_type=jnp.float32) + b1_ref[...]   # (Nt, C)
    mu = jnp.mean(h, axis=-1, keepdims=True)
    var = jnp.mean((h - mu) ** 2, axis=-1, keepdims=True)
    hn = (h - mu) * lax.rsqrt(var + eps) * lng_ref[...] + lnb_ref[...]
    act = 0.5 * hn * (1.0 + lax.erf(hn * 0.7071067811865476))                          # exact GELU
    o_ref[0] = jnp.dot(act.astype(jnp.bfloat16), w2_ref[...],
                       preferred_element_type=jnp.float32) + b2_ref[...]


def sr_ln_gelu_kv(x_cm, w1, b1, lng, lnb, w2, b2, eps=1e-5):
    """x_cm:(B,K,Nt) channels-major -> (B,Nt,C) token layout (kv output)."""
    B, K, Nt = x_cm.shape
    C = w1.shape[1]
    return pl.pallas_call(
        functools.partial(_srkv_kernel, eps=eps),
        out_shape=jax.ShapeDtypeStruct((B, Nt, C), jnp.float32),
        grid=(B,),
        in_specs=[pl.BlockSpec((1, K, Nt), lambda i: (i, 0, 0)),
                  pl.BlockSpec((K, C), lambda i: (0, 0)),
                  pl.BlockSpec((1, C), lambda i: (0, 0)),
                  pl.BlockSpec((1, C), lambda i: (0, 0)),
                  pl.BlockSpec((1, C), lambda i: (0, 0)),
                  pl.BlockSpec((C, C), lambda i: (0, 0)),
                  pl.BlockSpec((1, C), lambda i: (0, 0))],
        out_specs=pl.BlockSpec((1, Nt, C), lambda i: (i, 0, 0)),
        compiler_params=pltpu.CompilerParams(dimension_semantics=("parallel",)),
    )(x_cm, w1, b1, lng, lnb, w2, b2)


def _dw3x3_res_kernel(xpad_ref, w_ref, b_ref, o_ref, *, H, W, Cg):
    """Lane-packed depthwise 3x3 conv with fused residual: out = v + dwconv3x3(v) + b."""
    x = xpad_ref[0]                                   # (H+2, (W+2)*Cg), channel fastest in lanes
    wv = w_ref[...]                                   # (9, W*Cg)
    acc = jnp.zeros((H, W * Cg), jnp.float32)
    for kh in range(3):
        for kw in range(3):
            win = x[kh:kh + H, kw * Cg:(kw + W) * Cg]
            acc = acc + win * wv[kh * 3 + kw:kh * 3 + kw + 1, :]
    center = x[1:1 + H, Cg:(1 + W) * Cg]              # the unpadded v itself (residual)
    o_ref[0] = center + acc + b_ref[...]


def dwconv3x3_residual(v_tok, Hh, Ww, Cg, w9, bias):
    """v_tok:(B,Hh*Ww,Cg) -> v + depthwise3x3(v), token layout (B,Hh*Ww,Cg).
       w9:(9,Cg) (kh*3+kw major), bias:(Cg,)."""
    B = v_tok.shape[0]
    xpad = jnp.pad(v_tok.reshape(B, Hh, Ww, Cg),
                   ((0, 0), (1, 1), (1, 1), (0, 0))).reshape(B, Hh + 2, (Ww + 2) * Cg)
    wr = jnp.tile(w9, (1, Ww))                        # (9, Ww*Cg) broadcast over output w
    br = jnp.tile(bias.reshape(1, Cg), (1, Ww))       # (1, Ww*Cg)
    out = pl.pallas_call(
        functools.partial(_dw3x3_res_kernel, H=Hh, W=Ww, Cg=Cg),
        out_shape=jax.ShapeDtypeStruct((B, Hh, Ww * Cg), jnp.float32),
        grid=(B,),
        in_specs=[pl.BlockSpec((1, Hh + 2, (Ww + 2) * Cg), lambda i: (i, 0, 0)),
                  pl.BlockSpec((9, Ww * Cg), lambda i: (0, 0)),
                  pl.BlockSpec((1, Ww * Cg), lambda i: (0, 0))],
        out_specs=pl.BlockSpec((1, Hh, Ww * Cg), lambda i: (i, 0, 0)),
        compiler_params=pltpu.CompilerParams(dimension_semantics=("parallel",)),
    )(xpad, wr, br)
    return out.reshape(B, Hh * Ww, Cg)


def _attn_kernel(projh_ref, kv_ref, v_ref, o_ref, *, q_off, H2, d, scale):
    """Half-head-group attention. q is sliced out of the fused [q|theta] projection in-kernel;
       output is lane-dense token layout (Nq, H2*d)."""
    Ch2 = H2 * d
    q = projh_ref[0, :, q_off:q_off + Ch2]            # (Nq, Ch2)
    k = kv_ref[0, :, :Ch2]                            # (Nk, Ch2)
    v = v_ref[0]                                      # (Nk, Ch2)
    outs = []
    for h in range(H2):                               # tiny static head count -> unrolled
        qh = q[:, h * d:(h + 1) * d].astype(jnp.bfloat16)      # (Nq, d)
        kh = k[:, h * d:(h + 1) * d].astype(jnp.bfloat16)      # (Nk, d)
        vh = v[:, h * d:(h + 1) * d].astype(jnp.bfloat16)      # (Nk, d)
        s = lax.dot_general(qh, kh, (((1,), (1,)), ((), ())),
                            preferred_element_type=jnp.float32) * scale       # (Nq, Nk) on MXU
        s = s - jnp.max(s, axis=-1, keepdims=True)
        e = jnp.exp(s)
        p = e * pl.reciprocal(jnp.sum(e, axis=-1, keepdims=True), approx=True)  # EUP reciprocal
        outs.append(jnp.dot(p.astype(jnp.bfloat16), vh,
                            preferred_element_type=jnp.float32))               # (Nq, d) on MXU
    o_ref[0] = jnp.concatenate(outs, axis=-1)         # (Nq, Ch2) token layout


def attention(proj_h, kv, v, *, q_off, H2, d, scale):
    """proj_h:(B,Nq,2C) [q|theta], kv:(B,Nk,C) [k|v_pre], v:(B,Nk,H2*d) -> (B,Nq,H2*d)."""
    B, Nq, W2 = proj_h.shape
    _, Nk, C = kv.shape
    Ch2 = H2 * d
    return pl.pallas_call(
        functools.partial(_attn_kernel, q_off=q_off, H2=H2, d=d, scale=scale),
        out_shape=jax.ShapeDtypeStruct((B, Nq, Ch2), jnp.float32),
        grid=(B,),
        in_specs=[pl.BlockSpec((1, Nq, W2), lambda i: (i, 0, 0)),
                  pl.BlockSpec((1, Nk, C), lambda i: (i, 0, 0)),
                  pl.BlockSpec((1, Nk, Ch2), lambda i: (i, 0, 0))],
        out_specs=pl.BlockSpec((1, Nq, Ch2), lambda i: (i, 0, 0)),
        compiler_params=pltpu.CompilerParams(dimension_semantics=("parallel",)),
    )(proj_h, kv, v)


def _fuse_kernel(projh_ref, projl_ref, x1_ref, x2_ref, xh_ref, wt_ref, b_ref, o_ref, *, C, inv_c):
    """Non-local branch + fused W1/W2 (BN folded) + residual; output written in NCHW layout."""
    theta = projh_ref[0, :, C:2 * C].astype(jnp.bfloat16)       # (N, C)
    g = projl_ref[0, :, :C].astype(jnp.bfloat16)                # (N, C)
    phi = projl_ref[0, :, C:2 * C].astype(jnp.bfloat16)         # (N, C)
    # m = energy^T : m[c2, c1] = sum_n phi[n, c2] * theta[n, c1]
    m = lax.dot_general(phi, theta, (((0,), (0,)), ((), ())),
                        preferred_element_type=jnp.float32)     # (C, C)
    y12 = jnp.dot(g, m.astype(jnp.bfloat16),
                  preferred_element_type=jnp.float32) * inv_c   # (N, C)  == attention @ g
    # [ y1_ | y12 ] along K, single GEMM against stacked (then transposed) [W1 ; W2]
    y = jnp.concatenate([x1_ref[0], x2_ref[0], y12], axis=-1).astype(jnp.bfloat16)   # (N, 2C)
    # z^T[ch, n] = sum_k wcat[k, ch] * y[n, k]   with wt_ref = wcat^T : (Ch, 2C)
    zt = lax.dot_general(wt_ref[...], y, (((1,), (1,)), ((), ())),
                         preferred_element_type=jnp.float32)    # (Ch, N)
    o_ref[0] = zt + b_ref[...] + xh_ref[0]


def fuse(proj_h, proj_l, x1, x2, xh_cm, wcat_t, bcat, *, C):
    """-> z in channels-major (B, Ch, N) layout (== NCHW after a free reshape)."""
    B, N, _ = proj_h.shape
    Ch = wcat_t.shape[0]
    Ch2 = x1.shape[2]
    return pl.pallas_call(
        functools.partial(_fuse_kernel, C=C, inv_c=1.0 / C),
        out_shape=jax.ShapeDtypeStruct((B, Ch, N), jnp.float32),
        grid=(B,),
        in_specs=[pl.BlockSpec((1, N, 2 * C), lambda i: (i, 0, 0)),
                  pl.BlockSpec((1, N, 2 * C), lambda i: (i, 0, 0)),
                  pl.BlockSpec((1, N, Ch2), lambda i: (i, 0, 0)),
                  pl.BlockSpec((1, N, Ch2), lambda i: (i, 0, 0)),
                  pl.BlockSpec((1, Ch, N), lambda i: (i, 0, 0)),
                  pl.BlockSpec((Ch, 2 * C), lambda i: (0, 0)),
                  pl.BlockSpec((Ch, 1), lambda i: (0, 0))],
        out_specs=pl.BlockSpec((1, Ch, N), lambda i: (i, 0, 0)),
        compiler_params=pltpu.CompilerParams(dimension_semantics=("parallel",)),
    )(proj_h, proj_l, x1, x2, xh_cm, wcat_t, bcat)


# ----------------------------- parameter setup -----------------------------

def fold_bn_into_1x1(conv_w, conv_b, gamma, beta, mean, var, eps=1e-5):
    """Fold eval-mode BatchNorm2d into a 1x1 conv. Returns (Cin, Cout) weight and (Cout,) bias."""
    Cout, Cin = conv_w.shape[:2]
    s = gamma / jnp.sqrt(var + eps)
    w = conv_w.reshape(Cout, Cin).T * s[None, :]
    b = (conv_b - mean) * s + beta
    return w, b


def init_params(key, high_dim, low_dim):
    C, Ch = low_dim, high_dim
    keys = jax.random.split(key, 40)
    ki = iter(keys)
    n = lambda shape, std=0.02: jax.random.normal(next(ki), shape, jnp.float32) * std
    p = {}
    p['q_w'] = n((C, Ch));              p['q_b'] = n((C,))            # Linear(high_dim, low_dim)
    p['g_w'] = n((C, C, 1, 1), 0.1);    p['g_b'] = n((C,))            # 1x1 conv
    p['theta_w'] = n((C, Ch, 1, 1), 0.1); p['theta_b'] = n((C,))      # 1x1 conv
    p['phi_w'] = n((C, C, 1, 1), 0.1);  p['phi_b'] = n((C,))          # 1x1 conv (flag=0 -> stride 1)
    p['sr1_w'] = n((C, C, 2, 2), 0.1);  p['sr1_b'] = n((C,))          # conv k=2 s=2
    p['sr2_w'] = n((C, C, 1, 1), 0.1);  p['sr2_b'] = n((C,))          # conv k=1 s=1
    p['ln1_g'] = 1.0 + n((C,));         p['ln1_b'] = n((C,))
    p['ln2_g'] = 1.0 + n((C,));         p['ln2_b'] = n((C,))
    p['kv1_w'] = n((C, C));             p['kv1_b'] = n((C,))
    p['kv2_w'] = n((C, C));             p['kv2_b'] = n((C,))
    p['lc1_w'] = n((C // 2, 1, 3, 3), 0.1); p['lc1_b'] = n((C // 2,))
    p['lc2_w'] = n((C // 2, 1, 3, 3), 0.1); p['lc2_b'] = n((C // 2,))
    # W1 / W2 = Conv2d(low->high, 1x1) + BatchNorm2d(high) (eval mode, folded)
    w1c_w = n((Ch, C, 1, 1), 0.1); w1c_b = n((Ch,))
    w2c_w = n((Ch, C, 1, 1), 0.1); w2c_b = n((Ch,))
    bn1_g = 1.0 + n((Ch,)); bn1_b = n((Ch,)); bn1_m = n((Ch,)); bn1_v = 1.0 + jnp.abs(n((Ch,)))
    bn2_g = 1.0 + n((Ch,)); bn2_b = n((Ch,)); bn2_m = n((Ch,)); bn2_v = 1.0 + jnp.abs(n((Ch,)))
    p['w1f_w'], p['w1f_b'] = fold_bn_into_1x1(w1c_w, w1c_b, bn1_g, bn1_b, bn1_m, bn1_v)
    p['w2f_w'], p['w2f_b'] = fold_bn_into_1x1(w2c_w, w2c_b, bn2_g, bn2_b, bn2_m, bn2_v)
    return p


# ----------------------------- forward pass -----------------------------

def cnl_forward(x_h, x_l, p, *, num_heads=8, sr_ratio=2):
    B, Ch, hh, wh = x_h.shape
    _, C, hl, wl = x_l.shape
    Nh, Nl = hh * wh, hl * wl
    assert Nh == Nl, "non-local branch + final residual add require matching spatial sizes"
    assert sr_ratio == 2
    H = num_heads
    d = C // H
    H2, Ch2 = H // 2, C // 2
    scale = C ** (-0.5)
    bf16 = jnp.bfloat16

    # ---- derived weights: fused projections / bf16 at the MXU edge (biases stay f32) ----
    wqt = jnp.concatenate([p['q_w'].T, p['theta_w'].reshape(C, Ch).T], axis=1).astype(bf16)  # (Ch,2C)
    bqt = jnp.concatenate([p['q_b'], p['theta_b']]).reshape(1, 2 * C)
    wgp = jnp.concatenate([p['g_w'].reshape(C, C).T,
                           p['phi_w'].reshape(C, C).T], axis=1).astype(bf16)                 # (C,2C)
    bgp = jnp.concatenate([p['g_b'], p['phi_b']]).reshape(1, 2 * C)
    sr1_w = p['sr1_w'].reshape(C, 4 * C).T.astype(bf16)                                      # (4C,C)
    sr2_w = p['sr2_w'].reshape(C, C).T.astype(bf16)                                          # (C,C)
    kv1_w = p['kv1_w'].T.astype(bf16)
    kv2_w = p['kv2_w'].T.astype(bf16)
    lc1_w9 = jnp.transpose(p['lc1_w'][:, 0], (1, 2, 0)).reshape(9, Ch2)                      # (9,Cg)
    lc2_w9 = jnp.transpose(p['lc2_w'][:, 0], (1, 2, 0)).reshape(9, Ch2)
    wcat_t = jnp.concatenate([p['w1f_w'], p['w2f_w']], axis=0).T.astype(bf16)                # (Ch,2C)
    bcat = (p['w1f_b'] + p['w2f_b']).reshape(Ch, 1)

    # channels-major views of the inputs (free reshapes of NCHW)
    xh_cm = x_h.reshape(B, Ch, Nh)
    xl_cm = x_l.reshape(B, C, Nl)

    # fused q|theta and g|phi 1x1 projections (token-layout outputs)
    proj_h = proj(xh_cm, wqt, bqt)                         # (B, Nh, 2C) = [q | theta]
    proj_l = proj(xl_cm, wgp, bgp)                         # (B, Nl, 2C) = [g | phi]

    # SR branch 1: sr1 (2x2 stride-2 conv) as channels-major patch matmul, fused LN+GELU+kv1
    h1, w1 = hl // 2, wl // 2
    N1 = h1 * w1
    patches = (x_l.reshape(B, C, h1, 2, w1, 2)
                  .transpose(0, 1, 3, 5, 2, 4)             # (B, C, kh, kw, h1, w1)
                  .reshape(B, 4 * C, N1))
    kv1 = sr_ln_gelu_kv(patches, sr1_w, p['sr1_b'].reshape(1, C),
                        p['ln1_g'].reshape(1, C), p['ln1_b'].reshape(1, C),
                        kv1_w, p['kv1_b'].reshape(1, C))   # (B, N1, C)
    # SR branch 2: sr2 (1x1 conv) fused with LN+GELU+kv2
    kv2 = sr_ln_gelu_kv(xl_cm, sr2_w, p['sr2_b'].reshape(1, C),
                        p['ln2_g'].reshape(1, C), p['ln2_b'].reshape(1, C),
                        kv2_w, p['kv2_b'].reshape(1, C))   # (B, Nl, C)

    # v = v + depthwise3x3(v) with the residual fused in-kernel (lane-packed (W*Cg) layout)
    v1 = dwconv3x3_residual(kv1[:, :, Ch2:], h1, w1, Ch2, lc1_w9, p['lc1_b'])   # (B, N1, Ch2)
    v2 = dwconv3x3_residual(kv2[:, :, Ch2:], hl, wl, Ch2, lc2_w9, p['lc2_b'])   # (B, Nl, Ch2)

    # dual-branch attention (attn_drop is identity, p=0); outputs are lane-dense token layout
    x1 = attention(proj_h, kv1, v1, q_off=0,   H2=H2, d=d, scale=scale)         # (B, Nh, Ch2)
    x2 = attention(proj_h, kv2, v2, q_off=Ch2, H2=H2, d=d, scale=scale)         # (B, Nh, Ch2)

    # non-local branch + z = W1(y1_) + W2(y12) + x_h, fused, written directly in NCHW layout
    z_cm = fuse(proj_h, proj_l, x1, x2, xh_cm, wcat_t, bcat, C=C)               # (B, Ch, Nh)
    return z_cm.reshape(B, Ch, hh, wh)


# ----------------------------- demo -----------------------------

if __name__ == "__main__":
    B = 2
    high_dim, low_dim = 32, 16
    num_heads = 8
    sr_ratio = 2
    hh = wh = hl = wl = 8

    key = jax.random.PRNGKey(0)
    k1, k2, k3 = jax.random.split(key, 3)
    x_h = jax.random.normal(k1, (B, high_dim, hh, wh), jnp.float32)
    x_l = jax.random.normal(k2, (B, low_dim, hl, wl), jnp.float32)
    params = init_params(k3, high_dim, low_dim)

    fwd = jax.jit(functools.partial(cnl_forward, num_heads=num_heads, sr_ratio=sr_ratio))
    z = fwd(x_h, x_l, params)
    jax.block_until_ready(z)
    assert z.shape == x_h.shape and z.dtype == jnp.float32
    print("KERNEL_OK")
</pallas_src>

<mosaic_0001>
module attributes {stable_mosaic.version = 11 : i64} {
  func.func @_proj_kernel(%arg0: i32, %arg1: memref<1x32x64xf32, #tpu.memory_space<vmem>>, %arg2: memref<32x32xbf16, #tpu.memory_space<vmem>>, %arg3: memref<1x32xf32, #tpu.memory_space<vmem>>, %arg4: memref<1x64x32xf32, #tpu.memory_space<vmem>>) attributes {dimension_semantics = [#tpu.dimension_semantics<parallel>], iteration_bounds = array<i64: 2>, scalar_prefetch = 0 : i64, scratch_operands = 0 : i64, tpu.core_type = #tpu.core_type<tc>, window_params = [{transform_indices = @transform_0, window_bounds = array<i64: 1, 32, 64>}, {pipeline_mode = #tpu.pipeline_mode<synchronous>, transform_indices = @transform_1, window_bounds = array<i64: 32, 32>}, {pipeline_mode = #tpu.pipeline_mode<synchronous>, transform_indices = @transform_2, window_bounds = array<i64: 1, 32>}, {transform_indices = @transform_3, window_bounds = array<i64: 1, 64, 32>}]} {
    %c0 = arith.constant 0 : index
    %c0_0 = arith.constant 0 : index
    %c0_1 = arith.constant 0 : index
    %0 = vector.load %arg1[%c0, %c0_0, %c0_1] : memref<1x32x64xf32, #tpu.memory_space<vmem>>, vector<1x32x64xf32>
    %1 = vector.shape_cast %0 : vector<1x32x64xf32> to vector<32x64xf32>
    %2 = arith.truncf %1 : vector<32x64xf32> to vector<32x64xbf16>
    %c0_2 = arith.constant 0 : index
    %c0_3 = arith.constant 0 : index
    %3 = vector.load %arg2[%c0_2, %c0_3] : memref<32x32xbf16, #tpu.memory_space<vmem>>, vector<32x32xbf16>
    %cst = arith.constant dense<0.000000e+00> : vector<64x32xf32>
    %4 = tpu.matmul %2, %3, %cst {dimension_numbers = #tpu.dot_dimension_numbers<[0], [0], [1], [1], [0, 1, 1, 1], [], []>} : vector<32x64xbf16>, vector<32x32xbf16>, vector<64x32xf32> -> vector<64x32xf32>
    %c0_4 = arith.constant 0 : index
    %c0_5 = arith.constant 0 : index
    %5 = vector.load %arg3[%c0_4, %c0_5] : memref<1x32xf32, #tpu.memory_space<vmem>>, vector<1x32xf32>
    %6 = vector.broadcast %5 : vector<1x32xf32> to vector<64x32xf32>
    %7 = arith.addf %4, %6 : vector<64x32xf32>
    %c0_6 = arith.constant 0 : index
    %c0_7 = arith.constant 0 : index
    %c0_8 = arith.constant 0 : index
    %8 = vector.load %arg4[%c0_6, %c0_7, %c0_8] : memref<1x64x32xf32, #tpu.memory_space<vmem>>, vector<1x64x32xf32>
    %9 = vector.shape_cast %8 : vector<1x64x32xf32> to vector<64x32xf32>
    %10 = vector.shape_cast %7 : vector<64x32xf32> to vector<1x64x32xf32>
    tpu.vector_store %arg4[%c0_6, %c0_7, %c0_8], %10 {strides = array<i32>} : memref<1x64x32xf32, #tpu.memory_space<vmem>>, vector<1x64x32xf32>,
    return
  }
  func.func @transform_0(%arg0: i32) -> (i32, i32, i32) {
    %c0_i32 = arith.constant 0 : i32
    %c0_i32_0 = arith.constant 0 : i32
    %c0_i32_1 = arith.constant 0 : i32
    return %arg0, %c0_i32, %c0_i32_0 : i32, i32, i32
  }
  func.func @transform_1(%arg0: i32) -> (i32, i32) {
    %c0_i32 = arith.constant 0 : i32
    %c0_i32_0 = arith.constant 0 : i32
    %c0_i32_1 = arith.constant 0 : i32
    return %c0_i32, %c0_i32_0 : i32, i32
  }
  func.func @transform_2(%arg0: i32) -> (i32, i32) {
    %c0_i32 = arith.constant 0 : i32
    %c0_i32_0 = arith.constant 0 : i32
    %c0_i32_1 = arith.constant 0 : i32
    return %c0_i32, %c0_i32_0 : i32, i32
  }
  func.func @transform_3(%arg0: i32) -> (i32, i32, i32) {
    %c0_i32 = arith.constant 0 : i32
    %c0_i32_0 = arith.constant 0 : i32
    %c0_i32_1 = arith.constant 0 : i32
    return %arg0, %c0_i32, %c0_i32_0 : i32, i32, i32
  }
}

module attributes {stable_mosaic.version = 11 : i64} {
  func.func @_srkv_kernel(%arg0: i32, %arg1: memref<1x16x64xf32, #tpu.memory_space<vmem>>, %arg2: memref<16x16xbf16, #tpu.memory_space<vmem>>, %arg3: memref<1x16xf32, #tpu.memory_space<vmem>>, %arg4: memref<1x16xf32, #tpu.memory_space<vmem>>, %arg5: memref<1x16xf32, #tpu.memory_space<vmem>>, %arg6: memref<16x16xbf16, #tpu.memory_space<vmem>>, %arg7: memref<1x16xf32, #tpu.memory_space<vmem>>, %arg8: memref<1x64x16xf32, #tpu.memory_space<vmem>>) attributes {dimension_semantics = [#tpu.dimension_semantics<parallel>], iteration_bounds = array<i64: 2>, scalar_prefetch = 0 : i64, scratch_operands = 0 : i64, tpu.core_type = #tpu.core_type<tc>, window_params = [{transform_indices = @transform_0, window_bounds = array<i64: 1, 16, 64>}, {pipeline_mode = #tpu.pipeline_mode<synchronous>, transform_indices = @transform_1, window_bounds = array<i64: 16, 16>}, {pipeline_mode = #tpu.pipeline_mode<synchronous>, transform_indices = @transform_2, window_bounds = array<i64: 1, 16>}, {pipeline_mode = #tpu.pipeline_mode<synchronous>, transform_indices = @transform_3, window_bounds = array<i64: 1, 16>}, {pipeline_mode = #tpu.pipeline_mode<synchronous>, transform_indices = @transform_4, window_bounds = array<i64: 1, 16>}, {pipeline_mode = #tpu.pipeline_mode<synchronous>, transform_indices = @transform_5, window_bounds = array<i64: 16, 16>}, {pipeline_mode = #tpu.pipeline_mode<synchronous>, transform_indices = @transform_6, window_bounds = array<i64: 1, 16>}, {transform_indices = @transform_7, window_bounds = array<i64: 1, 64, 16>}]} {
    %c0 = arith.constant 0 : index
    %c0_0 = arith.constant 0 : index
    %c0_1 = arith.constant 0 : index
    %0 = vector.load %arg1[%c0, %c0_0, %c0_1] : memref<1x16x64xf32, #tpu.memory_space<vmem>>, vector<1x16x64xf32>
    %1 = vector.shape_cast %0 : vector<1x16x64xf32> to vector<16x64xf32>
    %2 = arith.truncf %1 : vector<16x64xf32> to vector<16x64xbf16>
    %c0_2 = arith.constant 0 : index
    %c0_3 = arith.constant 0 : index
    %3 = vector.load %arg2[%c0_2, %c0_3] : memref<16x16xbf16, #tpu.memory_space<vmem>>, vector<16x16xbf16>
    %cst = arith.constant dense<0.000000e+00> : vector<64x16xf32>
    %4 = tpu.matmul %2, %3, %cst {dimension_numbers = #tpu.dot_dimension_numbers<[0], [0], [1], [1], [0, 1, 1, 1], [], []>} : vector<16x64xbf16>, vector<16x16xbf16>, vector<64x16xf32> -> vector<64x16xf32>
    %c0_4 = arith.constant 0 : index
    %c0_5 = arith.constant 0 : index
    %5 = vector.load %arg3[%c0_4, %c0_5] : memref<1x16xf32, #tpu.memory_space<vmem>>, vector<1x16xf32>
    %6 = vector.broadcast %5 : vector<1x16xf32> to vector<64x16xf32>
    %7 = arith.addf %4, %6 : vector<64x16xf32>
    %cst_6 = arith.constant dense<0.000000e+00> : vector<64xf32>
    %8 = vector.multi_reduction <add>, %7, %cst_6 [1] : vector<64x16xf32> to vector<64xf32>
    %9 = vector.shape_cast %8 : vector<64xf32> to vector<64x1xf32>
    %cst_7 = arith.constant 1.600000e+01 : f32
    %10 = vector.broadcast %cst_7 : f32 to vector<64x1xf32>
    %11 = arith.divf %9, %10 : vector<64x1xf32>
    %12 = vector.broadcast %11 : vector<64x1xf32> to vector<64x16xf32>
    %13 = arith.subf %7, %12 : vector<64x16xf32>
    %14 = arith.mulf %13, %13 : vector<64x16xf32>
    %cst_8 = arith.constant dense<0.000000e+00> : vector<64xf32>
    %15 = vector.multi_reduction <add>, %14, %cst_8 [1] : vector<64x16xf32> to vector<64xf32>
    %16 = vector.shape_cast %15 : vector<64xf32> to vector<64x1xf32>
    %cst_9 = arith.constant 1.600000e+01 : f32
    %17 = vector.broadcast %cst_9 : f32 to vector<64x1xf32>
    %18 = arith.divf %16, %17 : vector<64x1xf32>
    %19 = vector.broadcast %11 : vector<64x1xf32> to vector<64x16xf32>
    %20 = arith.subf %7, %19 : vector<64x16xf32>
    %cst_10 = arith.constant 9.99999974E-6 : f32
    %21 = vector.broadcast %cst_10 : f32 to vector<64x1xf32>
    %22 = arith.addf %18, %21 : vector<64x1xf32>
    %23 = math.rsqrt %22 : vector<64x1xf32>
    %24 = vector.broadcast %23 : vector<64x1xf32> to vector<64x16xf32>
    %25 = arith.mulf %20, %24 : vector<64x16xf32>
    %c0_11 = arith.constant 0 : index
    %c0_12 = arith.constant 0 : index
    %26 = vector.load %arg4[%c0_11, %c0_12] : memref<1x16xf32, #tpu.memory_space<vmem>>, vector<1x16xf32>
    %27 = vector.broadcast %26 : vector<1x16xf32> to vector<64x16xf32>
    %28 = arith.mulf %25, %27 : vector<64x16xf32>
    %c0_13 = arith.constant 0 : index
    %c0_14 = arith.constant 0 : index
    %29 = vector.load %arg5[%c0_13, %c0_14] : memref<1x16xf32, #tpu.memory_space<vmem>>, vector<1x16xf32>
    %30 = vector.broadcast %29 : vector<1x16xf32> to vector<64x16xf32>
    %31 = arith.addf %28, %30 : vector<64x16xf32>
    %cst_15 = arith.constant 5.000000e-01 : f32
    %32 = vector.broadcast %cst_15 : f32 to vector<64x16xf32>
    %33 = arith.mulf %32, %31 : vector<64x16xf32>
    %cst_16 = arith.constant 0.707106769 : f32
    %34 = vector.broadcast %cst_16 : f32 to vector<64x16xf32>
    %35 = arith.mulf %31, %34 : vector<64x16xf32>
    %36 = math.erf %35 : vector<64x16xf32>
    %cst_17 = arith.constant 1.000000e+00 : f32
    %37 = vector.broadcast %cst_17 : f32 to vector<64x16xf32>
    %38 = arith.addf %37, %36 : vector<64x16xf32>
    %39 = arith.mulf %33, %38 : vector<64x16xf32>
    %40 = arith.truncf %39 : vector<64x16xf32> to vector<64x16xbf16>
    %c0_18 = arith.constant 0 : index
    %c0_19 = arith.constant 0 : index
    %41 = vector.load %arg6[%c0_18, %c0_19] : memref<16x16xbf16, #tpu.memory_space<vmem>>, vector<16x16xbf16>
    %cst_20 = arith.constant dense<0.000000e+00> : vector<64x16xf32>
    %42 = tpu.matmul %40, %41, %cst_20 {dimension_numbers = #tpu.dot_dimension_numbers<[1], [0], [0], [1], [0, 0, 1, 1], [], []>} : vector<64x16xbf16>, vector<16x16xbf16>, vector<64x16xf32> -> vector<64x16xf32>
    %c0_21 = arith.constant 0 : index
    %c0_22 = arith.constant 0 : index
    %43 = vector.load %arg7[%c0_21, %c0_22] : memref<1x16xf32, #tpu.memory_space<vmem>>, vector<1x16xf32>
    %44 = vector.broadcast %43 : vector<1x16xf32> to vector<64x16xf32>
    %45 = arith.addf %42, %44 : vector<64x16xf32>
    %c0_23 = arith.constant 0 : index
    %c0_24 = arith.constant 0 : index
    %c0_25 = arith.constant 0 : index
    %46 = vector.load %arg8[%c0_23, %c0_24, %c0_25] : memref<1x64x16xf32, #tpu.memory_space<vmem>>, vector<1x64x16xf32>
    %47 = vector.shape_cast %46 : vector<1x64x16xf32> to vector<64x16xf32>
    %48 = vector.shape_cast %45 : vector<64x16xf32> to vector<1x64x16xf32>
    tpu.vector_store %arg8[%c0_23, %c0_24, %c0_25], %48 {strides = array<i32>} : memref<1x64x16xf32, #tpu.memory_space<vmem>>, vector<1x64x16xf32>,
    return
  }
  func.func @transform_0(%arg0: i32) -> (i32, i32, i32) {
    %c0_i32 = arith.constant 0 : i32
    %c0_i32_0 = arith.constant 0 : i32
    %c0_i32_1 = arith.constant 0 : i32
    return %arg0, %c0_i32, %c0_i32_0 : i32, i32, i32
  }
  func.func @transform_1(%arg0: i32) -> (i32, i32) {
    %c0_i32 = arith.constant 0 : i32
    %c0_i32_0 = arith.constant 0 : i32
    %c0_i32_1 = arith.constant 0 : i32
    return %c0_i32, %c0_i32_0 : i32, i32
  }
  func.func @transform_2(%arg0: i32) -> (i32, i32) {
    %c0_i32 = arith.constant 0 : i32
    %c0_i32_0 = arith.constant 0 : i32
    %c0_i32_1 = arith.constant 0 : i32
    return %c0_i32, %c0_i32_0 : i32, i32
  }
  func.func @transform_3(%arg0: i32) -> (i32, i32) {
    %c0_i32 = arith.constant 0 : i32
    %c0_i32_0 = arith.constant 0 : i32
    %c0_i32_1 = arith.constant 0 : i32
    return %c0_i32, %c0_i32_0 : i32, i32
  }
  func.func @transform_4(%arg0: i32) -> (i32, i32) {
    %c0_i32 = arith.constant 0 : i32
    %c0_i32_0 = arith.constant 0 : i32
    %c0_i32_1 = arith.constant 0 : i32
    return %c0_i32, %c0_i32_0 : i32, i32
  }
  func.func @transform_5(%arg0: i32) -> (i32, i32) {
    %c0_i32 = arith.constant 0 : i32
    %c0_i32_0 = arith.constant 0 : i32
    %c0_i32_1 = arith.constant 0 : i32
    return %c0_i32, %c0_i32_0 : i32, i32
  }
  func.func @transform_6(%arg0: i32) -> (i32, i32) {
    %c0_i32 = arith.constant 0 : i32
    %c0_i32_0 = arith.constant 0 : i32
    %c0_i32_1 = arith.constant 0 : i32
    return %c0_i32, %c0_i32_0 : i32, i32
  }
  func.func @transform_7(%arg0: i32) -> (i32, i32, i32) {
    %c0_i32 = arith.constant 0 : i32
    %c0_i32_0 = arith.constant 0 : i32
    %c0_i32_1 = arith.constant 0 : i32
    return %arg0, %c0_i32, %c0_i32_0 : i32, i32, i32
  }
}

module attributes {stable_mosaic.version = 11 : i64} {
  func.func @_dw3x3_res_kernel(%arg0: i32, %arg1: memref<1x10x80xf32, #tpu.memory_space<vmem>>, %arg2: memref<9x64xf32, #tpu.memory_space<vmem>>, %arg3: memref<1x64xf32, #tpu.memory_space<vmem>>, %arg4: memref<1x8x64xf32, #tpu.memory_space<vmem>>) attributes {dimension_semantics = [#tpu.dimension_semantics<parallel>], iteration_bounds = array<i64: 2>, scalar_prefetch = 0 : i64, scratch_operands = 0 : i64, tpu.core_type = #tpu.core_type<tc>, window_params = [{transform_indices = @transform_0, window_bounds = array<i64: 1, 10, 80>}, {pipeline_mode = #tpu.pipeline_mode<synchronous>, transform_indices = @transform_1, window_bounds = array<i64: 9, 64>}, {pipeline_mode = #tpu.pipeline_mode<synchronous>, transform_indices = @transform_2, window_bounds = array<i64: 1, 64>}, {transform_indices = @transform_3, window_bounds = array<i64: 1, 8, 64>}]} {
    %c0 = arith.constant 0 : index
    %c0_0 = arith.constant 0 : index
    %c0_1 = arith.constant 0 : index
    %0 = vector.load %arg1[%c0, %c0_0, %c0_1] : memref<1x10x80xf32, #tpu.memory_space<vmem>>, vector<1x10x80xf32>
    %1 = vector.shape_cast %0 : vector<1x10x80xf32> to vector<10x80xf32>
    %c0_2 = arith.constant 0 : index
    %c0_3 = arith.constant 0 : index
    %2 = vector.load %arg2[%c0_2, %c0_3] : memref<9x64xf32, #tpu.memory_space<vmem>>, vector<9x64xf32>
    %cst = arith.constant 0.000000e+00 : f32
    %3 = vector.broadcast %cst : f32 to vector<8x64xf32>
    %4 = vector.extract_strided_slice %1 {offsets = [0, 0], sizes = [8, 64], strides = [1, 1]} : vector<10x80xf32> to vector<8x64xf32>
    %5 = vector.extract_strided_slice %2 {offsets = [0, 0], sizes = [1, 64], strides = [1, 1]} : vector<9x64xf32> to vector<1x64xf32>
    %6 = vector.broadcast %5 : vector<1x64xf32> to vector<8x64xf32>
    %7 = arith.mulf %4, %6 : vector<8x64xf32>
    %8 = arith.addf %3, %7 : vector<8x64xf32>
    %9 = vector.extract_strided_slice %1 {offsets = [0, 8], sizes = [8, 64], strides = [1, 1]} : vector<10x80xf32> to vector<8x64xf32>
    %10 = vector.extract_strided_slice %2 {offsets = [1, 0], sizes = [1, 64], strides = [1, 1]} : vector<9x64xf32> to vector<1x64xf32>
    %11 = vector.broadcast %10 : vector<1x64xf32> to vector<8x64xf32>
    %12 = arith.mulf %9, %11 : vector<8x64xf32>
    %13 = arith.addf %8, %12 : vector<8x64xf32>
    %14 = vector.extract_strided_slice %1 {offsets = [0, 16], sizes = [8, 64], strides = [1, 1]} : vector<10x80xf32> to vector<8x64xf32>
    %15 = vector.extract_strided_slice %2 {offsets = [2, 0], sizes = [1, 64], strides = [1, 1]} : vector<9x64xf32> to vector<1x64xf32>
    %16 = vector.broadcast %15 : vector<1x64xf32> to vector<8x64xf32>
    %17 = arith.mulf %14, %16 : vector<8x64xf32>
    %18 = arith.addf %13, %17 : vector<8x64xf32>
    %19 = vector.extract_strided_slice %1 {offsets = [1, 0], sizes = [8, 64], strides = [1, 1]} : vector<10x80xf32> to vector<8x64xf32>
    %20 = vector.extract_strided_slice %2 {offsets = [3, 0], sizes = [1, 64], strides = [1, 1]} : vector<9x64xf32> to vector<1x64xf32>
    %21 = vector.broadcast %20 : vector<1x64xf32> to vector<8x64xf32>
    %22 = arith.mulf %19, %21 : vector<8x64xf32>
    %23 = arith.addf %18, %22 : vector<8x64xf32>
    %24 = vector.extract_strided_slice %1 {offsets = [1, 8], sizes = [8, 64], strides = [1, 1]} : vector<10x80xf32> to vector<8x64xf32>
    %25 = vector.extract_strided_slice %2 {offsets = [4, 0], sizes = [1, 64], strides = [1, 1]} : vector<9x64xf32> to vector<1x64xf32>
    %26 = vector.broadcast %25 : vector<1x64xf32> to vector<8x64xf32>
    %27 = arith.mulf %24, %26 : vector<8x64xf32>
    %28 = arith.addf %23, %27 : vector<8x64xf32>
    %29 = vector.extract_strided_slice %1 {offsets = [1, 16], sizes = [8, 64], strides = [1, 1]} : vector<10x80xf32> to vector<8x64xf32>
    %30 = vector.extract_strided_slice %2 {offsets = [5, 0], sizes = [1, 64], strides = [1, 1]} : vector<9x64xf32> to vector<1x64xf32>
    %31 = vector.broadcast %30 : vector<1x64xf32> to vector<8x64xf32>
    %32 = arith.mulf %29, %31 : vector<8x64xf32>
    %33 = arith.addf %28, %32 : vector<8x64xf32>
    %34 = vector.extract_strided_slice %1 {offsets = [2, 0], sizes = [8, 64], strides = [1, 1]} : vector<10x80xf32> to vector<8x64xf32>
    %35 = vector.extract_strided_slice %2 {offsets = [6, 0], sizes = [1, 64], strides = [1, 1]} : vector<9x64xf32> to vector<1x64xf32>
    %36 = vector.broadcast %35 : vector<1x64xf32> to vector<8x64xf32>
    %37 = arith.mulf %34, %36 : vector<8x64xf32>
    %38 = arith.addf %33, %37 : vector<8x64xf32>
    %39 = vector.extract_strided_slice %1 {offsets = [2, 8], sizes = [8, 64], strides = [1, 1]} : vector<10x80xf32> to vector<8x64xf32>
    %40 = vector.extract_strided_slice %2 {offsets = [7, 0], sizes = [1, 64], strides = [1, 1]} : vector<9x64xf32> to vector<1x64xf32>
    %41 = vector.broadcast %40 : vector<1x64xf32> to vector<8x64xf32>
    %42 = arith.mulf %39, %41 : vector<8x64xf32>
    %43 = arith.addf %38, %42 : vector<8x64xf32>
    %44 = vector.extract_strided_slice %1 {offsets = [2, 16], sizes = [8, 64], strides = [1, 1]} : vector<10x80xf32> to vector<8x64xf32>
    %45 = vector.extract_strided_slice %2 {offsets = [8, 0], sizes = [1, 64], strides = [1, 1]} : vector<9x64xf32> to vector<1x64xf32>
    %46 = vector.broadcast %45 : vector<1x64xf32> to vector<8x64xf32>
    %47 = arith.mulf %44, %46 : vector<8x64xf32>
    %48 = arith.addf %43, %47 : vector<8x64xf32>
    %49 = vector.extract_strided_slice %1 {offsets = [1, 8], sizes = [8, 64], strides = [1, 1]} : vector<10x80xf32> to vector<8x64xf32>
    %50 = arith.addf %49, %48 : vector<8x64xf32>
    %c0_4 = arith.constant 0 : index
    %c0_5 = arith.constant 0 : index
    %51 = vector.load %arg3[%c0_4, %c0_5] : memref<1x64xf32, #tpu.memory_space<vmem>>, vector<1x64xf32>
    %52 = vector.broadcast %51 : vector<1x64xf32> to vector<8x64xf32>
    %53 = arith.addf %50, %52 : vector<8x64xf32>
    %c0_6 = arith.constant 0 : index
    %c0_7 = arith.constant 0 : index
    %c0_8 = arith.constant 0 : index
    %54 = vector.load %arg4[%c0_6, %c0_7, %c0_8] : memref<1x8x64xf32, #tpu.memory_space<vmem>>, vector<1x8x64xf32>
    %55 = vector.shape_cast %54 : vector<1x8x64xf32> to vector<8x64xf32>
    %56 = vector.shape_cast %53 : vector<8x64xf32> to vector<1x8x64xf32>
    tpu.vector_store %arg4[%c0_6, %c0_7, %c0_8], %56 {strides = array<i32>} : memref<1x8x64xf32, #tpu.memory_space<vmem>>, vector<1x8x64xf32>,
    return
  }
  func.func @transform_0(%arg0: i32) -> (i32, i32, i32) {
    %c0_i32 = arith.constant 0 : i32
    %c0_i32_0 = arith.constant 0 : i32
    %c0_i32_1 = arith.constant 0 : i32
    return %arg0, %c0_i32, %c0_i32_0 : i32, i32, i32
  }
  func.func @transform_1(%arg0: i32) -> (i32, i32) {
    %c0_i32 = arith.constant 0 : i32
    %c0_i32_0 = arith.constant 0 : i32
    %c0_i32_1 = arith.constant 0 : i32
    return %c0_i32, %c0_i32_0 : i32, i32
  }
  func.func @transform_2(%arg0: i32) -> (i32, i32) {
    %c0_i32 = arith.constant 0 : i32
    %c0_i32_0 = arith.constant 0 : i32
    %c0_i32_1 = arith.constant 0 : i32
    return %c0_i32, %c0_i32_0 : i32, i32
  }
  func.func @transform_3(%arg0: i32) -> (i32, i32, i32) {
    %c0_i32 = arith.constant 0 : i32
    %c0_i32_0 = arith.constant 0 : i32
    %c0_i32_1 = arith.constant 0 : i32
    return %arg0, %c0_i32, %c0_i32_0 : i32, i32, i32
  }
}

module attributes {stable_mosaic.version = 11 : i64} {
  func.func @_attn_kernel(%arg0: i32, %arg1: memref<1x64x32xf32, #tpu.memory_space<vmem>>, %arg2: memref<1x64x16xf32, #tpu.memory_space<vmem>>, %arg3: memref<1x64x8xf32, #tpu.memory_space<vmem>>, %arg4: memref<1x64x8xf32, #tpu.memory_space<vmem>>) attributes {dimension_semantics = [#tpu.dimension_semantics<parallel>], iteration_bounds = array<i64: 2>, scalar_prefetch = 0 : i64, scratch_operands = 0 : i64, tpu.core_type = #tpu.core_type<tc>, window_params = [{transform_indices = @transform_0, window_bounds = array<i64: 1, 64, 32>}, {transform_indices = @transform_1, window_bounds = array<i64: 1, 64, 16>}, {transform_indices = @transform_2, window_bounds = array<i64: 1, 64, 8>}, {transform_indices = @transform_3, window_bounds = array<i64: 1, 64, 8>}]} {
    %c0 = arith.constant 0 : index
    %c0_0 = arith.constant 0 : index
    %c8 = arith.constant 8 : index
    %0 = vector.load %arg1[%c0, %c0_0, %c8] : memref<1x64x32xf32, #tpu.memory_space<vmem>>, vector<1x64x8xf32>
    %1 = vector.shape_cast %0 : vector<1x64x8xf32> to vector<64x8xf32>
    %c0_1 = arith.constant 0 : index
    %c0_2 = arith.constant 0 : index
    %c0_3 = arith.constant 0 : index
    %2 = vector.load %arg2[%c0_1, %c0_2, %c0_3] : memref<1x64x16xf32, #tpu.memory_space<vmem>>, vector<1x64x8xf32>
    %3 = vector.shape_cast %2 : vector<1x64x8xf32> to vector<64x8xf32>
    %c0_4 = arith.constant 0 : index
    %c0_5 = arith.constant 0 : index
    %c0_6 = arith.constant 0 : index
    %4 = vector.load %arg3[%c0_4, %c0_5, %c0_6] : memref<1x64x8xf32, #tpu.memory_space<vmem>>, vector<1x64x8xf32>
    %5 = vector.shape_cast %4 : vector<1x64x8xf32> to vector<64x8xf32>
    %6 = vector.extract_strided_slice %1 {offsets = [0, 0], sizes = [64, 2], strides = [1, 1]} : vector<64x8xf32> to vector<64x2xf32>
    %7 = arith.truncf %6 : vector<64x2xf32> to vector<64x2xbf16>
    %8 = vector.extract_strided_slice %3 {offsets = [0, 0], sizes = [64, 2], strides = [1, 1]} : vector<64x8xf32> to vector<64x2xf32>
    %9 = arith.truncf %8 : vector<64x2xf32> to vector<64x2xbf16>
    %10 = vector.extract_strided_slice %5 {offsets = [0, 0], sizes = [64, 2], strides = [1, 1]} : vector<64x8xf32> to vector<64x2xf32>
    %11 = arith.truncf %10 : vector<64x2xf32> to vector<64x2xbf16>
    %cst = arith.constant dense<0.000000e+00> : vector<64x64xf32>
    %12 = tpu.matmul %7, %9, %cst {dimension_numbers = #tpu.dot_dimension_numbers<[1], [1], [0], [0], [0, 0, 1, 0], [], []>} : vector<64x2xbf16>, vector<64x2xbf16>, vector<64x64xf32> -> vector<64x64xf32>
    %cst_7 = arith.constant 2.500000e-01 : f32
    %13 = vector.broadcast %cst_7 : f32 to vector<64x64xf32>
    %14 = arith.mulf %12, %13 : vector<64x64xf32>
    %cst_8 = arith.constant dense<0xFF800000> : vector<64xf32>
    %15 = vector.multi_reduction <maximumf>, %14, %cst_8 [1] : vector<64x64xf32> to vector<64xf32>
    %16 = vector.shape_cast %15 : vector<64xf32> to vector<64x1xf32>
    %17 = vector.broadcast %16 : vector<64x1xf32> to vector<64x64xf32>
    %18 = arith.subf %14, %17 : vector<64x64xf32>
    %19 = math.exp %18 : vector<64x64xf32>
    %cst_9 = arith.constant dense<0.000000e+00> : vector<64xf32>
    %20 = vector.multi_reduction <add>, %19, %cst_9 [1] : vector<64x64xf32> to vector<64xf32>
    %21 = vector.shape_cast %20 : vector<64xf32> to vector<64x1xf32>
    %22 = tpu.reciprocal %21 {approx = true} : vector<64x1xf32> -> vector<64x1xf32>
    %23 = vector.broadcast %22 : vector<64x1xf32> to vector<64x64xf32>
    %24 = arith.mulf %19, %23 : vector<64x64xf32>
    %25 = arith.truncf %24 : vector<64x64xf32> to vector<64x64xbf16>
    %cst_10 = arith.constant dense<0.000000e+00> : vector<64x2xf32>
    %26 = tpu.matmul %25, %11, %cst_10 {dimension_numbers = #tpu.dot_dimension_numbers<[1], [0], [0], [1], [0, 0, 1, 1], [], []>} : vector<64x64xbf16>, vector<64x2xbf16>, vector<64x2xf32> -> vector<64x2xf32>
    %27 = vector.extract_strided_slice %1 {offsets = [0, 2], sizes = [64, 2], strides = [1, 1]} : vector<64x8xf32> to vector<64x2xf32>
    %28 = arith.truncf %27 : vector<64x2xf32> to vector<64x2xbf16>
    %29 = vector.extract_strided_slice %3 {offsets = [0, 2], sizes = [64, 2], strides = [1, 1]} : vector<64x8xf32> to vector<64x2xf32>
    %30 = arith.truncf %29 : vector<64x2xf32> to vector<64x2xbf16>
    %31 = vector.extract_strided_slice %5 {offsets = [0, 2], sizes = [64, 2], strides = [1, 1]} : vector<64x8xf32> to vector<64x2xf32>
    %32 = arith.truncf %31 : vector<64x2xf32> to vector<64x2xbf16>
    %cst_11 = arith.constant dense<0.000000e+00> : vector<64x64xf32>
    %33 = tpu.matmul %28, %30, %cst_11 {dimension_numbers = #tpu.dot_dimension_numbers<[1], [1], [0], [0], [0, 0, 1, 0], [], []>} : vector<64x2xbf16>, vector<64x2xbf16>, vector<64x64xf32> -> vector<64x64xf32>
    %cst_12 = arith.constant 2.500000e-01 : f32
    %34 = vector.broadcast %cst_12 : f32 to vector<64x64xf32>
    %35 = arith.mulf %33, %34 : vector<64x64xf32>
    %cst_13 = arith.constant dense<0xFF800000> : vector<64xf32>
    %36 = vector.multi_reduction <maximumf>, %35, %cst_13 [1] : vector<64x64xf32> to vector<64xf32>
    %37 = vector.shape_cast %36 : vector<64xf32> to vector<64x1xf32>
    %38 = vector.broadcast %37 : vector<64x1xf32> to vector<64x64xf32>
    %39 = arith.subf %35, %38 : vector<64x64xf32>
    %40 = math.exp %39 : vector<64x64xf32>
    %cst_14 = arith.constant dense<0.000000e+00> : vector<64xf32>
    %41 = vector.multi_reduction <add>, %40, %cst_14 [1] : vector<64x64xf32> to vector<64xf32>
    %42 = vector.shape_cast %41 : vector<64xf32> to vector<64x1xf32>
    %43 = tpu.reciprocal %42 {approx = true} : vector<64x1xf32> -> vector<64x1xf32>
    %44 = vector.broadcast %43 : vector<64x1xf32> to vector<64x64xf32>
    %45 = arith.mulf %40, %44 : vector<64x64xf32>
    %46 = arith.truncf %45 : vector<64x64xf32> to vector<64x64xbf16>
    %cst_15 = arith.constant dense<0.000000e+00> : vector<64x2xf32>
    %47 = tpu.matmul %46, %32, %cst_15 {dimension_numbers = #tpu.dot_dimension_numbers<[1], [0], [0], [1], [0, 0, 1, 1], [], []>} : vector<64x64xbf16>, vector<64x2xbf16>, vector<64x2xf32> -> vector<64x2xf32>
    %48 = vector.extract_strided_slice %1 {offsets = [0, 4], sizes = [64, 2], strides = [1, 1]} : vector<64x8xf32> to vector<64x2xf32>
    %49 = arith.truncf %48 : vector<64x2xf32> to vector<64x2xbf16>
    %50 = vector.extract_strided_slice %3 {offsets = [0, 4], sizes = [64, 2], strides = [1, 1]} : vector<64x8xf32> to vector<64x2xf32>
    %51 = arith.truncf %50 : vector<64x2xf32> to vector<64x2xbf16>
    %52 = vector.extract_strided_slice %5 {offsets = [0, 4], sizes = [64, 2], strides = [1, 1]} : vector<64x8xf32> to vector<64x2xf32>
    %53 = arith.truncf %52 : vector<64x2xf32> to vector<64x2xbf16>
    %cst_16 = arith.constant dense<0.000000e+00> : vector<64x64xf32>
    %54 = tpu.matmul %49, %51, %cst_16 {dimension_numbers = #tpu.dot_dimension_numbers<[1], [1], [0], [0], [0, 0, 1, 0], [], []>} : vector<64x2xbf16>, vector<64x2xbf16>, vector<64x64xf32> -> vector<64x64xf32>
    %cst_17 = arith.constant 2.500000e-01 : f32
    %55 = vector.broadcast %cst_17 : f32 to vector<64x64xf32>
    %56 = arith.mulf %54, %55 : vector<64x64xf32>
    %cst_18 = arith.constant dense<0xFF800000> : vector<64xf32>
    %57 = vector.multi_reduction <maximumf>, %56, %cst_18 [1] : vector<64x64xf32> to vector<64xf32>
    %58 = vector.shape_cast %57 : vector<64xf32> to vector<64x1xf32>
    %59 = vector.broadcast %58 : vector<64x1xf32> to vector<64x64xf32>
    %60 = arith.subf %56, %59 : vector<64x64xf32>
    %61 = math.exp %60 : vector<64x64xf32>
    %cst_19 = arith.constant dense<0.000000e+00> : vector<64xf32>
    %62 = vector.multi_reduction <add>, %61, %cst_19 [1] : vector<64x64xf32> to vector<64xf32>
    %63 = vector.shape_cast %62 : vector<64xf32> to vector<64x1xf32>
    %64 = tpu.reciprocal %63 {approx = true} : vector<64x1xf32> -> vector<64x1xf32>
    %65 = vector.broadcast %64 : vector<64x1xf32> to vector<64x64xf32>
    %66 = arith.mulf %61, %65 : vector<64x64xf32>
    %67 = arith.truncf %66 : vector<64x64xf32> to vector<64x64xbf16>
    %cst_20 = arith.constant dense<0.000000e+00> : vector<64x2xf32>
    %68 = tpu.matmul %67, %53, %cst_20 {dimension_numbers = #tpu.dot_dimension_numbers<[1], [0], [0], [1], [0, 0, 1, 1], [], []>} : vector<64x64xbf16>, vector<64x2xbf16>, vector<64x2xf32> -> vector<64x2xf32>
    %69 = vector.extract_strided_slice %1 {offsets = [0, 6], sizes = [64, 2], strides = [1, 1]} : vector<64x8xf32> to vector<64x2xf32>
    %70 = arith.truncf %69 : vector<64x2xf32> to vector<64x2xbf16>
    %71 = vector.extract_strided_slice %3 {offsets = [0, 6], sizes = [64, 2], strides = [1, 1]} : vector<64x8xf32> to vector<64x2xf32>
    %72 = arith.truncf %71 : vector<64x2xf32> to vector<64x2xbf16>
    %73 = vector.extract_strided_slice %5 {offsets = [0, 6], sizes = [64, 2], strides = [1, 1]} : vector<64x8xf32> to vector<64x2xf32>
    %74 = arith.truncf %73 : vector<64x2xf32> to vector<64x2xbf16>
    %cst_21 = arith.constant dense<0.000000e+00> : vector<64x64xf32>
    %75 = tpu.matmul %70, %72, %cst_21 {dimension_numbers = #tpu.dot_dimension_numbers<[1], [1], [0], [0], [0, 0, 1, 0], [], []>} : vector<64x2xbf16>, vector<64x2xbf16>, vector<64x64xf32> -> vector<64x64xf32>
    %cst_22 = arith.constant 2.500000e-01 : f32
    %76 = vector.broadcast %cst_22 : f32 to vector<64x64xf32>
    %77 = arith.mulf %75, %76 : vector<64x64xf32>
    %cst_23 = arith.constant dense<0xFF800000> : vector<64xf32>
    %78 = vector.multi_reduction <maximumf>, %77, %cst_23 [1] : vector<64x64xf32> to vector<64xf32>
    %79 = vector.shape_cast %78 : vector<64xf32> to vector<64x1xf32>
    %80 = vector.broadcast %79 : vector<64x1xf32> to vector<64x64xf32>
    %81 = arith.subf %77, %80 : vector<64x64xf32>
    %82 = math.exp %81 : vector<64x64xf32>
    %cst_24 = arith.constant dense<0.000000e+00> : vector<64xf32>
    %83 = vector.multi_reduction <add>, %82, %cst_24 [1] : vector<64x64xf32> to vector<64xf32>
    %84 = vector.shape_cast %83 : vector<64xf32> to vector<64x1xf32>
    %85 = tpu.reciprocal %84 {approx = true} : vector<64x1xf32> -> vector<64x1xf32>
    %86 = vector.broadcast %85 : vector<64x1xf32> to vector<64x64xf32>
    %87 = arith.mulf %82, %86 : vector<64x64xf32>
    %88 = arith.truncf %87 : vector<64x64xf32> to vector<64x64xbf16>
    %cst_25 = arith.constant dense<0.000000e+00> : vector<64x2xf32>
    %89 = tpu.matmul %88, %74, %cst_25 {dimension_numbers = #tpu.dot_dimension_numbers<[1], [0], [0], [1], [0, 0, 1, 1], [], []>} : vector<64x64xbf16>, vector<64x2xbf16>, vector<64x2xf32> -> vector<64x2xf32>
    %90 = tpu.concatenate %26, %47, %68, %89 in 1 : vector<64x2xf32>, vector<64x2xf32>, vector<64x2xf32>, vector<64x2xf32> -> vector<64x8xf32>
    %c0_26 = arith.constant 0 : index
    %c0_27 = arith.constant 0 : index
    %c0_28 = arith.constant 0 : index
    %91 = vector.load %arg4[%c0_26, %c0_27, %c0_28] : memref<1x64x8xf32, #tpu.memory_space<vmem>>, vector<1x64x8xf32>
    %92 = vector.shape_cast %91 : vector<1x64x8xf32> to vector<64x8xf32>
    %93 = vector.shape_cast %90 : vector<64x8xf32> to vector<1x64x8xf32>
    tpu.vector_store %arg4[%c0_26, %c0_27, %c0_28], %93 {strides = array<i32>} : memref<1x64x8xf32, #tpu.memory_space<vmem>>, vector<1x64x8xf32>,
    return
  }
  func.func @transform_0(%arg0: i32) -> (i32, i32, i32) {
    %c0_i32 = arith.constant 0 : i32
    %c0_i32_0 = arith.constant 0 : i32
    %c0_i32_1 = arith.constant 0 : i32
    return %arg0, %c0_i32, %c0_i32_0 : i32, i32, i32
  }
  func.func @transform_1(%arg0: i32) -> (i32, i32, i32) {
    %c0_i32 = arith.constant 0 : i32
    %c0_i32_0 = arith.constant 0 : i32
    %c0_i32_1 = arith.constant 0 : i32
    return %arg0, %c0_i32, %c0_i32_0 : i32, i32, i32
  }
  func.func @transform_2(%arg0: i32) -> (i32, i32, i32) {
    %c0_i32 = arith.constant 0 : i32
    %c0_i32_0 = arith.constant 0 : i32
    %c0_i32_1 = arith.constant 0 : i32
    return %arg0, %c0_i32, %c0_i32_0 : i32, i32, i32
  }
  func.func @transform_3(%arg0: i32) -> (i32, i32, i32) {
    %c0_i32 = arith.constant 0 : i32
    %c0_i32_0 = arith.constant 0 : i32
    %c0_i32_1 = arith.constant 0 : i32
    return %arg0, %c0_i32, %c0_i32_0 : i32, i32, i32
  }
}

module attributes {stable_mosaic.version = 11 : i64} {
  func.func @_srkv_kernel(%arg0: i32, %arg1: memref<1x64x16xf32, #tpu.memory_space<vmem>>, %arg2: memref<64x16xbf16, #tpu.memory_space<vmem>>, %arg3: memref<1x16xf32, #tpu.memory_space<vmem>>, %arg4: memref<1x16xf32, #tpu.memory_space<vmem>>, %arg5: memref<1x16xf32, #tpu.memory_space<vmem>>, %arg6: memref<16x16xbf16, #tpu.memory_space<vmem>>, %arg7: memref<1x16xf32, #tpu.memory_space<vmem>>, %arg8: memref<1x16x16xf32, #tpu.memory_space<vmem>>) attributes {dimension_semantics = [#tpu.dimension_semantics<parallel>], iteration_bounds = array<i64: 2>, scalar_prefetch = 0 : i64, scratch_operands = 0 : i64, tpu.core_type = #tpu.core_type<tc>, window_params = [{transform_indices = @transform_0, window_bounds = array<i64: 1, 64, 16>}, {pipeline_mode = #tpu.pipeline_mode<synchronous>, transform_indices = @transform_1, window_bounds = array<i64: 64, 16>}, {pipeline_mode = #tpu.pipeline_mode<synchronous>, transform_indices = @transform_2, window_bounds = array<i64: 1, 16>}, {pipeline_mode = #tpu.pipeline_mode<synchronous>, transform_indices = @transform_3, window_bounds = array<i64: 1, 16>}, {pipeline_mode = #tpu.pipeline_mode<synchronous>, transform_indices = @transform_4, window_bounds = array<i64: 1, 16>}, {pipeline_mode = #tpu.pipeline_mode<synchronous>, transform_indices = @transform_5, window_bounds = array<i64: 16, 16>}, {pipeline_mode = #tpu.pipeline_mode<synchronous>, transform_indices = @transform_6, window_bounds = array<i64: 1, 16>}, {transform_indices = @transform_7, window_bounds = array<i64: 1, 16, 16>}]} {
    %c0 = arith.constant 0 : index
    %c0_0 = arith.constant 0 : index
    %c0_1 = arith.constant 0 : index
    %0 = vector.load %arg1[%c0, %c0_0, %c0_1] : memref<1x64x16xf32, #tpu.memory_space<vmem>>, vector<1x64x16xf32>
    %1 = vector.shape_cast %0 : vector<1x64x16xf32> to vector<64x16xf32>
    %2 = arith.truncf %1 : vector<64x16xf32> to vector<64x16xbf16>
    %c0_2 = arith.constant 0 : index
    %c0_3 = arith.constant 0 : index
    %3 = vector.load %arg2[%c0_2, %c0_3] : memref<64x16xbf16, #tpu.memory_space<vmem>>, vector<64x16xbf16>
    %cst = arith.constant dense<0.000000e+00> : vector<16x16xf32>
    %4 = tpu.matmul %2, %3, %cst {dimension_numbers = #tpu.dot_dimension_numbers<[0], [0], [1], [1], [0, 1, 1, 1], [], []>} : vector<64x16xbf16>, vector<64x16xbf16>, vector<16x16xf32> -> vector<16x16xf32>
    %c0_4 = arith.constant 0 : index
    %c0_5 = arith.constant 0 : index
    %5 = vector.load %arg3[%c0_4, %c0_5] : memref<1x16xf32, #tpu.memory_space<vmem>>, vector<1x16xf32>
    %6 = vector.broadcast %5 : vector<1x16xf32> to vector<16x16xf32>
    %7 = arith.addf %4, %6 : vector<16x16xf32>
    %cst_6 = arith.constant dense<0.000000e+00> : vector<16xf32>
    %8 = vector.multi_reduction <add>, %7, %cst_6 [1] : vector<16x16xf32> to vector<16xf32>
    %9 = vector.shape_cast %8 : vector<16xf32> to vector<16x1xf32>
    %cst_7 = arith.constant 1.600000e+01 : f32
    %10 = vector.broadcast %cst_7 : f32 to vector<16x1xf32>
    %11 = arith.divf %9, %10 : vector<16x1xf32>
    %12 = vector.broadcast %11 : vector<16x1xf32> to vector<16x16xf32>
    %13 = arith.subf %7, %12 : vector<16x16xf32>
    %14 = arith.mulf %13, %13 : vector<16x16xf32>
    %cst_8 = arith.constant dense<0.000000e+00> : vector<16xf32>
    %15 = vector.multi_reduction <add>, %14, %cst_8 [1] : vector<16x16xf32> to vector<16xf32>
    %16 = vector.shape_cast %15 : vector<16xf32> to vector<16x1xf32>
    %cst_9 = arith.constant 1.600000e+01 : f32
    %17 = vector.broadcast %cst_9 : f32 to vector<16x1xf32>
    %18 = arith.divf %16, %17 : vector<16x1xf32>
    %19 = vector.broadcast %11 : vector<16x1xf32> to vector<16x16xf32>
    %20 = arith.subf %7, %19 : vector<16x16xf32>
    %cst_10 = arith.constant 9.99999974E-6 : f32
    %21 = vector.broadcast %cst_10 : f32 to vector<16x1xf32>
    %22 = arith.addf %18, %21 : vector<16x1xf32>
    %23 = math.rsqrt %22 : vector<16x1xf32>
    %24 = vector.broadcast %23 : vector<16x1xf32> to vector<16x16xf32>
    %25 = arith.mulf %20, %24 : vector<16x16xf32>
    %c0_11 = arith.constant 0 : index
    %c0_12 = arith.constant 0 : index
    %26 = vector.load %arg4[%c0_11, %c0_12] : memref<1x16xf32, #tpu.memory_space<vmem>>, vector<1x16xf32>
    %27 = vector.broadcast %26 : vector<1x16xf32> to vector<16x16xf32>
    %28 = arith.mulf %25, %27 : vector<16x16xf32>
    %c0_13 = arith.constant 0 : index
    %c0_14 = arith.constant 0 : index
    %29 = vector.load %arg5[%c0_13, %c0_14] : memref<1x16xf32, #tpu.memory_space<vmem>>, vector<1x16xf32>
    %30 = vector.broadcast %29 : vector<1x16xf32> to vector<16x16xf32>
    %31 = arith.addf %28, %30 : vector<16x16xf32>
    %cst_15 = arith.constant 5.000000e-01 : f32
    %32 = vector.broadcast %cst_15 : f32 to vector<16x16xf32>
    %33 = arith.mulf %32, %31 : vector<16x16xf32>
    %cst_16 = arith.constant 0.707106769 : f32
    %34 = vector.broadcast %cst_16 : f32 to vector<16x16xf32>
    %35 = arith.mulf %31, %34 : vector<16x16xf32>
    %36 = math.erf %35 : vector<16x16xf32>
    %cst_17 = arith.constant 1.000000e+00 : f32
    %37 = vector.broadcast %cst_17 : f32 to vector<16x16xf32>
    %38 = arith.addf %37, %36 : vector<16x16xf32>
    %39 = arith.mulf %33, %38 : vector<16x16xf32>
    %40 = arith.truncf %39 : vector<16x16xf32> to vector<16x16xbf16>
    %c0_18 = arith.constant 0 : index
    %c0_19 = arith.constant 0 : index
    %41 = vector.load %arg6[%c0_18, %c0_19] : memref<16x16xbf16, #tpu.memory_space<vmem>>, vector<16x16xbf16>
    %cst_20 = arith.constant dense<0.000000e+00> : vector<16x16xf32>
    %42 = tpu.matmul %40, %41, %cst_20 {dimension_numbers = #tpu.dot_dimension_numbers<[1], [0], [0], [1], [0, 0, 1, 1], [], []>} : vector<16x16xbf16>, vector<16x16xbf16>, vector<16x16xf32> -> vector<16x16xf32>
    %c0_21 = arith.constant 0 : index
    %c0_22 = arith.constant 0 : index
    %43 = vector.load %arg7[%c0_21, %c0_22] : memref<1x16xf32, #tpu.memory_space<vmem>>, vector<1x16xf32>
    %44 = vector.broadcast %43 : vector<1x16xf32> to vector<16x16xf32>
    %45 = arith.addf %42, %44 : vector<16x16xf32>
    %c0_23 = arith.constant 0 : index
    %c0_24 = arith.constant 0 : index
    %c0_25 = arith.constant 0 : index
    %46 = vector.load %arg8[%c0_23, %c0_24, %c0_25] : memref<1x16x16xf32, #tpu.memory_space<vmem>>, vector<1x16x16xf32>
    %47 = vector.shape_cast %46 : vector<1x16x16xf32> to vector<16x16xf32>
    %48 = vector.shape_cast %45 : vector<16x16xf32> to vector<1x16x16xf32>
    tpu.vector_store %arg8[%c0_23, %c0_24, %c0_25], %48 {strides = array<i32>} : memref<1x16x16xf32, #tpu.memory_space<vmem>>, vector<1x16x16xf32>,
    return
  }
  func.func @transform_0(%arg0: i32) -> (i32, i32, i32) {
    %c0_i32 = arith.constant 0 : i32
    %c0_i32_0 = arith.constant 0 : i32
    %c0_i32_1 = arith.constant 0 : i32
    return %arg0, %c0_i32, %c0_i32_0 : i32, i32, i32
  }
  func.func @transform_1(%arg0: i32) -> (i32, i32) {
    %c0_i32 = arith.constant 0 : i32
    %c0_i32_0 = arith.constant 0 : i32
    %c0_i32_1 = arith.constant 0 : i32
    return %c0_i32, %c0_i32_0 : i32, i32
  }
  func.func @transform_2(%arg0: i32) -> (i32, i32) {
    %c0_i32 = arith.constant 0 : i32
    %c0_i32_0 = arith.constant 0 : i32
    %c0_i32_1 = arith.constant 0 : i32
    return %c0_i32, %c0_i32_0 : i32, i32
  }
  func.func @transform_3(%arg0: i32) -> (i32, i32) {
    %c0_i32 = arith.constant 0 : i32
    %c0_i32_0 = arith.constant 0 : i32
    %c0_i32_1 = arith.constant 0 : i32
    return %c0_i32, %c0_i32_0 : i32, i32
  }
  func.func @transform_4(%arg0: i32) -> (i32, i32) {
    %c0_i32 = arith.constant 0 : i32
    %c0_i32_0 = arith.constant 0 : i32
    %c0_i32_1 = arith.constant 0 : i32
    return %c0_i32, %c0_i32_0 : i32, i32
  }
  func.func @transform_5(%arg0: i32) -> (i32, i32) {
    %c0_i32 = arith.constant 0 : i32
    %c0_i32_0 = arith.constant 0 : i32
    %c0_i32_1 = arith.constant 0 : i32
    return %c0_i32, %c0_i32_0 : i32, i32
  }
  func.func @transform_6(%arg0: i32) -> (i32, i32) {
    %c0_i32 = arith.constant 0 : i32
    %c0_i32_0 = arith.constant 0 : i32
    %c0_i32_1 = arith.constant 0 : i32
    return %c0_i32, %c0_i32_0 : i32, i32
  }
  func.func @transform_7(%arg0: i32) -> (i32, i32, i32) {
    %c0_i32 = arith.constant 0 : i32
    %c0_i32_0 = arith.constant 0 : i32
    %c0_i32_1 = arith.constant 0 : i32
    return %arg0, %c0_i32, %c0_i32_0 : i32, i32, i32
  }
}

module attributes {stable_mosaic.version = 11 : i64} {
  func.func @_dw3x3_res_kernel(%arg0: i32, %arg1: memref<1x6x48xf32, #tpu.memory_space<vmem>>, %arg2: memref<9x32xf32, #tpu.memory_space<vmem>>, %arg3: memref<1x32xf32, #tpu.memory_space<vmem>>, %arg4: memref<1x4x32xf32, #tpu.memory_space<vmem>>) attributes {dimension_semantics = [#tpu.dimension_semantics<parallel>], iteration_bounds = array<i64: 2>, scalar_prefetch = 0 : i64, scratch_operands = 0 : i64, tpu.core_type = #tpu.core_type<tc>, window_params = [{transform_indices = @transform_0, window_bounds = array<i64: 1, 6, 48>}, {pipeline_mode = #tpu.pipeline_mode<synchronous>, transform_indices = @transform_1, window_bounds = array<i64: 9, 32>}, {pipeline_mode = #tpu.pipeline_mode<synchronous>, transform_indices = @transform_2, window_bounds = array<i64: 1, 32>}, {transform_indices = @transform_3, window_bounds = array<i64: 1, 4, 32>}]} {
    %c0 = arith.constant 0 : index
    %c0_0 = arith.constant 0 : index
    %c0_1 = arith.constant 0 : index
    %0 = vector.load %arg1[%c0, %c0_0, %c0_1] : memref<1x6x48xf32, #tpu.memory_space<vmem>>, vector<1x6x48xf32>
    %1 = vector.shape_cast %0 : vector<1x6x48xf32> to vector<6x48xf32>
    %c0_2 = arith.constant 0 : index
    %c0_3 = arith.constant 0 : index
    %2 = vector.load %arg2[%c0_2, %c0_3] : memref<9x32xf32, #tpu.memory_space<vmem>>, vector<9x32xf32>
    %cst = arith.constant 0.000000e+00 : f32
    %3 = vector.broadcast %cst : f32 to vector<4x32xf32>
    %4 = vector.extract_strided_slice %1 {offsets = [0, 0], sizes = [4, 32], strides = [1, 1]} : vector<6x48xf32> to vector<4x32xf32>
    %5 = vector.extract_strided_slice %2 {offsets = [0, 0], sizes = [1, 32], strides = [1, 1]} : vector<9x32xf32> to vector<1x32xf32>
    %6 = vector.broadcast %5 : vector<1x32xf32> to vector<4x32xf32>
    %7 = arith.mulf %4, %6 : vector<4x32xf32>
    %8 = arith.addf %3, %7 : vector<4x32xf32>
    %9 = vector.extract_strided_slice %1 {offsets = [0, 8], sizes = [4, 32], strides = [1, 1]} : vector<6x48xf32> to vector<4x32xf32>
    %10 = vector.extract_strided_slice %2 {offsets = [1, 0], sizes = [1, 32], strides = [1, 1]} : vector<9x32xf32> to vector<1x32xf32>
    %11 = vector.broadcast %10 : vector<1x32xf32> to vector<4x32xf32>
    %12 = arith.mulf %9, %11 : vector<4x32xf32>
    %13 = arith.addf %8, %12 : vector<4x32xf32>
    %14 = vector.extract_strided_slice %1 {offsets = [0, 16], sizes = [4, 32], strides = [1, 1]} : vector<6x48xf32> to vector<4x32xf32>
    %15 = vector.extract_strided_slice %2 {offsets = [2, 0], sizes = [1, 32], strides = [1, 1]} : vector<9x32xf32> to vector<1x32xf32>
    %16 = vector.broadcast %15 : vector<1x32xf32> to vector<4x32xf32>
    %17 = arith.mulf %14, %16 : vector<4x32xf32>
    %18 = arith.addf %13, %17 : vector<4x32xf32>
    %19 = vector.extract_strided_slice %1 {offsets = [1, 0], sizes = [4, 32], strides = [1, 1]} : vector<6x48xf32> to vector<4x32xf32>
    %20 = vector.extract_strided_slice %2 {offsets = [3, 0], sizes = [1, 32], strides = [1, 1]} : vector<9x32xf32> to vector<1x32xf32>
    %21 = vector.broadcast %20 : vector<1x32xf32> to vector<4x32xf32>
    %22 = arith.mulf %19, %21 : vector<4x32xf32>
    %23 = arith.addf %18, %22 : vector<4x32xf32>
    %24 = vector.extract_strided_slice %1 {offsets = [1, 8], sizes = [4, 32], strides = [1, 1]} : vector<6x48xf32> to vector<4x32xf32>
    %25 = vector.extract_strided_slice %2 {offsets = [4, 0], sizes = [1, 32], strides = [1, 1]} : vector<9x32xf32> to vector<1x32xf32>
    %26 = vector.broadcast %25 : vector<1x32xf32> to vector<4x32xf32>
    %27 = arith.mulf %24, %26 : vector<4x32xf32>
    %28 = arith.addf %23, %27 : vector<4x32xf32>
    %29 = vector.extract_strided_slice %1 {offsets = [1, 16], sizes = [4, 32], strides = [1, 1]} : vector<6x48xf32> to vector<4x32xf32>
    %30 = vector.extract_strided_slice %2 {offsets = [5, 0], sizes = [1, 32], strides = [1, 1]} : vector<9x32xf32> to vector<1x32xf32>
    %31 = vector.broadcast %30 : vector<1x32xf32> to vector<4x32xf32>
    %32 = arith.mulf %29, %31 : vector<4x32xf32>
    %33 = arith.addf %28, %32 : vector<4x32xf32>
    %34 = vector.extract_strided_slice %1 {offsets = [2, 0], sizes = [4, 32], strides = [1, 1]} : vector<6x48xf32> to vector<4x32xf32>
    %35 = vector.extract_strided_slice %2 {offsets = [6, 0], sizes = [1, 32], strides = [1, 1]} : vector<9x32xf32> to vector<1x32xf32>
    %36 = vector.broadcast %35 : vector<1x32xf32> to vector<4x32xf32>
    %37 = arith.mulf %34, %36 : vector<4x32xf32>
    %38 = arith.addf %33, %37 : vector<4x32xf32>
    %39 = vector.extract_strided_slice %1 {offsets = [2, 8], sizes = [4, 32], strides = [1, 1]} : vector<6x48xf32> to vector<4x32xf32>
    %40 = vector.extract_strided_slice %2 {offsets = [7, 0], sizes = [1, 32], strides = [1, 1]} : vector<9x32xf32> to vector<1x32xf32>
    %41 = vector.broadcast %40 : vector<1x32xf32> to vector<4x32xf32>
    %42 = arith.mulf %39, %41 : vector<4x32xf32>
    %43 = arith.addf %38, %42 : vector<4x32xf32>
    %44 = vector.extract_strided_slice %1 {offsets = [2, 16], sizes = [4, 32], strides = [1, 1]} : vector<6x48xf32> to vector<4x32xf32>
    %45 = vector.extract_strided_slice %2 {offsets = [8, 0], sizes = [1, 32], strides = [1, 1]} : vector<9x32xf32> to vector<1x32xf32>
    %46 = vector.broadcast %45 : vector<1x32xf32> to vector<4x32xf32>
    %47 = arith.mulf %44, %46 : vector<4x32xf32>
    %48 = arith.addf %43, %47 : vector<4x32xf32>
    %49 = vector.extract_strided_slice %1 {offsets = [1, 8], sizes = [4, 32], strides = [1, 1]} : vector<6x48xf32> to vector<4x32xf32>
    %50 = arith.addf %49, %48 : vector<4x32xf32>
    %c0_4 = arith.constant 0 : index
    %c0_5 = arith.constant 0 : index
    %51 = vector.load %arg3[%c0_4, %c0_5] : memref<1x32xf32, #tpu.memory_space<vmem>>, vector<1x32xf32>
    %52 = vector.broadcast %51 : vector<1x32xf32> to vector<4x32xf32>
    %53 = arith.addf %50, %52 : vector<4x32xf32>
    %c0_6 = arith.constant 0 : index
    %c0_7 = arith.constant 0 : index
    %c0_8 = arith.constant 0 : index
    %54 = vector.load %arg4[%c0_6, %c0_7, %c0_8] : memref<1x4x32xf32, #tpu.memory_space<vmem>>, vector<1x4x32xf32>
    %55 = vector.shape_cast %54 : vector<1x4x32xf32> to vector<4x32xf32>
    %56 = vector.shape_cast %53 : vector<4x32xf32> to vector<1x4x32xf32>
    tpu.vector_store %arg4[%c0_6, %c0_7, %c0_8], %56 {strides = array<i32>} : memref<1x4x32xf32, #tpu.memory_space<vmem>>, vector<1x4x32xf32>,
    return
  }
  func.func @transform_0(%arg0: i32) -> (i32, i32, i32) {
    %c0_i32 = arith.constant 0 : i32
    %c0_i32_0 = arith.constant 0 : i32
    %c0_i32_1 = arith.constant 0 : i32
    return %arg0, %c0_i32, %c0_i32_0 : i32, i32, i32
  }
  func.func @transform_1(%arg0: i32) -> (i32, i32) {
    %c0_i32 = arith.constant 0 : i32
    %c0_i32_0 = arith.constant 0 : i32
    %c0_i32_1 = arith.constant 0 : i32
    return %c0_i32, %c0_i32_0 : i32, i32
  }
  func.func @transform_2(%arg0: i32) -> (i32, i32) {
    %c0_i32 = arith.constant 0 : i32
    %c0_i32_0 = arith.constant 0 : i32
    %c0_i32_1 = arith.constant 0 : i32
    return %c0_i32, %c0_i32_0 : i32, i32
  }
  func.func @transform_3(%arg0: i32) -> (i32, i32, i32) {
    %c0_i32 = arith.constant 0 : i32
    %c0_i32_0 = arith.constant 0 : i32
    %c0_i32_1 = arith.constant 0 : i32
    return %arg0, %c0_i32, %c0_i32_0 : i32, i32, i32
  }
}

module attributes {stable_mosaic.version = 11 : i64} {
  func.func @_proj_kernel(%arg0: i32, %arg1: memref<1x16x64xf32, #tpu.memory_space<vmem>>, %arg2: memref<16x32xbf16, #tpu.memory_space<vmem>>, %arg3: memref<1x32xf32, #tpu.memory_space<vmem>>, %arg4: memref<1x64x32xf32, #tpu.memory_space<vmem>>) attributes {dimension_semantics = [#tpu.dimension_semantics<parallel>], iteration_bounds = array<i64: 2>, scalar_prefetch = 0 : i64, scratch_operands = 0 : i64, tpu.core_type = #tpu.core_type<tc>, window_params = [{transform_indices = @transform_0, window_bounds = array<i64: 1, 16, 64>}, {pipeline_mode = #tpu.pipeline_mode<synchronous>, transform_indices = @transform_1, window_bounds = array<i64: 16, 32>}, {pipeline_mode = #tpu.pipeline_mode<synchronous>, transform_indices = @transform_2, window_bounds = array<i64: 1, 32>}, {transform_indices = @transform_3, window_bounds = array<i64: 1, 64, 32>}]} {
    %c0 = arith.constant 0 : index
    %c0_0 = arith.constant 0 : index
    %c0_1 = arith.constant 0 : index
    %0 = vector.load %arg1[%c0, %c0_0, %c0_1] : memref<1x16x64xf32, #tpu.memory_space<vmem>>, vector<1x16x64xf32>
    %1 = vector.shape_cast %0 : vector<1x16x64xf32> to vector<16x64xf32>
    %2 = arith.truncf %1 : vector<16x64xf32> to vector<16x64xbf16>
    %c0_2 = arith.constant 0 : index
    %c0_3 = arith.constant 0 : index
    %3 = vector.load %arg2[%c0_2, %c0_3] : memref<16x32xbf16, #tpu.memory_space<vmem>>, vector<16x32xbf16>
    %cst = arith.constant dense<0.000000e+00> : vector<64x32xf32>
    %4 = tpu.matmul %2, %3, %cst {dimension_numbers = #tpu.dot_dimension_numbers<[0], [0], [1], [1], [0, 1, 1, 1], [], []>} : vector<16x64xbf16>, vector<16x32xbf16>, vector<64x32xf32> -> vector<64x32xf32>
    %c0_4 = arith.constant 0 : index
    %c0_5 = arith.constant 0 : index
    %5 = vector.load %arg3[%c0_4, %c0_5] : memref<1x32xf32, #tpu.memory_space<vmem>>, vector<1x32xf32>
    %6 = vector.broadcast %5 : vector<1x32xf32> to vector<64x32xf32>
    %7 = arith.addf %4, %6 : vector<64x32xf32>
    %c0_6 = arith.constant 0 : index
    %c0_7 = arith.constant 0 : index
    %c0_8 = arith.constant 0 : index
    %8 = vector.load %arg4[%c0_6, %c0_7, %c0_8] : memref<1x64x32xf32, #tpu.memory_space<vmem>>, vector<1x64x32xf32>
    %9 = vector.shape_cast %8 : vector<1x64x32xf32> to vector<64x32xf32>
    %10 = vector.shape_cast %7 : vector<64x32xf32> to vector<1x64x32xf32>
    tpu.vector_store %arg4[%c0_6, %c0_7, %c0_8], %10 {strides = array<i32>} : memref<1x64x32xf32, #tpu.memory_space<vmem>>, vector<1x64x32xf32>,
    return
  }
  func.func @transform_0(%arg0: i32) -> (i32, i32, i32) {
    %c0_i32 = arith.constant 0 : i32
    %c0_i32_0 = arith.constant 0 : i32
    %c0_i32_1 = arith.constant 0 : i32
    return %arg0, %c0_i32, %c0_i32_0 : i32, i32, i32
  }
  func.func @transform_1(%arg0: i32) -> (i32, i32) {
    %c0_i32 = arith.constant 0 : i32
    %c0_i32_0 = arith.constant 0 : i32
    %c0_i32_1 = arith.constant 0 : i32
    return %c0_i32, %c0_i32_0 : i32, i32
  }
  func.func @transform_2(%arg0: i32) -> (i32, i32) {
    %c0_i32 = arith.constant 0 : i32
    %c0_i32_0 = arith.constant 0 : i32
    %c0_i32_1 = arith.constant 0 : i32
    return %c0_i32, %c0_i32_0 : i32, i32
  }
  func.func @transform_3(%arg0: i32) -> (i32, i32, i32) {
    %c0_i32 = arith.constant 0 : i32
    %c0_i32_0 = arith.constant 0 : i32
    %c0_i32_1 = arith.constant 0 : i32
    return %arg0, %c0_i32, %c0_i32_0 : i32, i32, i32
  }
}

module attributes {stable_mosaic.version = 11 : i64} {
  func.func @_attn_kernel(%arg0: i32, %arg1: memref<1x64x32xf32, #tpu.memory_space<vmem>>, %arg2: memref<1x16x16xf32, #tpu.memory_space<vmem>>, %arg3: memref<1x16x8xf32, #tpu.memory_space<vmem>>, %arg4: memref<1x64x8xf32, #tpu.memory_space<vmem>>) attributes {dimension_semantics = [#tpu.dimension_semantics<parallel>], iteration_bounds = array<i64: 2>, scalar_prefetch = 0 : i64, scratch_operands = 0 : i64, tpu.core_type = #tpu.core_type<tc>, window_params = [{transform_indices = @transform_0, window_bounds = array<i64: 1, 64, 32>}, {transform_indices = @transform_1, window_bounds = array<i64: 1, 16, 16>}, {transform_indices = @transform_2, window_bounds = array<i64: 1, 16, 8>}, {transform_indices = @transform_3, window_bounds = array<i64: 1, 64, 8>}]} {
    %c0 = arith.constant 0 : index
    %c0_0 = arith.constant 0 : index
    %c0_1 = arith.constant 0 : index
    %0 = vector.load %arg1[%c0, %c0_0, %c0_1] : memref<1x64x32xf32, #tpu.memory_space<vmem>>, vector<1x64x8xf32>
    %1 = vector.shape_cast %0 : vector<1x64x8xf32> to vector<64x8xf32>
    %c0_2 = arith.constant 0 : index
    %c0_3 = arith.constant 0 : index
    %c0_4 = arith.constant 0 : index
    %2 = vector.load %arg2[%c0_2, %c0_3, %c0_4] : memref<1x16x16xf32, #tpu.memory_space<vmem>>, vector<1x16x8xf32>
    %3 = vector.shape_cast %2 : vector<1x16x8xf32> to vector<16x8xf32>
    %c0_5 = arith.constant 0 : index
    %c0_6 = arith.constant 0 : index
    %c0_7 = arith.constant 0 : index
    %4 = vector.load %arg3[%c0_5, %c0_6, %c0_7] : memref<1x16x8xf32, #tpu.memory_space<vmem>>, vector<1x16x8xf32>
    %5 = vector.shape_cast %4 : vector<1x16x8xf32> to vector<16x8xf32>
    %6 = vector.extract_strided_slice %1 {offsets = [0, 0], sizes = [64, 2], strides = [1, 1]} : vector<64x8xf32> to vector<64x2xf32>
    %7 = arith.truncf %6 : vector<64x2xf32> to vector<64x2xbf16>
    %8 = vector.extract_strided_slice %3 {offsets = [0, 0], sizes = [16, 2], strides = [1, 1]} : vector<16x8xf32> to vector<16x2xf32>
    %9 = arith.truncf %8 : vector<16x2xf32> to vector<16x2xbf16>
    %10 = vector.extract_strided_slice %5 {offsets = [0, 0], sizes = [16, 2], strides = [1, 1]} : vector<16x8xf32> to vector<16x2xf32>
    %11 = arith.truncf %10 : vector<16x2xf32> to vector<16x2xbf16>
    %cst = arith.constant dense<0.000000e+00> : vector<64x16xf32>
    %12 = tpu.matmul %7, %9, %cst {dimension_numbers = #tpu.dot_dimension_numbers<[1], [1], [0], [0], [0, 0, 1, 0], [], []>} : vector<64x2xbf16>, vector<16x2xbf16>, vector<64x16xf32> -> vector<64x16xf32>
    %cst_8 = arith.constant 2.500000e-01 : f32
    %13 = vector.broadcast %cst_8 : f32 to vector<64x16xf32>
    %14 = arith.mulf %12, %13 : vector<64x16xf32>
    %cst_9 = arith.constant dense<0xFF800000> : vector<64xf32>
    %15 = vector.multi_reduction <maximumf>, %14, %cst_9 [1] : vector<64x16xf32> to vector<64xf32>
    %16 = vector.shape_cast %15 : vector<64xf32> to vector<64x1xf32>
    %17 = vector.broadcast %16 : vector<64x1xf32> to vector<64x16xf32>
    %18 = arith.subf %14, %17 : vector<64x16xf32>
    %19 = math.exp %18 : vector<64x16xf32>
    %cst_10 = arith.constant dense<0.000000e+00> : vector<64xf32>
    %20 = vector.multi_reduction <add>, %19, %cst_10 [1] : vector<64x16xf32> to vector<64xf32>
    %21 = vector.shape_cast %20 : vector<64xf32> to vector<64x1xf32>
    %22 = tpu.reciprocal %21 {approx = true} : vector<64x1xf32> -> vector<64x1xf32>
    %23 = vector.broadcast %22 : vector<64x1xf32> to vector<64x16xf32>
    %24 = arith.mulf %19, %23 : vector<64x16xf32>
    %25 = arith.truncf %24 : vector<64x16xf32> to vector<64x16xbf16>
    %cst_11 = arith.constant dense<0.000000e+00> : vector<64x2xf32>
    %26 = tpu.matmul %25, %11, %cst_11 {dimension_numbers = #tpu.dot_dimension_numbers<[1], [0], [0], [1], [0, 0, 1, 1], [], []>} : vector<64x16xbf16>, vector<16x2xbf16>, vector<64x2xf32> -> vector<64x2xf32>
    %27 = vector.extract_strided_slice %1 {offsets = [0, 2], sizes = [64, 2], strides = [1, 1]} : vector<64x8xf32> to vector<64x2xf32>
    %28 = arith.truncf %27 : vector<64x2xf32> to vector<64x2xbf16>
    %29 = vector.extract_strided_slice %3 {offsets = [0, 2], sizes = [16, 2], strides = [1, 1]} : vector<16x8xf32> to vector<16x2xf32>
    %30 = arith.truncf %29 : vector<16x2xf32> to vector<16x2xbf16>
    %31 = vector.extract_strided_slice %5 {offsets = [0, 2], sizes = [16, 2], strides = [1, 1]} : vector<16x8xf32> to vector<16x2xf32>
    %32 = arith.truncf %31 : vector<16x2xf32> to vector<16x2xbf16>
    %cst_12 = arith.constant dense<0.000000e+00> : vector<64x16xf32>
    %33 = tpu.matmul %28, %30, %cst_12 {dimension_numbers = #tpu.dot_dimension_numbers<[1], [1], [0], [0], [0, 0, 1, 0], [], []>} : vector<64x2xbf16>, vector<16x2xbf16>, vector<64x16xf32> -> vector<64x16xf32>
    %cst_13 = arith.constant 2.500000e-01 : f32
    %34 = vector.broadcast %cst_13 : f32 to vector<64x16xf32>
    %35 = arith.mulf %33, %34 : vector<64x16xf32>
    %cst_14 = arith.constant dense<0xFF800000> : vector<64xf32>
    %36 = vector.multi_reduction <maximumf>, %35, %cst_14 [1] : vector<64x16xf32> to vector<64xf32>
    %37 = vector.shape_cast %36 : vector<64xf32> to vector<64x1xf32>
    %38 = vector.broadcast %37 : vector<64x1xf32> to vector<64x16xf32>
    %39 = arith.subf %35, %38 : vector<64x16xf32>
    %40 = math.exp %39 : vector<64x16xf32>
    %cst_15 = arith.constant dense<0.000000e+00> : vector<64xf32>
    %41 = vector.multi_reduction <add>, %40, %cst_15 [1] : vector<64x16xf32> to vector<64xf32>
    %42 = vector.shape_cast %41 : vector<64xf32> to vector<64x1xf32>
    %43 = tpu.reciprocal %42 {approx = true} : vector<64x1xf32> -> vector<64x1xf32>
    %44 = vector.broadcast %43 : vector<64x1xf32> to vector<64x16xf32>
    %45 = arith.mulf %40, %44 : vector<64x16xf32>
    %46 = arith.truncf %45 : vector<64x16xf32> to vector<64x16xbf16>
    %cst_16 = arith.constant dense<0.000000e+00> : vector<64x2xf32>
    %47 = tpu.matmul %46, %32, %cst_16 {dimension_numbers = #tpu.dot_dimension_numbers<[1], [0], [0], [1], [0, 0, 1, 1], [], []>} : vector<64x16xbf16>, vector<16x2xbf16>, vector<64x2xf32> -> vector<64x2xf32>
    %48 = vector.extract_strided_slice %1 {offsets = [0, 4], sizes = [64, 2], strides = [1, 1]} : vector<64x8xf32> to vector<64x2xf32>
    %49 = arith.truncf %48 : vector<64x2xf32> to vector<64x2xbf16>
    %50 = vector.extract_strided_slice %3 {offsets = [0, 4], sizes = [16, 2], strides = [1, 1]} : vector<16x8xf32> to vector<16x2xf32>
    %51 = arith.truncf %50 : vector<16x2xf32> to vector<16x2xbf16>
    %52 = vector.extract_strided_slice %5 {offsets = [0, 4], sizes = [16, 2], strides = [1, 1]} : vector<16x8xf32> to vector<16x2xf32>
    %53 = arith.truncf %52 : vector<16x2xf32> to vector<16x2xbf16>
    %cst_17 = arith.constant dense<0.000000e+00> : vector<64x16xf32>
    %54 = tpu.matmul %49, %51, %cst_17 {dimension_numbers = #tpu.dot_dimension_numbers<[1], [1], [0], [0], [0, 0, 1, 0], [], []>} : vector<64x2xbf16>, vector<16x2xbf16>, vector<64x16xf32> -> vector<64x16xf32>
    %cst_18 = arith.constant 2.500000e-01 : f32
    %55 = vector.broadcast %cst_18 : f32 to vector<64x16xf32>
    %56 = arith.mulf %54, %55 : vector<64x16xf32>
    %cst_19 = arith.constant dense<0xFF800000> : vector<64xf32>
    %57 = vector.multi_reduction <maximumf>, %56, %cst_19 [1] : vector<64x16xf32> to vector<64xf32>
    %58 = vector.shape_cast %57 : vector<64xf32> to vector<64x1xf32>
    %59 = vector.broadcast %58 : vector<64x1xf32> to vector<64x16xf32>
    %60 = arith.subf %56, %59 : vector<64x16xf32>
    %61 = math.exp %60 : vector<64x16xf32>
    %cst_20 = arith.constant dense<0.000000e+00> : vector<64xf32>
    %62 = vector.multi_reduction <add>, %61, %cst_20 [1] : vector<64x16xf32> to vector<64xf32>
    %63 = vector.shape_cast %62 : vector<64xf32> to vector<64x1xf32>
    %64 = tpu.reciprocal %63 {approx = true} : vector<64x1xf32> -> vector<64x1xf32>
    %65 = vector.broadcast %64 : vector<64x1xf32> to vector<64x16xf32>
    %66 = arith.mulf %61, %65 : vector<64x16xf32>
    %67 = arith.truncf %66 : vector<64x16xf32> to vector<64x16xbf16>
    %cst_21 = arith.constant dense<0.000000e+00> : vector<64x2xf32>
    %68 = tpu.matmul %67, %53, %cst_21 {dimension_numbers = #tpu.dot_dimension_numbers<[1], [0], [0], [1], [0, 0, 1, 1], [], []>} : vector<64x16xbf16>, vector<16x2xbf16>, vector<64x2xf32> -> vector<64x2xf32>
    %69 = vector.extract_strided_slice %1 {offsets = [0, 6], sizes = [64, 2], strides = [1, 1]} : vector<64x8xf32> to vector<64x2xf32>
    %70 = arith.truncf %69 : vector<64x2xf32> to vector<64x2xbf16>
    %71 = vector.extract_strided_slice %3 {offsets = [0, 6], sizes = [16, 2], strides = [1, 1]} : vector<16x8xf32> to vector<16x2xf32>
    %72 = arith.truncf %71 : vector<16x2xf32> to vector<16x2xbf16>
    %73 = vector.extract_strided_slice %5 {offsets = [0, 6], sizes = [16, 2], strides = [1, 1]} : vector<16x8xf32> to vector<16x2xf32>
    %74 = arith.truncf %73 : vector<16x2xf32> to vector<16x2xbf16>
    %cst_22 = arith.constant dense<0.000000e+00> : vector<64x16xf32>
    %75 = tpu.matmul %70, %72, %cst_22 {dimension_numbers = #tpu.dot_dimension_numbers<[1], [1], [0], [0], [0, 0, 1, 0], [], []>} : vector<64x2xbf16>, vector<16x2xbf16>, vector<64x16xf32> -> vector<64x16xf32>
    %cst_23 = arith.constant 2.500000e-01 : f32
    %76 = vector.broadcast %cst_23 : f32 to vector<64x16xf32>
    %77 = arith.mulf %75, %76 : vector<64x16xf32>
    %cst_24 = arith.constant dense<0xFF800000> : vector<64xf32>
    %78 = vector.multi_reduction <maximumf>, %77, %cst_24 [1] : vector<64x16xf32> to vector<64xf32>
    %79 = vector.shape_cast %78 : vector<64xf32> to vector<64x1xf32>
    %80 = vector.broadcast %79 : vector<64x1xf32> to vector<64x16xf32>
    %81 = arith.subf %77, %80 : vector<64x16xf32>
    %82 = math.exp %81 : vector<64x16xf32>
    %cst_25 = arith.constant dense<0.000000e+00> : vector<64xf32>
    %83 = vector.multi_reduction <add>, %82, %cst_25 [1] : vector<64x16xf32> to vector<64xf32>
    %84 = vector.shape_cast %83 : vector<64xf32> to vector<64x1xf32>
    %85 = tpu.reciprocal %84 {approx = true} : vector<64x1xf32> -> vector<64x1xf32>
    %86 = vector.broadcast %85 : vector<64x1xf32> to vector<64x16xf32>
    %87 = arith.mulf %82, %86 : vector<64x16xf32>
    %88 = arith.truncf %87 : vector<64x16xf32> to vector<64x16xbf16>
    %cst_26 = arith.constant dense<0.000000e+00> : vector<64x2xf32>
    %89 = tpu.matmul %88, %74, %cst_26 {dimension_numbers = #tpu.dot_dimension_numbers<[1], [0], [0], [1], [0, 0, 1, 1], [], []>} : vector<64x16xbf16>, vector<16x2xbf16>, vector<64x2xf32> -> vector<64x2xf32>
    %90 = tpu.concatenate %26, %47, %68, %89 in 1 : vector<64x2xf32>, vector<64x2xf32>, vector<64x2xf32>, vector<64x2xf32> -> vector<64x8xf32>
    %c0_27 = arith.constant 0 : index
    %c0_28 = arith.constant 0 : index
    %c0_29 = arith.constant 0 : index
    %91 = vector.load %arg4[%c0_27, %c0_28, %c0_29] : memref<1x64x8xf32, #tpu.memory_space<vmem>>, vector<1x64x8xf32>
    %92 = vector.shape_cast %91 : vector<1x64x8xf32> to vector<64x8xf32>
    %93 = vector.shape_cast %90 : vector<64x8xf32> to vector<1x64x8xf32>
    tpu.vector_store %arg4[%c0_27, %c0_28, %c0_29], %93 {strides = array<i32>} : memref<1x64x8xf32, #tpu.memory_space<vmem>>, vector<1x64x8xf32>,
    return
  }
  func.func @transform_0(%arg0: i32) -> (i32, i32, i32) {
    %c0_i32 = arith.constant 0 : i32
    %c0_i32_0 = arith.constant 0 : i32
    %c0_i32_1 = arith.constant 0 : i32
    return %arg0, %c0_i32, %c0_i32_0 : i32, i32, i32
  }
  func.func @transform_1(%arg0: i32) -> (i32, i32, i32) {
    %c0_i32 = arith.constant 0 : i32
    %c0_i32_0 = arith.constant 0 : i32
    %c0_i32_1 = arith.constant 0 : i32
    return %arg0, %c0_i32, %c0_i32_0 : i32, i32, i32
  }
  func.func @transform_2(%arg0: i32) -> (i32, i32, i32) {
    %c0_i32 = arith.constant 0 : i32
    %c0_i32_0 = arith.constant 0 : i32
    %c0_i32_1 = arith.constant 0 : i32
    return %arg0, %c0_i32, %c0_i32_0 : i32, i32, i32
  }
  func.func @transform_3(%arg0: i32) -> (i32, i32, i32) {
    %c0_i32 = arith.constant 0 : i32
    %c0_i32_0 = arith.constant 0 : i32
    %c0_i32_1 = arith.constant 0 : i32
    return %arg0, %c0_i32, %c0_i32_0 : i32, i32, i32
  }
}

module attributes {stable_mosaic.version = 11 : i64} {
  func.func @_fuse_kernel(%arg0: i32, %arg1: memref<1x64x32xf32, #tpu.memory_space<vmem>>, %arg2: memref<1x64x32xf32, #tpu.memory_space<vmem>>, %arg3: memref<1x64x8xf32, #tpu.memory_space<vmem>>, %arg4: memref<1x64x8xf32, #tpu.memory_space<vmem>>, %arg5: memref<1x32x64xf32, #tpu.memory_space<vmem>>, %arg6: memref<32x32xbf16, #tpu.memory_space<vmem>>, %arg7: memref<32x1xf32, #tpu.memory_space<vmem>>, %arg8: memref<1x32x64xf32, #tpu.memory_space<vmem>>) attributes {dimension_semantics = [#tpu.dimension_semantics<parallel>], iteration_bounds = array<i64: 2>, scalar_prefetch = 0 : i64, scratch_operands = 0 : i64, tpu.core_type = #tpu.core_type<tc>, window_params = [{transform_indices = @transform_0, window_bounds = array<i64: 1, 64, 32>}, {transform_indices = @transform_1, window_bounds = array<i64: 1, 64, 32>}, {transform_indices = @transform_2, window_bounds = array<i64: 1, 64, 8>}, {transform_indices = @transform_3, window_bounds = array<i64: 1, 64, 8>}, {transform_indices = @transform_4, window_bounds = array<i64: 1, 32, 64>}, {pipeline_mode = #tpu.pipeline_mode<synchronous>, transform_indices = @transform_5, window_bounds = array<i64: 32, 32>}, {pipeline_mode = #tpu.pipeline_mode<synchronous>, transform_indices = @transform_6, window_bounds = array<i64: 32, 1>}, {transform_indices = @transform_7, window_bounds = array<i64: 1, 32, 64>}]} {
    %c0 = arith.constant 0 : index
    %c0_0 = arith.constant 0 : index
    %c16 = arith.constant 16 : index
    %0 = vector.load %arg1[%c0, %c0_0, %c16] : memref<1x64x32xf32, #tpu.memory_space<vmem>>, vector<1x64x16xf32>
    %1 = vector.shape_cast %0 : vector<1x64x16xf32> to vector<64x16xf32>
    %2 = arith.truncf %1 : vector<64x16xf32> to vector<64x16xbf16>
    %c0_1 = arith.constant 0 : index
    %c0_2 = arith.constant 0 : index
    %c0_3 = arith.constant 0 : index
    %3 = vector.load %arg2[%c0_1, %c0_2, %c0_3] : memref<1x64x32xf32, #tpu.memory_space<vmem>>, vector<1x64x16xf32>
    %4 = vector.shape_cast %3 : vector<1x64x16xf32> to vector<64x16xf32>
    %5 = arith.truncf %4 : vector<64x16xf32> to vector<64x16xbf16>
    %c0_4 = arith.constant 0 : index
    %c0_5 = arith.constant 0 : index
    %c16_6 = arith.constant 16 : index
    %6 = vector.load %arg2[%c0_4, %c0_5, %c16_6] : memref<1x64x32xf32, #tpu.memory_space<vmem>>, vector<1x64x16xf32>
    %7 = vector.shape_cast %6 : vector<1x64x16xf32> to vector<64x16xf32>
    %8 = arith.truncf %7 : vector<64x16xf32> to vector<64x16xbf16>
    %cst = arith.constant dense<0.000000e+00> : vector<16x16xf32>
    %9 = tpu.matmul %8, %2, %cst {dimension_numbers = #tpu.dot_dimension_numbers<[0], [0], [1], [1], [0, 1, 1, 1], [], []>} : vector<64x16xbf16>, vector<64x16xbf16>, vector<16x16xf32> -> vector<16x16xf32>
    %10 = arith.truncf %9 : vector<16x16xf32> to vector<16x16xbf16>
    %cst_7 = arith.constant dense<0.000000e+00> : vector<64x16xf32>
    %11 = tpu.matmul %5, %10, %cst_7 {dimension_numbers = #tpu.dot_dimension_numbers<[1], [0], [0], [1], [0, 0, 1, 1], [], []>} : vector<64x16xbf16>, vector<16x16xbf16>, vector<64x16xf32> -> vector<64x16xf32>
    %cst_8 = arith.constant 6.250000e-02 : f32
    %12 = vector.broadcast %cst_8 : f32 to vector<64x16xf32>
    %13 = arith.mulf %11, %12 : vector<64x16xf32>
    %c0_9 = arith.constant 0 : index
    %c0_10 = arith.constant 0 : index
    %c0_11 = arith.constant 0 : index
    %14 = vector.load %arg3[%c0_9, %c0_10, %c0_11] : memref<1x64x8xf32, #tpu.memory_space<vmem>>, vector<1x64x8xf32>
    %15 = vector.shape_cast %14 : vector<1x64x8xf32> to vector<64x8xf32>
    %c0_12 = arith.constant 0 : index
    %c0_13 = arith.constant 0 : index
    %c0_14 = arith.constant 0 : index
    %16 = vector.load %arg4[%c0_12, %c0_13, %c0_14] : memref<1x64x8xf32, #tpu.memory_space<vmem>>, vector<1x64x8xf32>
    %17 = vector.shape_cast %16 : vector<1x64x8xf32> to vector<64x8xf32>
    %18 = tpu.concatenate %15, %17, %13 in 1 : vector<64x8xf32>, vector<64x8xf32>, vector<64x16xf32> -> vector<64x32xf32>
    %19 = arith.truncf %18 : vector<64x32xf32> to vector<64x32xbf16>
    %c0_15 = arith.constant 0 : index
    %c0_16 = arith.constant 0 : index
    %20 = vector.load %arg6[%c0_15, %c0_16] : memref<32x32xbf16, #tpu.memory_space<vmem>>, vector<32x32xbf16>
    %cst_17 = arith.constant dense<0.000000e+00> : vector<32x64xf32>
    %21 = tpu.matmul %20, %19, %cst_17 {dimension_numbers = #tpu.dot_dimension_numbers<[1], [1], [0], [0], [0, 0, 1, 0], [], []>} : vector<32x32xbf16>, vector<64x32xbf16>, vector<32x64xf32> -> vector<32x64xf32>
    %c0_18 = arith.constant 0 : index
    %c0_19 = arith.constant 0 : index
    %22 = vector.load %arg7[%c0_18, %c0_19] : memref<32x1xf32, #tpu.memory_space<vmem>>, vector<32x1xf32>
    %23 = vector.broadcast %22 : vector<32x1xf32> to vector<32x64xf32>
    %24 = arith.addf %21, %23 : vector<32x64xf32>
    %c0_20 = arith.constant 0 : index
    %c0_21 = arith.constant 0 : index
    %c0_22 = arith.constant 0 : index
    %25 = vector.load %arg5[%c0_20, %c0_21, %c0_22] : memref<1x32x64xf32, #tpu.memory_space<vmem>>, vector<1x32x64xf32>
    %26 = vector.shape_cast %25 : vector<1x32x64xf32> to vector<32x64xf32>
    %27 = arith.addf %24, %26 : vector<32x64xf32>
    %c0_23 = arith.constant 0 : index
    %c0_24 = arith.constant 0 : index
    %c0_25 = arith.constant 0 : index
    %28 = vector.load %arg8[%c0_23, %c0_24, %c0_25] : memref<1x32x64xf32, #tpu.memory_space<vmem>>, vector<1x32x64xf32>
    %29 = vector.shape_cast %28 : vector<1x32x64xf32> to vector<32x64xf32>
    %30 = vector.shape_cast %27 : vector<32x64xf32> to vector<1x32x64xf32>
    tpu.vector_store %arg8[%c0_23, %c0_24, %c0_25], %30 {strides = array<i32>} : memref<1x32x64xf32, #tpu.memory_space<vmem>>, vector<1x32x64xf32>,
    return
  }
  func.func @transform_0(%arg0: i32) -> (i32, i32, i32) {
    %c0_i32 = arith.constant 0 : i32
    %c0_i32_0 = arith.constant 0 : i32
    %c0_i32_1 = arith.constant 0 : i32
    return %arg0, %c0_i32, %c0_i32_0 : i32, i32, i32
  }
  func.func @transform_1(%arg0: i32) -> (i32, i32, i32) {
    %c0_i32 = arith.constant 0 : i32
    %c0_i32_0 = arith.constant 0 : i32
    %c0_i32_1 = arith.constant 0 : i32
    return %arg0, %c0_i32, %c0_i32_0 : i32, i32, i32
  }
  func.func @transform_2(%arg0: i32) -> (i32, i32, i32) {
    %c0_i32 = arith.constant 0 : i32
    %c0_i32_0 = arith.constant 0 : i32
    %c0_i32_1 = arith.constant 0 : i32
    return %arg0, %c0_i32, %c0_i32_0 : i32, i32, i32
  }
  func.func @transform_3(%arg0: i32) -> (i32, i32, i32) {
    %c0_i32 = arith.constant 0 : i32
    %c0_i32_0 = arith.constant 0 : i32
    %c0_i32_1 = arith.constant 0 : i32
    return %arg0, %c0_i32, %c0_i32_0 : i32, i32, i32
  }
  func.func @transform_4(%arg0: i32) -> (i32, i32, i32) {
    %c0_i32 = arith.constant 0 : i32
    %c0_i32_0 = arith.constant 0 : i32
    %c0_i32_1 = arith.constant 0 : i32
    return %arg0, %c0_i32, %c0_i32_0 : i32, i32, i32
  }
  func.func @transform_5(%arg0: i32) -> (i32, i32) {
    %c0_i32 = arith.constant 0 : i32
    %c0_i32_0 = arith.constant 0 : i32
    %c0_i32_1 = arith.constant 0 : i32
    return %c0_i32, %c0_i32_0 : i32, i32
  }
  func.func @transform_6(%arg0: i32) -> (i32, i32) {
    %c0_i32 = arith.constant 0 : i32
    %c0_i32_0 = arith.constant 0 : i32
    %c0_i32_1 = arith.constant 0 : i32
    return %c0_i32, %c0_i32_0 : i32, i32
  }
  func.func @transform_7(%arg0: i32) -> (i32, i32, i32) {
    %c0_i32 = arith.constant 0 : i32
    %c0_i32_0 = arith.constant 0 : i32
    %c0_i32_1 = arith.constant 0 : i32
    return %arg0, %c0_i32, %c0_i32_0 : i32, i32, i32
  }
}

</mosaic_0001>

<bundles_post_ra>
// kernel: tile.27
= control target key start
LH: loop header
LB: loop body
LE: loop exit
PB: predicated region body
PF: predicated region fallthrough
CT: control target
= control target key end

     0   :  { %vm4_vm0 = vcmask 1047556   ;;  %s169_s14 = smov 48   ;;  %s170_s15 = smov 56   ;;  %vm6_vm1 = vcmask 64512   ;;  %vm21_vm2 = vcmask 523712   ;;  %vm38_vm3 = vcmask 458112   ;;  %s314_s0 = inlined_call_operand.vmem [shape: f32[9,8,8], index: 0, kind: input, shape index: {}]   ;;  %s315_s1 = inlined_call_operand.vmem [shape: f32[9,64], index: 1, kind: output, shape index: {}]  }
   0x1   :  { %v138_v0 = vld [vmem:[%s314_s0 + $0x6] ss:$8 sm:$0xf]   ;;  %v134_v3 = vld [vmem:[%s314_s0 + $0x7] ss:$8 sm:$0xf]  }
   0x2   :  { %v139_v1 = vld [vmem:[%s314_s0 + $0x6] ss:$8 sm:$0xf0]   ;;  %v135_v4 = vld [vmem:[%s314_s0 + $0x7] ss:$8 sm:$0xf0]  }
   0x3   :  { %v35_v2 = vsel %vm4_vm0, %v139_v1, %v138_v0  ;;  %v18_v5 = vsel %vm4_vm0, %v135_v4, %v134_v3  ;;  %v140_v6 = vld [vmem:[%s314_s0 + $0x46] sm:$0x1]   ;;  %v136_v7 = vld [vmem:[%s314_s0 + $0x47] sm:$0x1]   ;;  %v144_v10 = vld [vmem:[%s314_s0 + $0x45] sm:$0x1]  }
   0x4   :  { %36 = vrot.lane.b32.xlu1 %v35_v2, %s169_s14  ;;  %19 = vrot.lane.b32.xlu0 %v18_v5, %s170_s15  ;;  %v142_v8 = vld [vmem:[%s314_s0 + $0x5] ss:$8 sm:$0xf]   ;;  %v146_v12 = vld [vmem:[%s314_s0 + $0x4] ss:$8 sm:$0xf]  }
   0x5   :  { %v143_v9 = vld [vmem:[%s314_s0 + $0x5] ss:$8 sm:$0xf0]   ;;  %v147_v13 = vld [vmem:[%s314_s0 + $0x4] ss:$8 sm:$0xf0]  }
   0x6   :  { %v52_v11 = vsel %vm4_vm0, %v143_v9, %v142_v8  ;;  %s171_s30 = smov 40   ;;  %v148_v14 = vld [vmem:[%s314_s0 + $0x44] sm:$0x1]   ;;  %v2_v15 = vld [vmem:[%s314_s0] ss:$8 sm:$0xf]   ;;  %v69_v18 = vsel %vm4_vm0, %v147_v13, %v146_v12 }
   0x7   :  { %v3_v16 = vld [vmem:[%s314_s0] ss:$8 sm:$0xf0]   ;;  %v150_v20 = vld [vmem:[%s314_s0 + $0x3] ss:$8 sm:$0xf]  }
   0x8   :  { %42 = vrot.lane.b32.xlu1 %v140_v6, %s169_s14  ;;  %25 = vrot.lane.b32.xlu0 %v136_v7, %s170_s15  ;;  %v132_v17 = vld [vmem:[%s314_s0 + $0x40] sm:$0x1]   ;;  %v5_v19 = vsel %vm4_vm0, %v3_v16, %v2_v15  ;;  %v151_v21 = vld [vmem:[%s314_s0 + $0x3] ss:$8 sm:$0xf0]   ;;  %s172_s18 = smov 32  }
   0x9   :  { %133 = vst.msk [vmem:[%s315_s1 + $0x8] sm:$0x1] %vm6_vm1, %v132_v17   ;;  %7 = vst.msk [vmem:[%s315_s1] sm:$0xff] %vm6_vm1, %v5_v19   ;;  %v152_v22 = vld [vmem:[%s314_s0 + $0x43] sm:$0x1]   ;;  %v86_v23 = vsel %vm4_vm0, %v151_v21, %v150_v20  ;;  %s173_s25 = smov 24  }
   0xa   :  { %v154_v24 = vld [vmem:[%s314_s0 + $0x2] ss:$8 sm:$0xf]   ;;  %v158_v28 = vld [vmem:[%s314_s0 + $0x1] ss:$8 sm:$0xf]  }
   0xb   :  { %v155_v25 = vld [vmem:[%s314_s0 + $0x2] ss:$8 sm:$0xf0]   ;;  %v159_v29 = vld [vmem:[%s314_s0 + $0x1] ss:$8 sm:$0xf0]  }
   0xc   :  { %59 = vrot.lane.b32.xlu1 %v144_v10, %s171_s30  ;;  %53 = vrot.lane.b32.xlu0 %v52_v11, %s171_s30  ;;  %v156_v26 = vld [vmem:[%s314_s0 + $0x42] sm:$0x1]   ;;  %v103_v27 = vsel %vm4_vm0, %v155_v25, %v154_v24  ;;  %s174_s3 = smov 16   ;;  %v160_v30 = vld [vmem:[%s314_s0 + $0x41] sm:$0x1]   ;;  %v120_v31 = vsel %vm4_vm0, %v159_v29, %v158_v28  ;;  %s175_s0 = smov 8  }
   0xd   :  { %vm55_vm4 = vcmask 392512   ;;  %vm72_vm5 = vcmask 326912   ;;  %vm89_vm6 = vcmask 261312   ;;  %vm106_vm7 = vcmask 195712  }
   0xe   :  { %vm123_vm8 = vcmask 130112  }
  0x10   :  { %76 = vrot.lane.b32.xlu1 %v148_v14, %s172_s18  ;;  %70 = vrot.lane.b32.xlu0 %v69_v18, %s172_s18 }
  0x14   :  { %93 = vrot.lane.b32.xlu1 %v152_v22, %s173_s25  ;;  %87 = vrot.lane.b32.xlu0 %v86_v23, %s173_s25 }
  0x18   :  { %110 = vrot.lane.b32.xlu1 %v156_v26, %s174_s3  ;;  %104 = vrot.lane.b32.xlu0 %v103_v27, %s174_s3 }
  0x1c   :  { %127 = vrot.lane.b32.xlu1 %v160_v30, %s175_s0  ;;  %121 = vrot.lane.b32.xlu0 %v120_v31, %s175_s0 }
  0x76   :  { %v37_v32 = vpop.permute.xlu1 %36   ;;  %v20_v33 = vpop.permute.xlu0 %19  }
  0x77   :  { %22 = vst.msk [vmem:[%s315_s1] sm:$0xff] %vm21_vm2, %v20_v33  }
  0x78   :  { %39 = vst.msk [vmem:[%s315_s1] sm:$0xff] %vm38_vm3, %v37_v32  }
  0x7a   :  { %v43_v34 = vpop.permute.xlu1 %42   ;;  %v26_v35 = vpop.permute.xlu0 %25  }
  0x7b   :  { %137 = vst.msk [vmem:[%s315_s1 + $0x8] sm:$0x1] %vm21_vm2, %v26_v35  }
  0x7c   :  { %141 = vst.msk [vmem:[%s315_s1 + $0x8] sm:$0x1] %vm38_vm3, %v43_v34  }
  0x7e   :  { %v60_v36 = vpop.permute.xlu1 %59   ;;  %v54_v37 = vpop.permute.xlu0 %53  }
  0x7f   :  { %145 = vst.msk [vmem:[%s315_s1 + $0x8] sm:$0x1] %vm55_vm4, %v60_v36   ;;  %56 = vst.msk [vmem:[%s315_s1] sm:$0xff] %vm55_vm4, %v54_v37  }
  0x82   :  { %v77_v38 = vpop.permute.xlu1 %76   ;;  %v71_v39 = vpop.permute.xlu0 %70  }
  0x83   :  { %149 = vst.msk [vmem:[%s315_s1 + $0x8] sm:$0x1] %vm72_vm5, %v77_v38   ;;  %73 = vst.msk [vmem:[%s315_s1] sm:$0xff] %vm72_vm5, %v71_v39  }
  0x86   :  { %v94_v40 = vpop.permute.xlu1 %93   ;;  %v88_v41 = vpop.permute.xlu0 %87  }
  0x87   :  { %153 = vst.msk [vmem:[%s315_s1 + $0x8] sm:$0x1] %vm89_vm6, %v94_v40   ;;  %90 = vst.msk [vmem:[%s315_s1] sm:$0xff] %vm89_vm6, %v88_v41  }
  0x8a   :  { %v111_v42 = vpop.permute.xlu1 %110   ;;  %v105_v43 = vpop.permute.xlu0 %104  }
  0x8b   :  { %157 = vst.msk [vmem:[%s315_s1 + $0x8] sm:$0x1] %vm106_vm7, %v111_v42   ;;  %107 = vst.msk [vmem:[%s315_s1] sm:$0xff] %vm106_vm7, %v105_v43  }
  0x8e   :  { %v128_v44 = vpop.permute.xlu1 %127   ;;  %v122_v45 = vpop.permute.xlu0 %121  }
  0x8f   :  { %161 = vst.msk [vmem:[%s315_s1 + $0x8] sm:$0x1] %vm123_vm8, %v128_v44   ;;  %124 = vst.msk [vmem:[%s315_s1] sm:$0xff] %vm123_vm8, %v122_v45  }

// kernel: cnl_forward.9
= control target key start
LH: loop header
LB: loop body
LE: loop exit
PB: predicated region body
PF: predicated region fallthrough
CT: control target
= control target key end

     0   :  { %s439_s12 = smov 0   ;;  %s481_s0 = inlined_call_operand.vmem [shape: f32[2,32,64], index: 0, kind: input, shape index: {}]   ;;  %s482_s1 = inlined_call_operand.vmem [shape: bf16[32,32], index: 1, kind: input, shape index: {}]   ;;  %s483_s2 = inlined_call_operand.vmem [shape: f32[1,32], index: 2, kind: input, shape index: {}]   ;;  %s484_s3 = inlined_call_operand.vmem [shape: f32[2,64,32], index: 3, kind: output, shape index: {}]  }
   0x1 LB: > { %s358_s13 = sadd.s32 4294967295, %s417_s12   ;;  %p362_p0 = scmp.ge.s32.totalorder %s417_s12, 1  ;;  %s417_s12 = sphi %s439_s12, %s13_s12  }
   0x2   : > { %p137_p1 = scmp.lt.s32.totalorder %s417_s12, 3 }
   0x4   : > { %p138_p2 = pnand %p362_p0, %p137_p1 }
   0x5   : > { %p161_p3 = scmp.lt.s32.totalorder (!%p138_p2), %s358_s13, 1  ;;  %v409_v0 = vld [vmem:[%s482_s1] sm:$0xff] (!%p138_p2)   ;;  %v410_v1 = vld [vmem:[%s482_s1 + $0x8] sm:$0xff] (!%p138_p2)   ;;  %vm217_vm0 = vcmask (!%p138_p2), 261120  }
   0x6   : > { %141 = sbr.rel (%p138_p2) target bundleno = 352 (0x160), region = 32  ;;  %384 = vmatprep.subr.bf16.mxu0 (!%p138_p2), %v409_v0  ;;  %396 = vmatprep.subr.bf16.mxu1 (!%p138_p2), %v409_v0  ;;  %v367_v12 = vld [vmem:[%s483_s2] ss:$0 sm:$0xff] (!%p138_p2) }
   0x7   : > { %385 = vmatpush3.bf16.msra.mxu0 (!%p138_p2), %v409_v0  ;;  %398 = vmatpush3.bf16.msra.mxu1 (!%p138_p2), %v409_v0 }
   0x8   : > { %386 = vmatprep.subr.bf16.mxu0 (!%p138_p2), %v410_v1  ;;  %397 = vmatprep.subr.bf16.mxu1 (!%p138_p2), %v410_v1 }
   0xb   : > { %387 = vmatpush3.bf16.msra.mxu0 (!%p138_p2), %v410_v1  ;;  %399 = vmatpush3.bf16.msra.mxu1 (!%p138_p2), %v410_v1 }
   0xd   : > { %s486_s13 = smov (!%p161_p3, %s358_s13), 1 }
   0xe   : > { %s376_s18 = sshll.u32 %s486_s13, 5  ;;  %s377_s22 = sshll.u32 %s486_s13, 6 }
   0xf   : > { %s165_s21 = scalar_lea.vmem %s481_s0, %s376_s18  ;;  %s170_s27 = scalar_lea.vmem %s484_s3, %s377_s22 }
  0x10   : > { %v172_v2 = vld [vmem:[%s165_s21] sm:$0xff]  ;;  %v173_v3 = vld [vmem:[%s165_s21 + $0x8] sm:$0xff]  ;;  %v174_v4 = vld [vmem:[%s165_s21 + $0x10] sm:$0xff] }
  0x11   : > { %v176_v5 = vpack.c.bf16 %v173_v3, %v172_v2  ;;  %v175_v6 = vld [vmem:[%s165_s21 + $0x18] sm:$0xff] }
  0x12   : > { %v177_v7 = vpack.c.bf16 %v175_v6, %v174_v4 }
  0x13   : > { %189 = vxpose.xlu0.c.b16.start [1/2] (short) (narrow) %v176_v5, 64 }
  0x17   : > { %190 = vxpose.xlu0.c.b16.end [2/2] (short) (narrow) %v177_v7, 64 }
  0x79   : > { %v197_v8 = vpop.trf.xlu0 }
  0x7a   : > { %388 = vmatprep.mubr.msk.bf16.mxu0 %vm217_vm0, %v197_v8 }
  0x7d   : > { %v198_v9 = vpop.trf.xlu0 }
  0x7e   : > { %389 = vmatmul.mubr.msk.bf16.vlgmr.msra.gmra.mrb[0].mxu0 %vm217_vm0, %v198_v9 }
  0x81   : > { %v199_v10 = vpop.trf.xlu0 }
  0x82   : > { %392 = vmatprep.mubr.msk.bf16.mxu1 %vm217_vm0, %v199_v10 }
  0x85   : > { %v200_v11 = vpop.trf.xlu0 }
  0x86   : > { %393 = vmatmul.mubr.msk.bf16.vlgmr.msra.gmra.mrb[0].mxu1 %vm217_vm0, %v200_v11 }
 0x151   : > { %v390_v13 = vpop.f32.mrb[0].mxu0 }
 0x152   : > { %v273_v14 = vadd.f32 %v390_v13, %v367_v12  ;;  %v264_v15 = vpop.f32.mrb[1].mxu0 }
 0x153   : > { %v265_v16 = vadd.f32 %v367_v12, %v264_v15  ;;  %v391_v17 = vpop.f32.mrb[2].mxu0 }
 0x154   : > { %297 = vst.msk [vmem:[%s170_s27 + $0x10] sm:$0xff] %vm217_vm0, %v273_v14  ;;  %v276_v18 = vadd.f32 %v391_v17, %v367_v12  ;;  %v267_v19 = vpop.f32.mrb[3].mxu0 }
 0x155   : > { %295 = vst.msk [vmem:[%s170_s27] sm:$0xff] %vm217_vm0, %v265_v16  ;;  %v268_v20 = vadd.f32 %v367_v12, %v267_v19 }
 0x156   : > { %298 = vst.msk [vmem:[%s170_s27 + $0x18] sm:$0xff] %vm217_vm0, %v276_v18 }
 0x157   : > { %296 = vst.msk [vmem:[%s170_s27 + $0x8] sm:$0xff] %vm217_vm0, %v268_v20 }
 0x159   : > { %v394_v21 = vpop.f32.mrb[0].mxu1 }
 0x15a   : > { %v289_v22 = vadd.f32 %v394_v21, %v367_v12  ;;  %v280_v23 = vpop.f32.mrb[1].mxu1 }
 0x15b   : > { %v281_v24 = vadd.f32 %v367_v12, %v280_v23  ;;  %v395_v25 = vpop.f32.mrb[2].mxu1 }
 0x15c   : > { %301 = vst.msk [vmem:[%s170_s27 + $0x30] sm:$0xff] %vm217_vm0, %v289_v22  ;;  %v292_v26 = vadd.f32 %v395_v25, %v367_v12  ;;  %v283_v27 = vpop.f32.mrb[3].mxu1 }
 0x15d   : > { %299 = vst.msk [vmem:[%s170_s27 + $0x20] sm:$0xff] %vm217_vm0, %v281_v24  ;;  %v284_v28 = vadd.f32 %v367_v12, %v283_v27 }
 0x15e   : > { %302 = vst.msk [vmem:[%s170_s27 + $0x38] sm:$0xff] %vm217_vm0, %v292_v26 }
 0x15f   : > { %300 = vst.msk [vmem:[%s170_s27 + $0x28] sm:$0xff] %vm217_vm0, %v284_v28 }
 0x160 PF: > { %s13_s12 = sadd.s32 1, %s417_s12  }
 0x161   : > { %p10_p4 = scmp.ge.s32.totalorder %s13_s12, 4  }
 0x163   :  { %12 = sbr.rel (!%p10_p4) target bundleno = 1 (0x1), region = 62 }

// kernel: cnl_forward.12
= control target key start
LH: loop header
LB: loop body
LE: loop exit
PB: predicated region body
PF: predicated region fallthrough
CT: control target
= control target key end

     0   :  { %s874_s24 = smov 0   ;;  %s985_s0 = inlined_call_operand.vmem [shape: f32[2,16,64], index: 0, kind: input, shape index: {}]   ;;  %s986_s1 = inlined_call_operand.vmem [shape: bf16[16,16], index: 1, kind: input, shape index: {}]   ;;  %s987_s2 = inlined_call_operand.vmem [shape: f32[1,16], index: 2, kind: input, shape index: {}]   ;;  %s988_s3 = inlined_call_operand.vmem [shape: f32[1,16], index: 3, kind: input, shape index: {}]   ;;  %s989_s4 = inlined_call_operand.vmem [shape: f32[1,16], index: 4, kind: input, shape index: {}]   ;;  %s990_s5 = inlined_call_operand.vmem [shape: bf16[16,16], index: 5, kind: input, shape index: {}]   ;;  %s991_s6 = inlined_call_operand.vmem [shape: f32[1,16], index: 6, kind: input, shape index: {}]   ;;  %s992_s7 = inlined_call_operand.vmem [shape: f32[2,64,16], index: 7, kind: output, shape index: {}]  }
   0x1 LB: > { %s726_s25 = sadd.s32 4294967295, %s832_s24   ;;  %p730_p0 = scmp.ge.s32.totalorder %s832_s24, 1  ;;  %s832_s24 = sphi %s874_s24, %s17_s24  }
   0x2   : > { %p237_p1 = scmp.lt.s32.totalorder %s832_s24, 3 }
   0x4   : > { %p238_p2 = pnand %p730_p0, %p237_p1 }
   0x5   : > { %p269_p3 = scmp.lt.s32.totalorder (!%p238_p2), %s726_s25, 1  ;;  %v792_v0 = vld [vmem:[%s986_s1] sm:$0xff] (!%p238_p2)   ;;  %vm314_vm0 = vcmask (!%p238_p2), 130048  }
   0x6   : > { %241 = sbr.rel (%p238_p2) target bundleno = 915 (0x393), region = 48  ;;  %763 = vmatprep.subr.bf16.mxu0 (!%p238_p2), %v792_v0  ;;  %v735_v8 = vld [vmem:[%s987_s2] ss:$0 sm:$0xff] (!%p238_p2) }
   0x7   : > { %764 = vmatpush3.bf16.msra.mxu0 (!%p238_p2), %v792_v0 }
   0xd   : > { %s994_s25 = smov (!%p269_p3, %s726_s25), 1 }
   0xe   : > { %s751_s28 = sshll.u32 %s994_s25, 4  ;;  %s752_s17 = sshll.u32 %s994_s25, 6 }
   0xf   : > { %s273_s8 = scalar_lea.vmem %s985_s0, %s751_s28  ;;  %s278_s22 = scalar_lea.vmem %s992_s7, %s752_s17 }
  0x10   : > { %v280_v1 = vld [vmem:[%s273_s8] sm:$0xff]  ;;  %v281_v2 = vld [vmem:[%s273_s8 + $0x8] sm:$0xff] }
  0x11   : > { %v282_v3 = vpack.c.bf16 %v281_v2, %v280_v1 }
  0x13   : > { %292 = vxpose.xlu0.c.b16.start.end [1/1] (short) (narrow) %v282_v3, 64 }
  0x79   : > { %v300_v4 = vpop.trf.xlu0 }
  0x7a   : > { %765 = vmatprep.mubr.msk.bf16.mxu0 %vm314_vm0, %v300_v4 }
  0x7d   : > { %v301_v5 = vpop.trf.xlu0 }
  0x7e   : > { %766 = vmatmul.mubr.msk.bf16.vlgmr.msra.gmra.mrb[0].mxu0 %vm314_vm0, %v301_v5 }
  0x81   : > { %v302_v6 = vpop.trf.xlu0 }
  0x82   : > { %769 = vmatprep.mubr.msk.bf16.mxu0 %vm314_vm0, %v302_v6 }
  0x85   : > { %v303_v7 = vpop.trf.xlu0 }
  0x86   : > { %770 = vmatmul.mubr.msk.bf16.gmra.mrb[4].mxu0 %vm314_vm0, %v303_v7 }
 0x151   : > { %v767_v9 = vpop.f32.mrb[0].mxu0 }
 0x152   : > { %v370_v10 = vadd.f32 %v767_v9, %v735_v8  ;;  %v361_v11 = vpop.f32.mrb[1].mxu0  ;;  %v793_v9 = vld [vmem:[%s990_s5] sm:$0xff]  }
 0x153   : > { %v362_v12 = vadd.f32 %v735_v8, %v361_v11  ;;  %v768_v13 = vpop.f32.mrb[2].mxu0  ;;  %773 = vmatprep.subr.bf16.mxu1 %v793_v9 }
 0x154   : > { %v373_v14 = vadd.f32 %v768_v13, %v735_v8  ;;  %v364_v15 = vpop.f32.mrb[3].mxu0  ;;  %v398_v16 = vsel %vm314_vm0, %v370_v10, 0.0  ;;  %774 = vmatpush3.bf16.msra.mxu1 %v793_v9 }
 0x155   : > { %399 = vadd.xlane.f32.xlu1 %v398_v16  ;;  %v392_v17 = vsel %vm314_vm0, %v362_v12, 0.0  ;;  %v365_v18 = vadd.f32 %v735_v8, %v364_v15 }
 0x156   : > { %393 = vadd.xlane.f32.xlu0 %v392_v17  ;;  %v401_v19 = vsel %vm314_vm0, %v373_v14, 0.0 }
 0x157   : > { %v395_v24 = vsel %vm314_vm0, %v365_v18, 0.0 }
 0x159   : > { %402 = vadd.xlane.f32.xlu1 %v401_v19  ;;  %v771_v20 = vpop.f32.mrb[4].mxu0 }
 0x15a   : > { %v386_v21 = vadd.f32 %v771_v20, %v735_v8  ;;  %v377_v22 = vpop.f32.mrb[5].mxu0 }
 0x15b   : > { %v772_v23 = vpop.f32.mrb[6].mxu0  ;;  %v378_v27 = vadd.f32 %v735_v8, %v377_v22 }
 0x15c   : > { %v380_v25 = vpop.f32.mrb[7].mxu0  ;;  %v410_v26 = vsel %vm314_vm0, %v386_v21, 0.0  ;;  %v389_v30 = vadd.f32 %v772_v23, %v735_v8  ;;  %v741_v23 = vld [vmem:[%s988_s3] ss:$0 sm:$0xff] }
 0x15d   : > { %396 = vadd.xlane.f32.xlu1 %v395_v24  ;;  %v381_v28 = vadd.f32 %v735_v8, %v380_v25  ;;  %v404_v29 = vsel %vm314_vm0, %v378_v27, 0.0 }
 0x15e   : > { %v413_v32 = vsel %vm314_vm0, %v389_v30, 0.0 }
 0x15f   : > { %v407_v31 = vsel %vm314_vm0, %v381_v28, 0.0 }
 0x161   : > { %411 = vadd.xlane.f32.xlu1 %v410_v26 }
 0x165   : > { %405 = vadd.xlane.f32.xlu1 %v404_v29  ;;  %v742_v29 = vld [vmem:[%s989_s4] ss:$0 sm:$0xff] }
 0x169   : > { %408 = vadd.xlane.f32.xlu1 %v407_v31 }
 0x16d   : > { %414 = vadd.xlane.f32.xlu1 %v413_v32 }
 0x1e2   : > { %v400_v33 = vpop.xlane.xlu1 %399 }
 0x1e3   : > { %v419_v34 = vmul.f32 0.0625, %v400_v33  ;;  %v394_v35 = vpop.xlane.xlu0 %393 }
 0x1e4   : > { %v417_v36 = vmul.f32 0.0625, %v394_v35 }
 0x1e5   : > { %v906_v37 = vsub.f32 %v370_v10, %v419_v34 }
 0x1e6   : > { %v908_v38 = vsub.f32 %v362_v12, %v417_v36  ;;  %v403_v39 = vpop.xlane.xlu1 %402 }
 0x1e7   : > { %v420_v41 = vmul.f32 0.0625, %v403_v39  ;;  %v435_v44 = vmul.f32 %v906_v37, %v906_v37 }
 0x1e8   : > { %v433_v40 = vmul.f32 %v908_v38, %v908_v38 }
 0x1e9   : > { %v915_v46 = vsub.f32 %v373_v14, %v420_v41  ;;  %v447_v49 = vsel %vm314_vm0, %v435_v44, 0.0 }
 0x1ea   : > { %v397_v42 = vpop.xlane.xlu1 %396  ;;  %v441_v43 = vsel %vm314_vm0, %v433_v40, 0.0 }
 0x1eb   : > { %v418_v45 = vmul.f32 0.0625, %v397_v42  ;;  %442 = vadd.xlane.f32.xlu1 %v441_v43  ;;  %v436_v53 = vmul.f32 %v915_v46, %v915_v46 }
 0x1ed   : > { %v917_v47 = vsub.f32 %v365_v18, %v418_v45  ;;  %v450_v58 = vsel %vm314_vm0, %v436_v53, 0.0 }
 0x1ee   : > { %v412_v48 = vpop.xlane.xlu1 %411 }
 0x1ef   : > { %448 = vadd.xlane.f32.xlu1 %v447_v49  ;;  %v434_v50 = vmul.f32 %v917_v47, %v917_v47  ;;  %v423_v51 = vmul.f32 0.0625, %v412_v48 }
 0x1f1   : > { %v444_v52 = vsel %vm314_vm0, %v434_v50, 0.0  ;;  %v925_v56 = vsub.f32 %v386_v21, %v423_v51 }
 0x1f2   : > { %445 = vadd.xlane.f32.xlu0 %v444_v52  ;;  %v406_v54 = vpop.xlane.xlu1 %405 }
 0x1f3   : > { %v421_v55 = vmul.f32 0.0625, %v406_v54  ;;  %v439_v0 = vmul.f32 %v925_v56, %v925_v56 }
 0x1f5   : > { %v927_v57 = vsub.f32 %v378_v27, %v421_v55  ;;  %v459_v6 = vsel %vm314_vm0, %v439_v0, 0.0 }
 0x1f6   : > { %451 = vadd.xlane.f32.xlu0 %v450_v58  ;;  %v409_v59 = vpop.xlane.xlu1 %408 }
 0x1f7   : > { %v422_v60 = vmul.f32 0.0625, %v409_v59  ;;  %v437_v61 = vmul.f32 %v927_v57, %v927_v57 }
 0x1f9   : > { %v932_v62 = vsub.f32 %v381_v28, %v422_v60  ;;  %v453_v63 = vsel %vm314_vm0, %v437_v61, 0.0 }
 0x1fa   : > { %v415_v1 = vpop.xlane.xlu1 %414  ;;  %454 = vadd.xlane.f32.xlu1 %v453_v63 }
 0x1fb   : > { %v424_v2 = vmul.f32 0.0625, %v415_v1  ;;  %v438_v3 = vmul.f32 %v932_v62, %v932_v62 }
 0x1fd   : > { %v939_v4 = vsub.f32 %v389_v30, %v424_v2  ;;  %v456_v5 = vsel %vm314_vm0, %v438_v3, 0.0 }
 0x1fe   : > { %457 = vadd.xlane.f32.xlu0 %v456_v5  ;;  %460 = vadd.xlane.f32.xlu1 %v459_v6 }
 0x1ff   : > { %v440_v7 = vmul.f32 %v939_v4, %v939_v4 }
 0x201   : > { %v462_v8 = vsel %vm314_vm0, %v440_v7, 0.0 }
 0x202   : > { %463 = vadd.xlane.f32.xlu0 %v462_v8 }
 0x278   : > { %v443_v10 = vpop.xlane.xlu1 %442 }
 0x279   : > { %v465_v11 = vmul.f32 0.0625, %v443_v10 }
 0x27b   : > { %v473_v12 = vadd.f32 1e-05, %v465_v11 }
 0x27c   : > { %v449_v13 = vpop.xlane.xlu1 %448 }
 0x27d   : > { %794 = vrsqrt.f32 %v473_v12  ;;  %v467_v14 = vmul.f32 0.0625, %v449_v13 }
 0x27f   : > { %v475_v15 = vadd.f32 1e-05, %v467_v14  ;;  %v446_v16 = vpop.xlane.xlu0 %445 }
 0x280   : > { %v466_v17 = vmul.f32 0.0625, %v446_v16 }
 0x281   : > { %796 = vrsqrt.f32 %v475_v15 }
 0x282   : > { %v474_v18 = vadd.f32 1e-05, %v466_v17 }
 0x283   : > { %v452_v19 = vpop.xlane.xlu0 %451 }
 0x284   : > { %798 = vrsqrt.f32 %v474_v18  ;;  %v468_v20 = vmul.f32 0.0625, %v452_v19 }
 0x286   : > { %v476_v21 = vadd.f32 1e-05, %v468_v20 }
 0x287   : > { %v795_v22 = vpop.eup %794  ;;  %v455_v24 = vpop.xlane.xlu1 %454 }
 0x288   : > { %800 = vrsqrt.f32 %v476_v21  ;;  %v469_v25 = vmul.f32 0.0625, %v455_v24  ;;  %v489_v26 = vmul.f32 %v795_v22, %v908_v38 }
 0x28a   : > { %v477_v27 = vadd.f32 1e-05, %v469_v25  ;;  %v504_v28 = vmul.f32 %v741_v23, %v489_v26 }
 0x28b   : > { %v797_v30 = vpop.eup %796  ;;  %v461_v31 = vpop.xlane.xlu1 %460 }
 0x28c   : > { %v458_v32 = vpop.xlane.xlu0 %457  ;;  %v491_v33 = vmul.f32 %v797_v30, %v906_v37  ;;  %802 = vrsqrt.f32 %v477_v27  ;;  %v471_v34 = vmul.f32 0.0625, %v461_v31  ;;  %v519_v36 = vadd.f32 %v742_v29, %v504_v28 }
 0x28d   : > { %v470_v35 = vmul.f32 0.0625, %v458_v32 }
 0x28e   : > { %v799_v39 = vpop.eup %798  ;;  %v506_v40 = vmul.f32 %v741_v23, %v491_v33  ;;  %v479_v41 = vadd.f32 1e-05, %v471_v34  ;;  %v535_v44 = vmul.f32 0.70710677, %v519_v36 }
 0x28f   : > { %v478_v42 = vadd.f32 1e-05, %v470_v35  ;;  %v490_v43 = vmul.f32 %v799_v39, %v917_v47 }
 0x290   : > { %v464_v38 = vpop.xlane.xlu0 %463  ;;  %804 = vrsqrt.f32 %v479_v41  ;;  %v521_v48 = vadd.f32 %v742_v29, %v506_v40 }
 0x291   : > { %v472_v45 = vmul.f32 0.0625, %v464_v38  ;;  %806 = vrsqrt.f32 %v478_v42  ;;  %v505_v49 = vmul.f32 %v741_v23, %v490_v43 }
 0x292   : > { %v801_v50 = vpop.eup %800  ;;  %v537_v37 = vmul.f32 0.70710677, %v521_v48  ;;  %808 = verf.f32 %v535_v44  ;;  %v529_v25 = vmul.f32 0.5, %v521_v48 }
 0x293   : > { %v480_v51 = vadd.f32 1e-05, %v472_v45  ;;  %v492_v52 = vmul.f32 %v801_v50, %v915_v46  ;;  %v520_v53 = vadd.f32 %v742_v29, %v505_v49 }
 0x295   : > { %810 = vrsqrt.f32 %v480_v51  ;;  %v507_v54 = vmul.f32 %v741_v23, %v492_v52  ;;  %v536_v55 = vmul.f32 0.70710677, %v520_v53  ;;  %v528_v16 = vmul.f32 0.5, %v520_v53  ;;  %v743_v51 = vld [vmem:[%s991_s6] ss:$0 sm:$0xff] }
 0x296   : > { %v803_v58 = vpop.eup %802  ;;  %812 = verf.f32 %v537_v37 }
 0x297   : > { %v493_v47 = vmul.f32 %v803_v58, %v927_v57  ;;  %814 = verf.f32 %v536_v55  ;;  %v522_v59 = vadd.f32 %v742_v29, %v507_v54 }
 0x299   : > { %v508_v60 = vmul.f32 %v741_v23, %v493_v47  ;;  %v538_v61 = vmul.f32 0.70710677, %v522_v59  ;;  %v530_v26 = vmul.f32 0.5, %v522_v59 }
 0x29a   : > { %v805_v63 = vpop.eup %804 }
 0x29b   : > { %v807_v0 = vpop.eup %806  ;;  %v495_v1 = vmul.f32 %v805_v63, %v925_v56  ;;  %816 = verf.f32 %v538_v61  ;;  %v523_v2 = vadd.f32 %v742_v29, %v508_v60  ;;  %v527_v56 = vmul.f32 0.5, %v519_v36 }
 0x29c   : > { %v494_v46 = vmul.f32 %v807_v0, %v932_v62  ;;  %v809_v3 = vpop.eup %808 }
 0x29d   : > { %v510_v5 = vmul.f32 %v741_v23, %v495_v1  ;;  %v539_v6 = vmul.f32 0.70710677, %v523_v2  ;;  %v551_v11 = vadd.f32 1.0, %v809_v3  ;;  %v531_v34 = vmul.f32 0.5, %v523_v2 }
 0x29e   : > { %v509_v8 = vmul.f32 %v741_v23, %v494_v46 }
 0x29f   : > { %v811_v7 = vpop.eup %810  ;;  %v525_v57 = vadd.f32 %v742_v29, %v510_v5  ;;  %818 = verf.f32 %v539_v6  ;;  %v559_v19 = vmul.f32 %v551_v11, %v527_v56 }
 0x2a0   : > { %v496_v9 = vmul.f32 %v811_v7, %v939_v4  ;;  %v813_v10 = vpop.eup %812  ;;  %v524_v12 = vadd.f32 %v742_v29, %v509_v8 }
 0x2a1   : > { %v815_v13 = vpop.eup %814  ;;  %v541_v15 = vmul.f32 0.70710677, %v525_v57  ;;  %v553_v21 = vadd.f32 1.0, %v813_v10  ;;  %v533_v38 = vmul.f32 0.5, %v525_v57 }
 0x2a2   : > { %v511_v14 = vmul.f32 %v741_v23, %v496_v9  ;;  %v552_v17 = vadd.f32 1.0, %v815_v13  ;;  %v540_v18 = vmul.f32 0.70710677, %v524_v12  ;;  %v532_v35 = vmul.f32 0.5, %v524_v12 }
 0x2a3   : > { %820 = verf.f32 %v541_v15  ;;  %v561_v23 = vmul.f32 %v553_v21, %v529_v25 }
 0x2a4   : > { %v526_v62 = vadd.f32 %v742_v29, %v511_v14  ;;  %v560_v20 = vmul.f32 %v552_v17, %v528_v16  ;;  %822 = verf.f32 %v540_v18 }
 0x2a5   : > { %v817_v22 = vpop.eup %816 }
 0x2a6   : > { %v542_v4 = vmul.f32 0.70710677, %v526_v62  ;;  %v567_v24 = vpack.c.bf16 %v560_v20, %v559_v19  ;;  %v554_v27 = vadd.f32 1.0, %v817_v22  ;;  %v534_v43 = vmul.f32 0.5, %v526_v62 }
 0x2a8   : > { %824 = verf.f32 %v542_v4  ;;  %775 = vmatprep.mubr.msk.bf16.mxu1 %vm314_vm0, %v567_v24  ;;  %v562_v28 = vmul.f32 %v554_v27, %v530_v26 }
 0x2a9   : > { %v819_v30 = vpop.eup %818 }
 0x2aa   : > { %v568_v31 = vpack.c.bf16 %v562_v28, %v561_v23  ;;  %v555_v32 = vadd.f32 1.0, %v819_v30 }
 0x2ac   : > { %776 = vmatmul.mubr.msk.bf16.vlgmr.msra.gmra.mrb[0].mxu1 %vm314_vm0, %v568_v31  ;;  %v563_v41 = vmul.f32 %v555_v32, %v531_v34 }
 0x2ad   : > { %v821_v29 = vpop.eup %820 }
 0x2ae   : > { %v823_v33 = vpop.eup %822  ;;  %v557_v39 = vadd.f32 1.0, %v821_v29 }
 0x2af   : > { %v556_v36 = vadd.f32 1.0, %v823_v33 }
 0x2b0   : > { %v565_v48 = vmul.f32 %v557_v39, %v533_v38 }
 0x2b1   : > { %v564_v42 = vmul.f32 %v556_v36, %v532_v35 }
 0x2b2   : > { %v825_v40 = vpop.eup %824 }
 0x2b3   : > { %v558_v44 = vadd.f32 1.0, %v825_v40  ;;  %v569_v45 = vpack.c.bf16 %v564_v42, %v563_v41 }
 0x2b5   : > { %v566_v49 = vmul.f32 %v558_v44, %v534_v43  ;;  %779 = vmatprep.mubr.msk.bf16.mxu1 %vm314_vm0, %v569_v45 }
 0x2b7   : > { %v570_v50 = vpack.c.bf16 %v566_v49, %v565_v48 }
 0x2b9   : > { %780 = vmatmul.mubr.msk.bf16.gmra.mrb[4].mxu1 %vm314_vm0, %v570_v50 }
 0x37f   : > { %v777_v37 = vpop.f32.mrb[0].mxu1 }
 0x380   : > { %v641_v52 = vadd.f32 %v777_v37, %v743_v51  ;;  %v632_v53 = vpop.f32.mrb[1].mxu1 }
 0x381   : > { %v633_v54 = vadd.f32 %v743_v51, %v632_v53  ;;  %v778_v55 = vpop.f32.mrb[2].mxu1 }
 0x382   : > { %665 = vst.msk [vmem:[%s278_s22 + $0x10] sm:$0xff] %vm314_vm0, %v641_v52  ;;  %v644_v58 = vadd.f32 %v778_v55, %v743_v51  ;;  %v635_v47 = vpop.f32.mrb[3].mxu1 }
 0x383   : > { %663 = vst.msk [vmem:[%s278_s22] sm:$0xff] %vm314_vm0, %v633_v54  ;;  %v636_v59 = vadd.f32 %v743_v51, %v635_v47 }
 0x384   : > { %666 = vst.msk [vmem:[%s278_s22 + $0x18] sm:$0xff] %vm314_vm0, %v644_v58 }
 0x385   : > { %664 = vst.msk [vmem:[%s278_s22 + $0x8] sm:$0xff] %vm314_vm0, %v636_v59 }
 0x38c   : > { %v781_v60 = vpop.f32.mrb[4].mxu1 }
 0x38d   : > { %v657_v61 = vadd.f32 %v781_v60, %v743_v51  ;;  %v648_v63 = vpop.f32.mrb[5].mxu1 }
 0x38e   : > { %v649_v0 = vadd.f32 %v743_v51, %v648_v63  ;;  %v782_v1 = vpop.f32.mrb[6].mxu1 }
 0x38f   : > { %669 = vst.msk [vmem:[%s278_s22 + $0x30] sm:$0xff] %vm314_vm0, %v657_v61  ;;  %v660_v2 = vadd.f32 %v782_v1, %v743_v51  ;;  %v651_v46 = vpop.f32.mrb[7].mxu1 }
 0x390   : > { %667 = vst.msk [vmem:[%s278_s22 + $0x20] sm:$0xff] %vm314_vm0, %v649_v0  ;;  %v652_v3 = vadd.f32 %v743_v51, %v651_v46 }
 0x391   : > { %670 = vst.msk [vmem:[%s278_s22 + $0x38] sm:$0xff] %vm314_vm0, %v660_v2 }
 0x392   : > { %668 = vst.msk [vmem:[%s278_s22 + $0x28] sm:$0xff] %vm314_vm0, %v652_v3 }
 0x393 PF: > { %s17_s24 = sadd.s32 1, %s832_s24  }
 0x394   : > { %p14_p4 = scmp.ge.s32.totalorder %s17_s24, 4  }
 0x396   :  { %16 = sbr.rel (!%p14_p4) target bundleno = 1 (0x1), region = 78 }

// kernel: cnl_forward.14
= control target key start
LH: loop header
LB: loop body
LE: loop exit
PB: predicated region body
PF: predicated region fallthrough
CT: control target
= control target key end

     0   :  { %s451_s12 = smov 0   ;;  %s538_s0 = inlined_call_operand.vmem [shape: f32[2,10,80], index: 0, kind: input, shape index: {}]   ;;  %s539_s1 = inlined_call_operand.vmem [shape: f32[9,64], index: 1, kind: input, shape index: {}]   ;;  %s540_s2 = inlined_call_operand.vmem [shape: f32[1,64], index: 2, kind: input, shape index: {}]   ;;  %s541_s3 = inlined_call_operand.vmem [shape: f32[2,8,64], index: 3, kind: output, shape index: {}]  }
   0x1 LB: > { %s394_s13 = sadd.s32 4294967295, %s425_s12   ;;  %p398_p0 = scmp.ge.s32.totalorder %s425_s12, 1  ;;  %s425_s12 = sphi %s451_s12, %s13_s12  }
   0x2   : > { %p137_p1 = scmp.lt.s32.totalorder %s425_s12, 3 }
   0x4   : > { %p138_p2 = pnand %p398_p0, %p137_p1 }
   0x5   : > { %v173_v0 = vlaneseq (!%p138_p2)  ;;  %v464_v2 = vld [vmem:[%s539_s1] sm:$0xff] (!%p138_p2)  ;;  %s427_s16 = smov (!%p138_p2), 8   ;;  %s428_s17 = smov (!%p138_p2), 16   ;;  %v402_v13 = vld [vmem:[%s539_s1 + $0x8] ss:$0 sm:$0xff] (!%p138_p2)  ;;  %vm215_vm0 = vcmask (!%p138_p2), 1046528  }
   0x6   : > { %141 = sbr.rel (%p138_p2) target bundleno = 501 (0x1f5), region = 32  ;;  %p160_p3 = scmp.lt.s32.totalorder (!%p138_p2), %s394_s13, 1  ;;  %vm267_vm1 = vcmask (!%p138_p2), 1045504   ;;  %v403_v44 = vld [vmem:[%s540_s2] ss:$0 sm:$0xff] (!%p138_p2)  ;;  %vm339_vm2 = vcmask (!%p138_p2), 516096  }
   0x7   : > { %v459_v1 = vshrl.u32 (!%p138_p2), %v173_v0, 7  ;;  %s429_s24 = smov (!%p138_p2), 120   ;;  %s430_s25 = smov (!%p138_p2), 112   ;;  %vm337_vm3 = vcmask (!%p138_p2), 523265  }
   0x9   : > { %v181_v3 = vsub.s32 (!%p138_p2), 1, %v459_v1  ;;  %v223_v4 = vsub.s32 (!%p138_p2), 4, %v459_v1  ;;  %v195_v5 = vsub.s32 (!%p138_p2), 2, %v459_v1  ;;  %v242_v6 = vsub.s32 (!%p138_p2), 5, %v459_v1 }
   0xa   : > { %v275_v11 = vsub.s32 (!%p138_p2), 7, %v459_v1  ;;  %v209_v45 = vsub.s32 (!%p138_p2), 3, %v459_v1  ;;  %v175_v46 = vsub.s32 (!%p138_p2), 0, %v459_v1  ;;  %v261_v48 = vsub.s32 (!%p138_p2), 6, %v459_v1 }
   0xb   : > { %v182_v7 = vrot.slane (!%p138_p2), %v464_v2, %v181_v3  ;;  %v224_v8 = vrot.slane (!%p138_p2), %v464_v2, %v223_v4  ;;  %v196_v9 = vrot.slane (!%p138_p2), %v464_v2, %v195_v5  ;;  %v243_v10 = vrot.slane (!%p138_p2), %v464_v2, %v242_v6 }
   0xc   : > { %v276_v12 = vrot.slane (!%p138_p2), %v464_v2, %v275_v11  ;;  %v210_v47 = vrot.slane (!%p138_p2), %v464_v2, %v209_v45  ;;  %v176_v49 = vrot.slane (!%p138_p2), %v464_v2, %v175_v46  ;;  %v262_v52 = vrot.slane (!%p138_p2), %v464_v2, %v261_v48 }
   0xd   : > { %184 = vrot.lane.b32.xlu0 %v182_v7, %s427_s16  ;;  %226 = vrot.lane.b32.xlu1 %v224_v8, %s427_s16  ;;  %s543_s13 = smov (!%p160_p3, %s394_s13), 1 }
   0xe   : > { %s406_s20 = sshll.u32 %s543_s13, 4  ;;  %s401_s28 = sshll.u32 %s543_s13, 3 }
   0xf   : > { %s164_s23 = scalar_lea.vmem %s538_s0, %s406_s20  ;;  %s168_s4 = scalar_lea.vmem %s541_s3, %s401_s28 }
  0x10   : > { %v488_v14 = vld [vmem:[%s164_s23] sm:$0xff]  ;;  %v490_v15 = vld [vmem:[%s164_s23 + $0x8] sm:$0x3] }
  0x11   : > { %198 = vrot.lane.b32.xlu0 %v196_v9, %s428_s17  ;;  %245 = vrot.lane.b32.xlu1 %v243_v10, %s428_s17  ;;  %v211_v50 = vmul.f32 %v210_v47, %v488_v14  ;;  %v212_v51 = vmul.f32 %v210_v47, %v490_v15  ;;  %v177_v53 = vmul.f32 %v176_v49, %v488_v14 }
  0x12   : > { %v263_v57 = vmul.f32 %v262_v52, %v488_v14  ;;  %v264_v58 = vmul.f32 %v262_v52, %v490_v15 }
  0x13   : > { %v216_v55 = vrot.slane %v211_v50, 1  ;;  %v217_v56 = vrot.slane %v212_v51, 1 }
  0x14   : > { %v268_v63 = vrot.slane %v263_v57, 2  ;;  %v269_v0 = vrot.slane %v264_v58, 2 }
  0x15   : > { %278 = vrot.lane.b32.xlu0 %v276_v12, %s427_s16  ;;  %297 = vrot.lane.b32.xlu1 %v402_v13, %s428_s17  ;;  %v218_v61 = vsel %vm215_vm0, %v216_v55, %v217_v56 }
  0x16   : > { %v270_v5 = vsel %vm267_vm1, %v268_v63, %v269_v0 }
  0x7f   : > { %v185_v16 = vpop.permute.xlu0 %184  ;;  %v227_v17 = vpop.permute.xlu1 %226 }
  0x80   : > { %v187_v18 = vmul.f32 %v185_v16, %v488_v14  ;;  %v229_v19 = vmul.f32 %v227_v17, %v488_v14  ;;  %v230_v20 = vmul.f32 %v227_v17, %v490_v15 }
  0x82   : > { %v233_v21 = vrot.slane %v229_v19, 1  ;;  %v234_v22 = vrot.slane %v230_v20, 1  ;;  %189 = vrot.lane.b32.xlu0 %v187_v18, %s429_s24 }
  0x83   : > { %v199_v23 = vpop.permute.xlu0 %198  ;;  %v246_v24 = vpop.permute.xlu1 %245 }
  0x84   : > { %v201_v25 = vmul.f32 %v199_v23, %v488_v14  ;;  %v248_v26 = vmul.f32 %v246_v24, %v488_v14  ;;  %v249_v27 = vmul.f32 %v246_v24, %v490_v15  ;;  %v235_v28 = vsel %vm215_vm0, %v233_v21, %v234_v22 }
  0x86   : > { %v252_v29 = vrot.slane %v248_v26, 1  ;;  %v253_v30 = vrot.slane %v249_v27, 1  ;;  %203 = vrot.lane.b32.xlu1 %v201_v25, %s430_s25  ;;  %236 = vrot.lane.b32.xlu0 %v235_v28, %s429_s24 }
  0x87   : > { %v279_v31 = vpop.permute.xlu0 %278  ;;  %v298_v32 = vpop.permute.xlu1 %297 }
  0x88   : > { %v281_v33 = vmul.f32 %v279_v31, %v488_v14  ;;  %v282_v34 = vmul.f32 %v279_v31, %v490_v15  ;;  %v300_v35 = vmul.f32 %v298_v32, %v488_v14  ;;  %v301_v36 = vmul.f32 %v298_v32, %v490_v15 }
  0x89   : > { %v254_v37 = vsel %vm215_vm0, %v252_v29, %v253_v30 }
  0x8a   : > { %v285_v38 = vrot.slane %v281_v33, 2  ;;  %v286_v39 = vrot.slane %v282_v34, 2  ;;  %v304_v40 = vrot.slane %v300_v35, 2  ;;  %v305_v41 = vrot.slane %v301_v36, 2  ;;  %255 = vrot.lane.b32.xlu1 %v254_v37, %s430_s25 }
  0x8c   : > { %v287_v42 = vsel %vm267_vm1, %v285_v38, %v286_v39  ;;  %v306_v43 = vsel %vm267_vm1, %v304_v40, %v305_v41 }
  0x8d   : > { %288 = vrot.lane.b32.xlu0 %v287_v42, %s429_s24 }
  0x8e   : > { %307 = vrot.lane.b32.xlu1 %v306_v43, %s430_s25 }
  0x92   : > { %324 = vrot.lane.b32.xlu1 %v403_v44, %s427_s16 }
  0xf4   : > { %v190_v54 = vpop.permute.xlu0 %189 }
  0xf5   : > { %v192_v59 = vadd.f32 %v190_v54, %v177_v53 }
  0xf8   : > { %v204_v60 = vpop.permute.xlu1 %203  ;;  %v237_v3 = vpop.permute.xlu0 %236 }
  0xf9   : > { %v206_v62 = vadd.f32 %v204_v60, %v192_v59 }
  0xfb   : > { %v220_v1 = vadd.f32 %v218_v61, %v206_v62 }
  0xfc   : > { %v256_v4 = vpop.permute.xlu1 %255 }
  0xfd   : > { %v239_v2 = vadd.f32 %v237_v3, %v220_v1 }
  0xff   : > { %v258_v6 = vadd.f32 %v256_v4, %v239_v2  ;;  %v289_v7 = vpop.permute.xlu0 %288 }
 0x100   : > { %v308_v9 = vpop.permute.xlu1 %307 }
 0x101   : > { %v272_v8 = vadd.f32 %v270_v5, %v258_v6 }
 0x103   : > { %v291_v10 = vadd.f32 %v289_v7, %v272_v8 }
 0x104   : > { %v325_v16 = vpop.permute.xlu1 %324 }
 0x105   : > { %v310_v11 = vadd.f32 %v308_v9, %v291_v10 }
 0x107   : > { %v312_v12 = vrot.slane %v310_v11, 7 }
 0x109   : > { %313 = vrot.lane.b32.xlu0 %v312_v12, %s427_s16 }
 0x17b   : > { %v314_v13 = vpop.permute.xlu0 %313 }
 0x17c   : > { %v316_v17 = vadd.f32 %v314_v13, %v488_v14  ;;  %v317_v18 = vadd.f32 %v314_v13, %v490_v15 }
 0x17e   : > { %v327_v19 = vadd.f32 %v325_v16, %v316_v17  ;;  %v328_v20 = vadd.f32 %v325_v16, %v317_v18 }
 0x180   : > { %333 = vrot.lane.b32.xlu1 %v328_v20, %s429_s24  ;;  %331 = vrot.lane.b32.xlu0 %v327_v19, %s429_s24 }
 0x1f2   : > { %v334_v21 = vpop.permute.xlu1 %333  ;;  %v332_v22 = vpop.permute.xlu0 %331 }
 0x1f3   : > { %340 = vst.msk [vmem:[%s168_s4 + $0x7] sm:$0x1] %vm339_vm2, %v334_v21 }
 0x1f4   : > { %338 = vst.msk [vmem:[%s168_s4 - $0x1] sm:$0xfe] %vm337_vm3, %v332_v22 }
 0x1f5 PF: > { %s13_s12 = sadd.s32 1, %s425_s12  }
 0x1f6   : > { %p10_p4 = scmp.ge.s32.totalorder %s13_s12, 4  }
 0x1f8   :  { %12 = sbr.rel (!%p10_p4) target bundleno = 1 (0x1), region = 62 }

// kernel: cnl_forward.16
= control target key start
LH: loop header
LB: loop body
LE: loop exit
PB: predicated region body
PF: predicated region fallthrough
CT: control target
= control target key end

     0   :  { %s2071_s12 = smov 0   ;;  %s2570_s0 = inlined_call_operand.vmem [shape: f32[2,64,32], index: 0, kind: input, shape index: {}]   ;;  %s2571_s1 = inlined_call_operand.vmem [shape: f32[2,64,16], index: 1, kind: input, shape index: {}]   ;;  %s2572_s2 = inlined_call_operand.vmem [shape: f32[2,64,8], index: 2, kind: input, shape index: {}]   ;;  %s2573_s3 = inlined_call_operand.vmem [shape: f32[2,64,8], index: 3, kind: output, shape index: {}]  }
   0x1 LB: > { %s1628_s13 = sadd.s32 4294967295, %s2039_s12   ;;  %p1632_p0 = scmp.ge.s32.totalorder %s2039_s12, 1  ;;  %s2039_s12 = sphi %s2071_s12, %s13_s12  }
   0x2   : > { %p157_p1 = scmp.lt.s32.totalorder %s2039_s12, 3 }
   0x4   : > { %p158_p2 = pnand %p1632_p0, %p157_p1 }
   0x5   : > { %p191_p3 = scmp.lt.s32.totalorder (!%p158_p2), %s1628_s13, 1  ;;  %s2041_s21 = smov (!%p158_p2), 120   ;;  %vm260_vm0 = vcmask (!%p158_p2), 15360   ;;  %vm358_vm1 = vcmask (!%p158_p2), 523264   ;;  %vm1531_vm2 = vcmask (!%p158_p2), 48128   ;;  %vm1522_vm3 = vcmask (!%p158_p2), 31744  }
   0x6   : > { %161 = sbr.rel (%p158_p2) target bundleno = 2831 (0xb0f), region = 32  ;;  %s2042_s25 = smov (!%p158_p2), 126   ;;  %vm1540_vm4 = vcmask (!%p158_p2), 64512  }
   0x7   : > { %s2043_s26 = smov (!%p158_p2), 118   ;;  %s2044_s27 = smov (!%p158_p2), 124  }
   0x8   : > { %s2045_s28 = smov (!%p158_p2), 116   ;;  %s2046_s29 = smov (!%p158_p2), 122  }
   0x9   : > { %s2047_s30 = smov (!%p158_p2), 114   ;;  %s2048_s4 = smov (!%p158_p2), 2  }
   0xa   : > { %s2049_s5 = smov (!%p158_p2), 4   ;;  %s2050_s6 = smov (!%p158_p2), 6  }
   0xd   : > { %s2575_s13 = smov (!%p191_p3, %s1628_s13), 1 }
   0xe   : > { %s2079_s14 = sshll.u32 %s2575_s13, 6 }
   0xf   : > { %s195_s17 = scalar_lea.vmem %s2570_s0, %s2079_s14  ;;  %s2089_s20 = scalar_lea.vmem %s2571_s1, %s2079_s14 }
  0x10   : > { %v212_v0 = vld [vmem:[%s195_s17] sm:$0xff]  ;;  %v213_v1 = vld [vmem:[%s195_s17 + $0x8] sm:$0xff]  ;;  %v214_v2 = vld [vmem:[%s195_s17 + $0x10] sm:$0xff]  ;;  %s2157_s24 = scalar_lea.vmem %s2572_s2, %s2079_s14  ;;  %s2519_s9 = scalar_lea.vmem %s2573_s3, %s2079_s14 }
  0x11   : > { %v2091_v3 = vpack.c.bf16 %v213_v1, %v212_v0  ;;  %v215_v4 = vld [vmem:[%s195_s17 + $0x18] sm:$0xff]  ;;  %v216_v5 = vld [vmem:[%s195_s17 + $0x20] sm:$0xff]  ;;  %v217_v6 = vld [vmem:[%s195_s17 + $0x28] sm:$0xff] }
  0x12   : > { %v2093_v7 = vpack.c.bf16 %v217_v6, %v216_v5  ;;  %v218_v8 = vld [vmem:[%s195_s17 + $0x30] sm:$0xff]  ;;  %v219_v9 = vld [vmem:[%s195_s17 + $0x38] sm:$0xff]  ;;  %v220_v10 = vld [vmem:[%s2089_s20] sm:$0xff]  ;;  %v2097_v11 = vpack.c.bf16 %v215_v4, %v214_v2 }
  0x13   : > { %252 = vrot.lane.b32.xlu0 %v2091_v3, %s2041_s21  ;;  %v221_v12 = vld [vmem:[%s2089_s20 + $0x8] sm:$0xff]  ;;  %v222_v13 = vld [vmem:[%s2089_s20 + $0x10] sm:$0xff]  ;;  %v223_v14 = vld [vmem:[%s2089_s20 + $0x18] sm:$0xff]  ;;  %v2103_v15 = vpack.c.bf16 %v219_v9, %v218_v8 }
  0x14   : > { %256 = vrot.lane.b32.xlu1 %v2093_v7, %s2041_s21  ;;  %v2105_v16 = vpack.c.bf16 %v221_v12, %v220_v10  ;;  %v2107_v17 = vpack.c.bf16 %v223_v14, %v222_v13  ;;  %v224_v19 = vld [vmem:[%s2089_s20 + $0x20] sm:$0xff]  ;;  %v225_v20 = vld [vmem:[%s2089_s20 + $0x28] sm:$0xff]  ;;  %v226_v23 = vld [vmem:[%s2089_s20 + $0x30] sm:$0xff] }
  0x15   : > { %v2121_v22 = vpack.c.bf16 %v225_v20, %v224_v19  ;;  %v227_v24 = vld [vmem:[%s2089_s20 + $0x38] sm:$0xff]  ;;  %v228_v56 = vld [vmem:[%s2157_s24] sm:$0xff]  ;;  %v229_v57 = vld [vmem:[%s2157_s24 + $0x8] sm:$0xff] }
  0x16   : > { %1871 = vmatprep.subr.msk.bf16.mxu0 %vm260_vm0, %v2105_v16  ;;  %v274_v18 = vsel %vm260_vm0, %v2105_v16, 0  ;;  %v277_v21 = vsel %vm260_vm0, %v2107_v17, 0  ;;  %v2129_v26 = vpack.c.bf16 %v227_v24, %v226_v23  ;;  %v230_v58 = vld [vmem:[%s2157_s24 + $0x10] sm:$0xff]  ;;  %v2162_v59 = vpack.c.bf16 %v229_v57, %v228_v56  ;;  %v231_v60 = vld [vmem:[%s2157_s24 + $0x18] sm:$0xff] }
  0x17   : > { %254 = vrot.lane.b32.xlu0 %v2097_v11, %s2041_s21  ;;  %1744 = vmatpush3.bf16.xpose.msra.mxu0 %v274_v18  ;;  %v280_v25 = vsel %vm260_vm0, %v2121_v22, 0  ;;  %v2165_v61 = vpack.c.bf16 %v231_v60, %v230_v58 }
  0x18   : > { %258 = vrot.lane.b32.xlu1 %v2103_v15, %s2041_s21  ;;  %1872 = vmatprep.subr.msk.bf16.mxu0 %vm260_vm0, %v2107_v17  ;;  %v283_v27 = vsel %vm260_vm0, %v2129_v26, 0 }
  0x19   : > { %1759 = vmatprep.subr.bf16.mxu1 %v2162_v59 }
  0x1a   : > { %1760 = vmatpush3.bf16.msra.mxu1 %v2162_v59 }
  0x1b   : > { %1761 = vmatprep.subr.bf16.mxu1 %v2165_v61 }
  0x1e   : > { %1762 = vmatpush3.bf16.msra.mxu1 %v2165_v61 }
  0x1f   : > { %1746 = vmatpush3.bf16.xpose.msra.mxu0 %v277_v21 }
  0x20   : > { %1873 = vmatprep.subr.msk.bf16.mxu0 %vm260_vm0, %v2121_v22 }
  0x27   : > { %1748 = vmatpush3.bf16.xpose.msra.mxu0 %v280_v25 }
  0x28   : > { %1874 = vmatprep.subr.msk.bf16.mxu0 %vm260_vm0, %v2129_v26 }
  0x2f   : > { %1750 = vmatpush3.bf16.xpose.msra.mxu0 %v283_v27 }
  0x85   : > { %v253_v28 = vpop.permute.xlu0 %252 }
  0x86   : > { %1751 = vmatprep.mubr.msk.bf16.mxu0 %vm260_vm0, %v253_v28  ;;  %v257_v30 = vpop.permute.xlu1 %256 }
  0x89   : > { %v255_v29 = vpop.permute.xlu0 %254 }
  0x8a   : > { %1752 = vmatmul.mubr.msk.bf16.vlgmr.msra.gmra.mrb[0].mxu0 %vm260_vm0, %v255_v29  ;;  %v259_v31 = vpop.permute.xlu1 %258 }
  0x8b   : > { %1755 = vmatprep.mubr.msk.bf16.mxu0 %vm260_vm0, %v257_v30 }
  0x92   : > { %1756 = vmatmul.mubr.msk.bf16.gmra.mrb[4].mxu0 %vm260_vm0, %v259_v31 }
 0x15d   : > { %v1753_v32 = vpop.f32.mrb[0].mxu0 }
 0x15e   : > { %v319_v33 = vpop.f32.mrb[1].mxu0  ;;  %v352_v37 = vmul.f32 0.25, %v1753_v32 }
 0x15f   : > { %v350_v34 = vmul.f32 0.25, %v319_v33  ;;  %v1754_v35 = vpop.f32.mrb[2].mxu0 }
 0x160   : > { %v322_v36 = vpop.f32.mrb[3].mxu0  ;;  %v353_v41 = vmul.f32 0.25, %v1754_v35  ;;  %v365_v43 = vsel %vm358_vm1, %v352_v37, -inf  ;;  %v232_v35 = vld [vmem:[%s2157_s24 + $0x20] sm:$0xff] }
 0x161   : > { %v351_v38 = vmul.f32 0.25, %v322_v36  ;;  %v359_v39 = vsel %vm358_vm1, %v350_v34, -inf  ;;  %v233_v36 = vld [vmem:[%s2157_s24 + $0x28] sm:$0xff] }
 0x162   : > { %360 = vmax.xlane.f32.xlu0 %v359_v39  ;;  %v368_v49 = vsel %vm358_vm1, %v353_v41, -inf  ;;  %v234_v39 = vld [vmem:[%s2157_s24 + $0x30] sm:$0xff] }
 0x163   : > { %v362_v40 = vsel %vm358_vm1, %v351_v38, -inf }
 0x164   : > { %363 = vmax.xlane.f32.xlu1 %v362_v40  ;;  %v235_v40 = vld [vmem:[%s2157_s24 + $0x38] sm:$0xff] }
 0x165   : > { %v1757_v42 = vpop.f32.mrb[4].mxu0 }
 0x166   : > { %366 = vmax.xlane.f32.xlu0 %v365_v43  ;;  %v335_v44 = vpop.f32.mrb[5].mxu0  ;;  %v2142_v45 = vmul.f32 0.25, %v1757_v42 }
 0x167   : > { %v2144_v46 = vmul.f32 0.25, %v335_v44  ;;  %v1758_v47 = vpop.f32.mrb[6].mxu0 }
 0x168   : > { %v338_v48 = vpop.f32.mrb[7].mxu0  ;;  %v357_v52 = vmul.f32 0.25, %v1758_v47  ;;  %v377_v53 = vsel %vm358_vm1, %v2142_v45, -inf }
 0x169   : > { %v371_v50 = vsel %vm358_vm1, %v2144_v46, -inf  ;;  %v355_v51 = vmul.f32 0.25, %v338_v48 }
 0x16a   : > { %369 = vmax.xlane.f32.xlu0 %v368_v49  ;;  %372 = vmax.xlane.f32.xlu1 %v371_v50  ;;  %v380_v55 = vsel %vm358_vm1, %v357_v52, -inf }
 0x16b   : > { %v374_v54 = vsel %vm358_vm1, %v355_v51, -inf }
 0x16e   : > { %378 = vmax.xlane.f32.xlu1 %v377_v53  ;;  %375 = vmax.xlane.f32.xlu0 %v374_v54 }
 0x172   : > { %381 = vmax.xlane.f32.xlu0 %v380_v55 }
 0x1ef   : > { %v361_v62 = vpop.xlane.xlu0 %360 }
 0x1f0   : > { %v383_v63 = vsub.f32 %v350_v34, %v361_v62 }
 0x1f1   : > { %v364_v0 = vpop.xlane.xlu1 %363 }
 0x1f2   : > { %v391_v4 = vmul.f32 1.442695, %v383_v63  ;;  %v384_v5 = vsub.f32 %v351_v38, %v364_v0  ;;  %v2197_v38 = vpack.c.bf16 %v233_v36, %v232_v35 }
 0x1f3   : > { %v367_v1 = vpop.xlane.xlu0 %366 }
 0x1f4   : > { %v385_v2 = vsub.f32 %v352_v37, %v367_v1  ;;  %v393_v10 = vmul.f32 1.442695, %v384_v5  ;;  %1763 = vmatprep.subr.bf16.mxu1 %v2197_v38 }
 0x1f5   : > { %1764 = vmatpush3.bf16.msra.mxu1 %v2197_v38 }
 0x1f6   : > { %v395_v6 = vmul.f32 1.442695, %v385_v2 }
 0x1f7   : > { %v370_v8 = vpop.xlane.xlu0 %369  ;;  %v373_v42 = vpop.xlane.xlu1 %372 }
 0x1f8   : > { %1905 = vpow2.f32 %v395_v6  ;;  %v386_v9 = vsub.f32 %v353_v41, %v370_v8  ;;  %v2203_v41 = vpack.c.bf16 %v235_v40, %v234_v39  ;;  %v387_v47 = vsub.f32 %v2144_v46, %v373_v42 }
 0x1f9   : > { %1907 = vpow2.f32 %v391_v4 }
 0x1fa   : > { %v397_v12 = vmul.f32 1.442695, %v386_v9  ;;  %1765 = vmatprep.subr.bf16.mxu1 %v2203_v41  ;;  %v399_v49 = vmul.f32 1.442695, %v387_v47 }
 0x1fb   : > { %v376_v13 = vpop.xlane.xlu0 %375  ;;  %1766 = vmatpush3.bf16.msra.mxu1 %v2203_v41  ;;  %v379_v43 = vpop.xlane.xlu1 %378 }
 0x1fc   : > { %1909 = vpow2.f32 %v397_v12  ;;  %v388_v14 = vsub.f32 %v355_v51, %v376_v13  ;;  %v389_v44 = vsub.f32 %v2142_v45, %v379_v43 }
 0x1fd   : > { %1911 = vpow2.f32 %v393_v10 }
 0x1fe   : > { %v401_v21 = vmul.f32 1.442695, %v388_v14  ;;  %v403_v48 = vmul.f32 1.442695, %v389_v44 }
 0x1ff   : > { %v382_v18 = vpop.xlane.xlu0 %381 }
 0x200   : > { %v390_v19 = vsub.f32 %v357_v52, %v382_v18 }
 0x202   : > { %v2171_v20 = vpop.eup %1905  ;;  %v405_v23 = vmul.f32 1.442695, %v390_v19 }
 0x203   : > { %v413_v24 = vsel %vm358_vm1, %v2171_v20, 0.0  ;;  %v2175_v25 = vpop.eup %1907 }
 0x204   : > { %1913 = vpow2.f32 %v405_v23  ;;  %414 = vadd.xlane.f32.xlu1 %v413_v24  ;;  %v407_v28 = vsel %vm358_vm1, %v2175_v25, 0.0 }
 0x205   : > { %1915 = vpow2.f32 %v401_v21 }
 0x206   : > { %v2177_v27 = vpop.eup %1909  ;;  %1917 = vpow2.f32 %v403_v48 }
 0x207   : > { %v416_v29 = vsel %vm358_vm1, %v2177_v27, 0.0  ;;  %v2183_v30 = vpop.eup %1911  ;;  %1919 = vpow2.f32 %v399_v49 }
 0x208   : > { %408 = vadd.xlane.f32.xlu1 %v407_v28  ;;  %417 = vadd.xlane.f32.xlu0 %v416_v29  ;;  %v410_v31 = vsel %vm358_vm1, %v2183_v30, 0.0 }
 0x20c   : > { %411 = vadd.xlane.f32.xlu0 %v410_v31 }
 0x20e   : > { %v2187_v32 = vpop.eup %1913 }
 0x20f   : > { %v428_v33 = vsel %vm358_vm1, %v2187_v32, 0.0  ;;  %v2191_v34 = vpop.eup %1915 }
 0x210   : > { %429 = vadd.xlane.f32.xlu0 %v428_v33  ;;  %v422_v37 = vsel %vm358_vm1, %v2191_v34, 0.0  ;;  %v1918_v50 = vpop.eup %1917 }
 0x211   : > { %v425_v51 = vsel %vm358_vm1, %v1918_v50, 0.0  ;;  %v1920_v52 = vpop.eup %1919 }
 0x212   : > { %v419_v45 = vsel %vm358_vm1, %v1920_v52, 0.0 }
 0x214   : > { %423 = vadd.xlane.f32.xlu0 %v422_v37 }
 0x219   : > { %540 = vrot.lane.b32.xlu1 %v2105_v16, %s2042_s25 }
 0x22a   : > { %542 = vrot.lane.b32.xlu0 %v2107_v17, %s2042_s25 }
 0x22e   : > { %528 = vrot.lane.b32.xlu0 %v2091_v3, %s2043_s26 }
 0x232   : > { %532 = vrot.lane.b32.xlu0 %v2093_v7, %s2043_s26 }
 0x23d   : > { %426 = vadd.xlane.f32.xlu1 %v425_v51 }
 0x241   : > { %420 = vadd.xlane.f32.xlu1 %v419_v45 }
 0x252   : > { %544 = vrot.lane.b32.xlu1 %v2121_v22, %s2042_s25 }
 0x256   : > { %546 = vrot.lane.b32.xlu1 %v2129_v26, %s2042_s25 }
 0x25a   : > { %530 = vrot.lane.b32.xlu1 %v2097_v11, %s2043_s26 }
 0x25e   : > { %534 = vrot.lane.b32.xlu1 %v2103_v15, %s2043_s26 }
 0x291   : > { %v415_v46 = vpop.xlane.xlu1 %414 }
 0x295   : > { %v409_v53 = vpop.xlane.xlu1 %408  ;;  %v418_v54 = vpop.xlane.xlu0 %417 }
 0x296   : > { %1921 = vrcp.f32 %v418_v54 }
 0x297   : > { %1923 = vrcp.f32 %v409_v53 }
 0x298   : > { %1925 = vrcp.f32 %v415_v46 }
 0x299   : > { %v541_v55 = vpop.permute.xlu1 %540  ;;  %v412_v56 = vpop.xlane.xlu0 %411 }
 0x29a   : > { %1927 = vrcp.f32 %v412_v56  ;;  %1875 = vmatprep.subr.msk.bf16.mxu1 %vm260_vm0, %v541_v55  ;;  %v561_v10 = vsel %vm260_vm0, %v541_v55, 0 }
 0x29d   : > { %v430_v57 = vpop.xlane.xlu0 %429 }
 0x2a0   : > { %v1922_v58 = vpop.eup %1921 }
 0x2a1   : > { %v1924_v60 = vpop.eup %1923  ;;  %v442_v0 = vmul.f32 %v1922_v58, %v2177_v27  ;;  %v424_v1 = vpop.xlane.xlu0 %423 }
 0x2a2   : > { %v1926_v62 = vpop.eup %1925  ;;  %v439_v2 = vmul.f32 %v1924_v60, %v2175_v25 }
 0x2a3   : > { %v441_v5 = vmul.f32 %v1926_v62, %v2171_v20 }
 0x2a4   : > { %v1928_v63 = vpop.eup %1927 }
 0x2a5   : > { %v440_v4 = vmul.f32 %v1928_v63, %v2183_v30  ;;  %v448_v8 = vpack.c.bf16 %v442_v0, %v441_v5  ;;  %v543_v9 = vpop.permute.xlu0 %542 }
 0x2a6   : > { %v564_v12 = vsel %vm260_vm0, %v543_v9, 0 }
 0x2a7   : > { %v447_v6 = vpack.c.bf16 %v440_v4, %v439_v2 }
 0x2a9   : > { %1767 = vmatprep.mubr.msk.bf16.mxu1 %vm358_vm1, %v447_v6  ;;  %v529_v36 = vpop.permute.xlu0 %528 }
 0x2aa   : > { %1768 = vmatmul.mubr.msk.bf16.vlgmr.msra.gmra.mrb[0].mxu1 %vm358_vm1, %v448_v8 }
 0x2ab   : > { %1776 = vmatpush3.bf16.xpose.msra.mxu1 %v561_v10 }
 0x2ac   : > { %1876 = vmatprep.subr.msk.bf16.mxu1 %vm260_vm0, %v543_v9 }
 0x2ad   : > { %v533_v39 = vpop.permute.xlu0 %532 }
 0x2b3   : > { %1778 = vmatpush3.bf16.xpose.msra.mxu1 %v564_v12 }
 0x2ca   : > { %v427_v13 = vpop.xlane.xlu1 %426 }
 0x2cb   : > { %1929 = vrcp.f32 %v427_v13 }
 0x2cc   : > { %1931 = vrcp.f32 %v424_v1 }
 0x2cd   : > { %1933 = vrcp.f32 %v430_v57 }
 0x2ce   : > { %v421_v14 = vpop.xlane.xlu1 %420 }
 0x2cf   : > { %1935 = vrcp.f32 %v421_v14 }
 0x2d2   : > { %v545_v18 = vpop.permute.xlu1 %544 }
 0x2d3   : > { %1877 = vmatprep.subr.msk.bf16.mxu1 %vm260_vm0, %v545_v18  ;;  %v567_v19 = vsel %vm260_vm0, %v545_v18, 0 }
 0x2d4   : > { %1780 = vmatpush3.bf16.xpose.msra.mxu1 %v567_v19 }
 0x2d5   : > { %v1930_v20 = vpop.eup %1929 }
 0x2d6   : > { %v547_v21 = vpop.permute.xlu1 %546  ;;  %v1932_v23 = vpop.eup %1931  ;;  %v445_v27 = vmul.f32 %v1930_v20, %v1918_v50 }
 0x2d7   : > { %1878 = vmatprep.subr.msk.bf16.mxu1 %vm260_vm0, %v547_v21  ;;  %v1934_v24 = vpop.eup %1933  ;;  %v570_v28 = vsel %vm260_vm0, %v547_v21, 0  ;;  %v444_v30 = vmul.f32 %v1932_v23, %v2191_v34 }
 0x2d8   : > { %v446_v31 = vmul.f32 %v1934_v24, %v2187_v32 }
 0x2d9   : > { %v1936_v25 = vpop.eup %1935 }
 0x2da   : > { %v443_v29 = vmul.f32 %v1936_v25, %v1920_v52  ;;  %v450_v35 = vpack.c.bf16 %v446_v31, %v445_v27  ;;  %v531_v37 = vpop.permute.xlu1 %530 }
 0x2dc   : > { %v449_v33 = vpack.c.bf16 %v444_v30, %v443_v29  ;;  %1782 = vmatpush3.bf16.xpose.msra.mxu1 %v570_v28 }
 0x2de   : > { %1771 = vmatprep.mubr.msk.bf16.mxu1 %vm358_vm1, %v449_v33  ;;  %v535_v40 = vpop.permute.xlu1 %534 }
 0x2df   : > { %1772 = vmatmul.mubr.msk.bf16.gmra.mrb[4].mxu1 %vm358_vm1, %v450_v35 }
 0x2e0   : > { %1783 = vmatprep.mubr.msk.bf16.mxu1 %vm260_vm0, %v529_v36 }
 0x2e7   : > { %1784 = vmatmul.mubr.msk.bf16.vlgmr.msra.gmra.mrb[8].mxu1 %vm260_vm0, %v531_v37 }
 0x2e8   : > { %1787 = vmatprep.mubr.msk.bf16.mxu1 %vm260_vm0, %v533_v39 }
 0x2ef   : > { %1788 = vmatmul.mubr.msk.bf16.gmra.mrb[12].mxu1 %vm260_vm0, %v535_v40 }
 0x37d   : > { %v2245_v32 = vpop.f32.mrb[0].mxu1 }
 0x37e   : > { %v2247_v34 = vpop.f32.mrb[1].mxu1 }
 0x37f   : > { %v2249_v42 = vpop.f32.mrb[2].mxu1 }
 0x380   : > { %v2251_v43 = vpop.f32.mrb[3].mxu1 }
 0x3b2   : > { %v2253_v44 = vpop.f32.mrb[4].mxu1 }
 0x3b3   : > { %v2255_v47 = vpop.f32.mrb[5].mxu1 }
 0x3b4   : > { %v2257_v48 = vpop.f32.mrb[6].mxu1 }
 0x3b5   : > { %v2259_v49 = vpop.f32.mrb[7].mxu1 }
 0x3ba   : > { %v1785_v50 = vpop.f32.mrb[8].mxu1 }
 0x3bb   : > { %v639_v51 = vmul.f32 0.25, %v1785_v50  ;;  %v606_v52 = vpop.f32.mrb[9].mxu1 }
 0x3bc   : > { %v1786_v45 = vpop.f32.mrb[10].mxu1  ;;  %v637_v46 = vmul.f32 0.25, %v606_v52 }
 0x3bd   : > { %v609_v53 = vpop.f32.mrb[11].mxu1  ;;  %v651_v54 = vsel %vm358_vm1, %v639_v51, -inf  ;;  %v640_v57 = vmul.f32 0.25, %v1786_v45 }
 0x3be   : > { %v638_v55 = vmul.f32 0.25, %v609_v53  ;;  %652 = vmax.xlane.f32.xlu0 %v651_v54  ;;  %v645_v58 = vsel %vm358_vm1, %v637_v46, -inf }
 0x3bf   : > { %v654_v2 = vsel %vm358_vm1, %v640_v57, -inf }
 0x3c0   : > { %v648_v56 = vsel %vm358_vm1, %v638_v55, -inf }
 0x3c1   : > { %649 = vmax.xlane.f32.xlu1 %v648_v56 }
 0x3c2   : > { %646 = vmax.xlane.f32.xlu0 %v645_v58  ;;  %v1789_v60 = vpop.f32.mrb[12].mxu1 }
 0x3c3   : > { %v643_v62 = vmul.f32 0.25, %v1789_v60  ;;  %v622_v63 = vpop.f32.mrb[13].mxu1 }
 0x3c4   : > { %v641_v0 = vmul.f32 0.25, %v622_v63  ;;  %v1790_v1 = vpop.f32.mrb[14].mxu1 }
 0x3c5   : > { %v663_v4 = vsel %vm358_vm1, %v643_v62, -inf  ;;  %v625_v5 = vpop.f32.mrb[15].mxu1  ;;  %v644_v8 = vmul.f32 0.25, %v1790_v1 }
 0x3c6   : > { %655 = vmax.xlane.f32.xlu0 %v654_v2  ;;  %664 = vmax.xlane.f32.xlu1 %v663_v4  ;;  %v2266_v6 = vmul.f32 0.25, %v625_v5  ;;  %v657_v9 = vsel %vm358_vm1, %v641_v0, -inf }
 0x3c7   : > { %v666_v12 = vsel %vm358_vm1, %v644_v8, -inf }
 0x3c8   : > { %v660_v10 = vsel %vm358_vm1, %v2266_v6, -inf }
 0x3ca   : > { %658 = vmax.xlane.f32.xlu1 %v657_v9  ;;  %661 = vmax.xlane.f32.xlu0 %v660_v10 }
 0x3ce   : > { %667 = vmax.xlane.f32.xlu0 %v666_v12 }
 0x3db   : > { %741 = vrot.lane.b32.xlu1 %v2162_v59, %s2042_s25 }
 0x3df   : > { %745 = vrot.lane.b32.xlu1 %v2197_v38, %s2042_s25 }
 0x3e3   : > { %747 = vrot.lane.b32.xlu1 %v2203_v41, %s2042_s25 }
 0x3e4   : > { %743 = vrot.lane.b32.xlu0 %v2165_v61, %s2042_s25 }
 0x3e7   : > { %838 = vrot.lane.b32.xlu1 %v2105_v16, %s2044_s27 }
 0x44b   : > { %v653_v13 = vpop.xlane.xlu0 %652 }
 0x44c   : > { %v671_v14 = vsub.f32 %v639_v51, %v653_v13 }
 0x44e   : > { %v681_v18 = vmul.f32 1.442695, %v671_v14  ;;  %v650_v19 = vpop.xlane.xlu1 %649 }
 0x44f   : > { %v647_v20 = vpop.xlane.xlu0 %646  ;;  %v670_v24 = vsub.f32 %v638_v55, %v650_v19 }
 0x450   : > { %1937 = vpow2.f32 %v681_v18  ;;  %v669_v21 = vsub.f32 %v637_v46, %v647_v20 }
 0x451   : > { %v679_v30 = vmul.f32 1.442695, %v670_v24 }
 0x452   : > { %v677_v23 = vmul.f32 1.442695, %v669_v21 }
 0x453   : > { %v665_v25 = vpop.xlane.xlu1 %664  ;;  %v656_v27 = vpop.xlane.xlu0 %655 }
 0x454   : > { %1939 = vpow2.f32 %v677_v23  ;;  %v672_v28 = vsub.f32 %v640_v57, %v656_v27  ;;  %v675_v31 = vsub.f32 %v643_v62, %v665_v25 }
 0x456   : > { %v683_v29 = vmul.f32 1.442695, %v672_v28  ;;  %v689_v37 = vmul.f32 1.442695, %v675_v31 }
 0x457   : > { %v659_v33 = vpop.xlane.xlu1 %658  ;;  %v662_v35 = vpop.xlane.xlu0 %661 }
 0x458   : > { %1941 = vpow2.f32 %v683_v29  ;;  %v673_v39 = vsub.f32 %v641_v0, %v659_v33  ;;  %v674_v10 = vsub.f32 %v2266_v6, %v662_v35 }
 0x459   : > { %1943 = vpow2.f32 %v679_v30 }
 0x45a   : > { %v2282_v36 = vpop.eup %1937  ;;  %1945 = vpow2.f32 %v689_v37  ;;  %v685_v45 = vmul.f32 1.442695, %v673_v39  ;;  %v687_v12 = vmul.f32 1.442695, %v674_v10 }
 0x45b   : > { %v668_v40 = vpop.xlane.xlu0 %667  ;;  %v699_v50 = vsel %vm358_vm1, %v2282_v36, 0.0  ;;  %v742_v51 = vpop.permute.xlu1 %741 }
 0x45c   : > { %700 = vadd.xlane.f32.xlu1 %v699_v50  ;;  %1791 = vmatprep.subr.bf16.mxu0 %v742_v51  ;;  %v676_v46 = vsub.f32 %v644_v8, %v668_v40  ;;  %1947 = vpow2.f32 %v685_v45 }
 0x45d   : > { %1792 = vmatpush3.bf16.msra.mxu0 %v742_v51 }
 0x45e   : > { %v2286_v52 = vpop.eup %1939  ;;  %v691_v57 = vmul.f32 1.442695, %v676_v46 }
 0x45f   : > { %v693_v53 = vsel %vm358_vm1, %v2286_v52, 0.0  ;;  %v744_v54 = vpop.permute.xlu0 %743  ;;  %v746_v55 = vpop.permute.xlu1 %745 }
 0x460   : > { %694 = vadd.xlane.f32.xlu1 %v693_v53  ;;  %1793 = vmatprep.subr.bf16.mxu0 %v744_v54  ;;  %1949 = vpow2.f32 %v691_v57 }
 0x461   : > { %1794 = vmatpush3.bf16.msra.mxu0 %v744_v54  ;;  %1951 = vpow2.f32 %v687_v12 }
 0x462   : > { %1795 = vmatprep.subr.bf16.mxu0 %v746_v55  ;;  %v1942_v56 = vpop.eup %1941 }
 0x463   : > { %v748_v58 = vpop.permute.xlu1 %747  ;;  %v702_v60 = vsel %vm358_vm1, %v1942_v56, 0.0  ;;  %v1944_v62 = vpop.eup %1943 }
 0x464   : > { %703 = vadd.xlane.f32.xlu0 %v702_v60  ;;  %v696_v0 = vsel %vm358_vm1, %v1944_v62, 0.0  ;;  %v2292_v1 = vpop.eup %1945 }
 0x465   : > { %1796 = vmatpush3.bf16.msra.mxu0 %v746_v55  ;;  %v711_v2 = vsel %vm358_vm1, %v2292_v1, 0.0 }
 0x466   : > { %1797 = vmatprep.subr.bf16.mxu0 %v748_v58  ;;  %v2297_v4 = vpop.eup %1947 }
 0x467   : > { %v839_v63 = vpop.permute.xlu1 %838  ;;  %v705_v5 = vsel %vm358_vm1, %v2297_v4, 0.0 }
 0x468   : > { %697 = vadd.xlane.f32.xlu0 %v696_v0  ;;  %v859_v50 = vsel %vm260_vm0, %v839_v63, 0 }
 0x469   : > { %1798 = vmatpush3.bf16.msra.mxu0 %v748_v58 }
 0x46a   : > { %1879 = vmatprep.subr.msk.bf16.mxu0 %vm260_vm0, %v839_v63  ;;  %v2301_v8 = vpop.eup %1949 }
 0x46b   : > { %v714_v9 = vsel %vm358_vm1, %v2301_v8, 0.0  ;;  %v1952_v13 = vpop.eup %1951 }
 0x46c   : > { %712 = vadd.xlane.f32.xlu0 %v711_v2  ;;  %v708_v14 = vsel %vm358_vm1, %v1952_v13, 0.0 }
 0x470   : > { %706 = vadd.xlane.f32.xlu0 %v705_v5 }
 0x471   : > { %842 = vrot.lane.b32.xlu1 %v2121_v22, %s2044_s27 }
 0x474   : > { %715 = vadd.xlane.f32.xlu0 %v714_v9 }
 0x48a   : > { %840 = vrot.lane.b32.xlu0 %v2107_v17, %s2044_s27 }
 0x48e   : > { %830 = vrot.lane.b32.xlu0 %v2091_v3, %s2045_s28 }
 0x492   : > { %834 = vrot.lane.b32.xlu0 %v2093_v7, %s2045_s28 }
 0x495   : > { %709 = vadd.xlane.f32.xlu1 %v708_v14 }
 0x4a6   : > { %844 = vrot.lane.b32.xlu1 %v2129_v26, %s2044_s27 }
 0x4aa   : > { %832 = vrot.lane.b32.xlu1 %v2097_v11, %s2045_s28 }
 0x4ae   : > { %836 = vrot.lane.b32.xlu1 %v2103_v15, %s2045_s28 }
 0x4e9   : > { %v701_v6 = vpop.xlane.xlu1 %700 }
 0x4ed   : > { %v695_v18 = vpop.xlane.xlu1 %694 }
 0x4f1   : > { %v704_v19 = vpop.xlane.xlu0 %703  ;;  %v843_v45 = vpop.permute.xlu1 %842 }
 0x4f2   : > { %1953 = vrcp.f32 %v704_v19 }
 0x4f3   : > { %1955 = vrcp.f32 %v695_v18 }
 0x4f4   : > { %1957 = vrcp.f32 %v701_v6 }
 0x4f5   : > { %v698_v20 = vpop.xlane.xlu0 %697 }
 0x4f6   : > { %1959 = vrcp.f32 %v698_v20 }
 0x4f9   : > { %v713_v21 = vpop.xlane.xlu0 %712 }
 0x4fc   : > { %v1954_v23 = vpop.eup %1953 }
 0x4fd   : > { %v707_v24 = vpop.xlane.xlu0 %706  ;;  %v1956_v25 = vpop.eup %1955  ;;  %v728_v29 = vmul.f32 %v1954_v23, %v1942_v56 }
 0x4fe   : > { %v1958_v27 = vpop.eup %1957  ;;  %v725_v31 = vmul.f32 %v1956_v25, %v2286_v52 }
 0x4ff   : > { %v727_v35 = vmul.f32 %v1958_v27, %v2282_v36  ;;  %v865_v36 = vsel %vm260_vm0, %v843_v45, 0 }
 0x500   : > { %v1960_v28 = vpop.eup %1959 }
 0x501   : > { %v716_v30 = vpop.xlane.xlu0 %715  ;;  %v726_v33 = vmul.f32 %v1960_v28, %v1944_v62  ;;  %v734_v39 = vpack.c.bf16 %v728_v29, %v727_v35 }
 0x502   : > { %1961 = vrcp.f32 %v716_v30 }
 0x503   : > { %v733_v37 = vpack.c.bf16 %v726_v33, %v725_v31  ;;  %1963 = vrcp.f32 %v707_v24 }
 0x504   : > { %1965 = vrcp.f32 %v713_v21 }
 0x505   : > { %1799 = vmatprep.mubr.msk.bf16.mxu0 %vm358_vm1, %v733_v37  ;;  %v841_v40 = vpop.permute.xlu0 %840 }
 0x506   : > { %1800 = vmatmul.mubr.msk.bf16.vlgmr.msra.gmra.mrb[8].mxu0 %vm358_vm1, %v734_v39  ;;  %v862_v51 = vsel %vm260_vm0, %v841_v40, 0 }
 0x507   : > { %1808 = vmatpush3.bf16.xpose.msra.mxu0 %v859_v50 }
 0x508   : > { %1880 = vmatprep.subr.msk.bf16.mxu0 %vm260_vm0, %v841_v40 }
 0x509   : > { %v831_v5 = vpop.permute.xlu0 %830 }
 0x50c   : > { %v1962_v54 = vpop.eup %1961 }
 0x50d   : > { %v1964_v55 = vpop.eup %1963  ;;  %v732_v58 = vmul.f32 %v1962_v54, %v2301_v8  ;;  %v835_v10 = vpop.permute.xlu0 %834 }
 0x50e   : > { %v1966_v56 = vpop.eup %1965  ;;  %v729_v60 = vmul.f32 %v1964_v55, %v2297_v4 }
 0x50f   : > { %1810 = vmatpush3.bf16.xpose.msra.mxu0 %v862_v51  ;;  %v731_v63 = vmul.f32 %v1966_v56, %v2292_v1 }
 0x510   : > { %1881 = vmatprep.subr.msk.bf16.mxu0 %vm260_vm0, %v843_v45 }
 0x511   : > { %v736_v2 = vpack.c.bf16 %v732_v58, %v731_v63 }
 0x517   : > { %1812 = vmatpush3.bf16.xpose.msra.mxu0 %v865_v36 }
 0x522   : > { %v710_v52 = vpop.xlane.xlu1 %709 }
 0x523   : > { %1967 = vrcp.f32 %v710_v52 }
 0x526   : > { %v845_v46 = vpop.permute.xlu1 %844 }
 0x527   : > { %v868_v53 = vsel %vm260_vm0, %v845_v46, 0  ;;  %1882 = vmatprep.subr.msk.bf16.mxu0 %vm260_vm0, %v845_v46 }
 0x528   : > { %1814 = vmatpush3.bf16.xpose.msra.mxu0 %v868_v53 }
 0x52a   : > { %v833_v9 = vpop.permute.xlu1 %832 }
 0x52d   : > { %v1968_v57 = vpop.eup %1967 }
 0x52e   : > { %v730_v62 = vmul.f32 %v1968_v57, %v1952_v13  ;;  %v837_v8 = vpop.permute.xlu1 %836 }
 0x530   : > { %v735_v0 = vpack.c.bf16 %v730_v62, %v729_v60 }
 0x532   : > { %1803 = vmatprep.mubr.msk.bf16.mxu0 %vm358_vm1, %v735_v0 }
 0x533   : > { %1804 = vmatmul.mubr.msk.bf16.gmra.mrb[12].mxu0 %vm358_vm1, %v736_v2 }
 0x534   : > { %1815 = vmatprep.mubr.msk.bf16.mxu0 %vm260_vm0, %v831_v5 }
 0x53b   : > { %1816 = vmatmul.mubr.msk.bf16.vlgmr.msra.gmra.mrb[16].mxu0 %vm260_vm0, %v833_v9 }
 0x53c   : > { %1819 = vmatprep.mubr.msk.bf16.mxu0 %vm260_vm0, %v835_v10 }
 0x543   : > { %1820 = vmatmul.mubr.msk.bf16.gmra.mrb[20].mxu0 %vm260_vm0, %v837_v8 }
 0x5d9   : > { %v2337_v4 = vpop.f32.mrb[8].mxu0 }
 0x5da   : > { %v2339_v1 = vpop.f32.mrb[9].mxu0 }
 0x5db   : > { %v2341_v12 = vpop.f32.mrb[10].mxu0 }
 0x5dc   : > { %v2343_v13 = vpop.f32.mrb[11].mxu0 }
 0x606   : > { %v2345_v14 = vpop.f32.mrb[12].mxu0 }
 0x607   : > { %v2347_v6 = vpop.f32.mrb[13].mxu0 }
 0x608   : > { %v2349_v18 = vpop.f32.mrb[14].mxu0 }
 0x609   : > { %v2351_v19 = vpop.f32.mrb[15].mxu0 }
 0x60e   : > { %v1817_v20 = vpop.f32.mrb[16].mxu0 }
 0x60f   : > { %v937_v21 = vmul.f32 0.25, %v1817_v20  ;;  %v904_v23 = vpop.f32.mrb[17].mxu0 }
 0x610   : > { %v1818_v24 = vpop.f32.mrb[18].mxu0  ;;  %v935_v25 = vmul.f32 0.25, %v904_v23 }
 0x611   : > { %v907_v27 = vpop.f32.mrb[19].mxu0  ;;  %v949_v28 = vsel %vm358_vm1, %v937_v21, -inf  ;;  %v938_v31 = vmul.f32 0.25, %v1818_v24 }
 0x612   : > { %v936_v29 = vmul.f32 0.25, %v907_v27  ;;  %950 = vmax.xlane.f32.xlu0 %v949_v28  ;;  %v943_v33 = vsel %vm358_vm1, %v935_v25, -inf }
 0x613   : > { %v952_v51 = vsel %vm358_vm1, %v938_v31, -inf }
 0x614   : > { %v946_v30 = vsel %vm358_vm1, %v936_v29, -inf }
 0x615   : > { %947 = vmax.xlane.f32.xlu1 %v946_v30 }
 0x616   : > { %944 = vmax.xlane.f32.xlu0 %v943_v33  ;;  %v1821_v35 = vpop.f32.mrb[20].mxu0 }
 0x617   : > { %v941_v37 = vmul.f32 0.25, %v1821_v35  ;;  %v920_v39 = vpop.f32.mrb[21].mxu0 }
 0x618   : > { %v939_v40 = vmul.f32 0.25, %v920_v39  ;;  %v1822_v50 = vpop.f32.mrb[22].mxu0 }
 0x619   : > { %v961_v45 = vsel %vm358_vm1, %v941_v37, -inf  ;;  %v923_v36 = vpop.f32.mrb[23].mxu0  ;;  %v942_v46 = vmul.f32 0.25, %v1822_v50 }
 0x61a   : > { %953 = vmax.xlane.f32.xlu0 %v952_v51  ;;  %962 = vmax.xlane.f32.xlu1 %v961_v45  ;;  %v2358_v52 = vmul.f32 0.25, %v923_v36  ;;  %v955_v53 = vsel %vm358_vm1, %v939_v40, -inf }
 0x61b   : > { %v964_v55 = vsel %vm358_vm1, %v942_v46, -inf }
 0x61c   : > { %v958_v54 = vsel %vm358_vm1, %v2358_v52, -inf }
 0x61e   : > { %956 = vmax.xlane.f32.xlu1 %v955_v53  ;;  %959 = vmax.xlane.f32.xlu0 %v958_v54 }
 0x622   : > { %965 = vmax.xlane.f32.xlu0 %v964_v55 }
 0x62f   : > { %1035 = vrot.lane.b32.xlu1 %v2162_v59, %s2044_s27 }
 0x633   : > { %1039 = vrot.lane.b32.xlu1 %v2197_v38, %s2044_s27 }
 0x637   : > { %1041 = vrot.lane.b32.xlu1 %v2203_v41, %s2044_s27 }
 0x638   : > { %1037 = vrot.lane.b32.xlu0 %v2165_v61, %s2044_s27 }
 0x63b   : > { %1132 = vrot.lane.b32.xlu1 %v2105_v16, %s2046_s29 }
 0x69f   : > { %v951_v56 = vpop.xlane.xlu0 %950 }
 0x6a0   : > { %v969_v57 = vsub.f32 %v937_v21, %v951_v56 }
 0x6a2   : > { %v979_v58 = vmul.f32 1.442695, %v969_v57  ;;  %v948_v60 = vpop.xlane.xlu1 %947 }
 0x6a3   : > { %v945_v62 = vpop.xlane.xlu0 %944  ;;  %v968_v2 = vsub.f32 %v936_v29, %v948_v60 }
 0x6a4   : > { %1969 = vpow2.f32 %v979_v58  ;;  %v967_v63 = vsub.f32 %v935_v25, %v945_v62 }
 0x6a5   : > { %v977_v20 = vmul.f32 1.442695, %v968_v2 }
 0x6a6   : > { %v975_v0 = vmul.f32 1.442695, %v967_v63 }
 0x6a7   : > { %v963_v5 = vpop.xlane.xlu1 %962  ;;  %v954_v9 = vpop.xlane.xlu0 %953 }
 0x6a8   : > { %1971 = vpow2.f32 %v975_v0  ;;  %v970_v10 = vsub.f32 %v938_v31, %v954_v9  ;;  %v973_v23 = vsub.f32 %v941_v37, %v963_v5 }
 0x6aa   : > { %v981_v8 = vmul.f32 1.442695, %v970_v10  ;;  %v987_v21 = vmul.f32 1.442695, %v973_v23 }
 0x6ab   : > { %v957_v24 = vpop.xlane.xlu1 %956  ;;  %v960_v27 = vpop.xlane.xlu0 %959 }
 0x6ac   : > { %1973 = vpow2.f32 %v981_v8  ;;  %v971_v28 = vsub.f32 %v939_v40, %v957_v24  ;;  %v972_v63 = vsub.f32 %v2358_v52, %v960_v27 }
 0x6ad   : > { %1975 = vpow2.f32 %v977_v20 }
 0x6ae   : > { %v2374_v16 = vpop.eup %1969  ;;  %1977 = vpow2.f32 %v987_v21  ;;  %v983_v33 = vmul.f32 1.442695, %v971_v28  ;;  %v985_v0 = vmul.f32 1.442695, %v972_v63 }
 0x6af   : > { %v966_v30 = vpop.xlane.xlu0 %965  ;;  %v997_v25 = vsel %vm358_vm1, %v2374_v16, 0.0  ;;  %v1036_v29 = vpop.permute.xlu1 %1035 }
 0x6b0   : > { %998 = vadd.xlane.f32.xlu1 %v997_v25  ;;  %1823 = vmatprep.subr.bf16.mxu1 %v1036_v29  ;;  %v974_v35 = vsub.f32 %v942_v46, %v966_v30  ;;  %1979 = vpow2.f32 %v983_v33 }
 0x6b1   : > { %1824 = vmatpush3.bf16.msra.mxu1 %v1036_v29 }
 0x6b2   : > { %v2378_v31 = vpop.eup %1971  ;;  %v989_v51 = vmul.f32 1.442695, %v974_v35 }
 0x6b3   : > { %v991_v37 = vsel %vm358_vm1, %v2378_v31, 0.0  ;;  %v1038_v39 = vpop.permute.xlu0 %1037  ;;  %v1040_v50 = vpop.permute.xlu1 %1039 }
 0x6b4   : > { %992 = vadd.xlane.f32.xlu1 %v991_v37  ;;  %1825 = vmatprep.subr.bf16.mxu1 %v1038_v39  ;;  %1981 = vpow2.f32 %v989_v51 }
 0x6b5   : > { %1826 = vmatpush3.bf16.msra.mxu1 %v1038_v39  ;;  %1983 = vpow2.f32 %v985_v0 }
 0x6b6   : > { %1827 = vmatprep.subr.bf16.mxu1 %v1040_v50  ;;  %v1974_v40 = vpop.eup %1973 }
 0x6b7   : > { %v1042_v45 = vpop.permute.xlu1 %1041  ;;  %v1000_v36 = vsel %vm358_vm1, %v1974_v40, 0.0  ;;  %v1976_v53 = vpop.eup %1975 }
 0x6b8   : > { %1001 = vadd.xlane.f32.xlu0 %v1000_v36  ;;  %v994_v54 = vsel %vm358_vm1, %v1976_v53, 0.0  ;;  %v2384_v55 = vpop.eup %1977 }
 0x6b9   : > { %1828 = vmatpush3.bf16.msra.mxu1 %v1040_v50  ;;  %v1009_v56 = vsel %vm358_vm1, %v2384_v55, 0.0 }
 0x6ba   : > { %1829 = vmatprep.subr.bf16.mxu1 %v1042_v45  ;;  %v2389_v57 = vpop.eup %1979 }
 0x6bb   : > { %v1133_v46 = vpop.permute.xlu1 %1132  ;;  %v1003_v58 = vsel %vm358_vm1, %v2389_v57, 0.0 }
 0x6bc   : > { %995 = vadd.xlane.f32.xlu0 %v994_v54  ;;  %v1153_v25 = vsel %vm260_vm0, %v1133_v46, 0 }
 0x6bd   : > { %1830 = vmatpush3.bf16.msra.mxu1 %v1042_v45 }
 0x6be   : > { %1883 = vmatprep.subr.msk.bf16.mxu1 %vm260_vm0, %v1133_v46  ;;  %v2393_v60 = vpop.eup %1981 }
 0x6bf   : > { %v1012_v62 = vsel %vm358_vm1, %v2393_v60, 0.0  ;;  %v1984_v2 = vpop.eup %1983 }
 0x6c0   : > { %1010 = vadd.xlane.f32.xlu0 %v1009_v56  ;;  %v1006_v5 = vsel %vm358_vm1, %v1984_v2, 0.0 }
 0x6c4   : > { %1004 = vadd.xlane.f32.xlu0 %v1003_v58 }
 0x6c5   : > { %1136 = vrot.lane.b32.xlu1 %v2121_v22, %s2046_s29 }
 0x6c8   : > { %1013 = vadd.xlane.f32.xlu0 %v1012_v62 }
 0x6de   : > { %1134 = vrot.lane.b32.xlu0 %v2107_v17, %s2046_s29 }
 0x6e2   : > { %1124 = vrot.lane.b32.xlu0 %v2091_v3, %s2047_s30 }
 0x6e6   : > { %1128 = vrot.lane.b32.xlu0 %v2093_v7, %s2047_s30 }
 0x6e9   : > { %1007 = vadd.xlane.f32.xlu1 %v1006_v5 }
 0x6fa   : > { %1138 = vrot.lane.b32.xlu1 %v2129_v26, %s2046_s29 }
 0x6fe   : > { %1126 = vrot.lane.b32.xlu1 %v2097_v11, %s2047_s30 }
 0x702   : > { %1130 = vrot.lane.b32.xlu1 %v2103_v15, %s2047_s30 }
 0x73d   : > { %v999_v22 = vpop.xlane.xlu1 %998 }
 0x741   : > { %v993_v52 = vpop.xlane.xlu1 %992 }
 0x745   : > { %v1002_v9 = vpop.xlane.xlu0 %1001  ;;  %v1137_v33 = vpop.permute.xlu1 %1136 }
 0x746   : > { %1985 = vrcp.f32 %v1002_v9 }
 0x747   : > { %1987 = vrcp.f32 %v993_v52 }
 0x748   : > { %1989 = vrcp.f32 %v999_v22 }
 0x749   : > { %v996_v3 = vpop.xlane.xlu0 %995 }
 0x74a   : > { %1991 = vrcp.f32 %v996_v3 }
 0x74d   : > { %v1011_v17 = vpop.xlane.xlu0 %1010 }
 0x750   : > { %v1986_v7 = vpop.eup %1985 }
 0x751   : > { %v1005_v10 = vpop.xlane.xlu0 %1004  ;;  %v1988_v8 = vpop.eup %1987  ;;  %v1026_v24 = vmul.f32 %v1986_v7, %v1974_v40 }
 0x752   : > { %v1990_v20 = vpop.eup %1989  ;;  %v1023_v11 = vmul.f32 %v1988_v8, %v2378_v31 }
 0x753   : > { %v1025_v15 = vmul.f32 %v1990_v20, %v2374_v16  ;;  %v1159_v16 = vsel %vm260_vm0, %v1137_v33, 0 }
 0x754   : > { %v1992_v23 = vpop.eup %1991 }
 0x755   : > { %v1014_v26 = vpop.xlane.xlu0 %1013  ;;  %v1024_v27 = vmul.f32 %v1992_v23, %v1976_v53  ;;  %v1032_v28 = vpack.c.bf16 %v1026_v24, %v1025_v15 }
 0x756   : > { %1993 = vrcp.f32 %v1014_v26 }
 0x757   : > { %v1031_v21 = vpack.c.bf16 %v1024_v27, %v1023_v11  ;;  %1995 = vrcp.f32 %v1005_v10 }
 0x758   : > { %1997 = vrcp.f32 %v1011_v17 }
 0x759   : > { %1831 = vmatprep.mubr.msk.bf16.mxu1 %vm358_vm1, %v1031_v21  ;;  %v1135_v30 = vpop.permute.xlu0 %1134 }
 0x75a   : > { %1832 = vmatmul.mubr.msk.bf16.vlgmr.msra.gmra.mrb[16].mxu1 %vm358_vm1, %v1032_v28  ;;  %v1156_v29 = vsel %vm260_vm0, %v1135_v30, 0 }
 0x75b   : > { %1840 = vmatpush3.bf16.xpose.msra.mxu1 %v1153_v25 }
 0x75c   : > { %1884 = vmatprep.subr.msk.bf16.mxu1 %vm260_vm0, %v1135_v30 }
 0x75d   : > { %v1125_v58 = vpop.permute.xlu0 %1124 }
 0x760   : > { %v1994_v39 = vpop.eup %1993 }
 0x761   : > { %v1996_v50 = vpop.eup %1995  ;;  %v1030_v45 = vmul.f32 %v1994_v39, %v2393_v60  ;;  %v1129_v63 = vpop.permute.xlu0 %1128 }
 0x762   : > { %v1998_v40 = vpop.eup %1997  ;;  %v1027_v36 = vmul.f32 %v1996_v50, %v2389_v57 }
 0x763   : > { %1842 = vmatpush3.bf16.xpose.msra.mxu1 %v1156_v29  ;;  %v1029_v46 = vmul.f32 %v1998_v40, %v2384_v55 }
 0x764   : > { %1885 = vmatprep.subr.msk.bf16.mxu1 %vm260_vm0, %v1137_v33 }
 0x765   : > { %v1034_v56 = vpack.c.bf16 %v1030_v45, %v1029_v46 }
 0x76b   : > { %1844 = vmatpush3.bf16.xpose.msra.mxu1 %v1159_v16 }
 0x776   : > { %v1008_v31 = vpop.xlane.xlu1 %1007 }
 0x777   : > { %1999 = vrcp.f32 %v1008_v31 }
 0x77a   : > { %v1139_v35 = vpop.permute.xlu1 %1138 }
 0x77b   : > { %v1162_v37 = vsel %vm260_vm0, %v1139_v35, 0  ;;  %1886 = vmatprep.subr.msk.bf16.mxu1 %vm260_vm0, %v1139_v35 }
 0x77c   : > { %1846 = vmatpush3.bf16.xpose.msra.mxu1 %v1162_v37 }
 0x77e   : > { %v1127_v62 = vpop.permute.xlu1 %1126 }
 0x781   : > { %v2000_v51 = vpop.eup %1999 }
 0x782   : > { %v1028_v53 = vmul.f32 %v2000_v51, %v1984_v2  ;;  %v1131_v60 = vpop.permute.xlu1 %1130 }
 0x784   : > { %v1033_v54 = vpack.c.bf16 %v1028_v53, %v1027_v36 }
 0x786   : > { %1835 = vmatprep.mubr.msk.bf16.mxu1 %vm358_vm1, %v1033_v54 }
 0x787   : > { %1836 = vmatmul.mubr.msk.bf16.gmra.mrb[20].mxu1 %vm358_vm1, %v1034_v56 }
 0x788   : > { %1847 = vmatprep.mubr.msk.bf16.mxu1 %vm260_vm0, %v1125_v58 }
 0x78f   : > { %1848 = vmatmul.mubr.msk.bf16.vlgmr.msra.gmra.mrb[24].mxu1 %vm260_vm0, %v1127_v62 }
 0x790   : > { %1851 = vmatprep.mubr.msk.bf16.mxu1 %vm260_vm0, %v1129_v63 }
 0x797   : > { %1852 = vmatmul.mubr.msk.bf16.gmra.mrb[28].mxu1 %vm260_vm0, %v1131_v60 }
 0x82d   : > { %v2429_v57 = vpop.f32.mrb[16].mxu1 }
 0x82e   : > { %v2431_v55 = vpop.f32.mrb[17].mxu1 }
 0x82f   : > { %v2433_v0 = vpop.f32.mrb[18].mxu1 }
 0x830   : > { %v2435_v2 = vpop.f32.mrb[19].mxu1 }
 0x85a   : > { %v2437_v5 = vpop.f32.mrb[20].mxu1 }
 0x85b   : > { %v2439_v22 = vpop.f32.mrb[21].mxu1 }
 0x85c   : > { %v2441_v52 = vpop.f32.mrb[22].mxu1 }
 0x85d   : > { %v2443_v9 = vpop.f32.mrb[23].mxu1 }
 0x862   : > { %v1849_v3 = vpop.f32.mrb[24].mxu1 }
 0x863   : > { %v1198_v17 = vpop.f32.mrb[25].mxu1  ;;  %v1231_v20 = vmul.f32 0.25, %v1849_v3 }
 0x864   : > { %v1229_v7 = vmul.f32 0.25, %v1198_v17  ;;  %v1850_v10 = vpop.f32.mrb[26].mxu1 }
 0x865   : > { %v1201_v8 = vpop.f32.mrb[27].mxu1  ;;  %v1232_v11 = vmul.f32 0.25, %v1850_v10  ;;  %v1243_v15 = vsel %vm358_vm1, %v1231_v20, -inf }
 0x866   : > { %v1230_v23 = vmul.f32 0.25, %v1201_v8  ;;  %v1237_v24 = vsel %vm358_vm1, %v1229_v7, -inf }
 0x867   : > { %1238 = vmax.xlane.f32.xlu0 %v1237_v24  ;;  %v1246_v16 = vsel %vm358_vm1, %v1232_v11, -inf }
 0x868   : > { %v1240_v26 = vsel %vm358_vm1, %v1230_v23, -inf }
 0x869   : > { %1241 = vmax.xlane.f32.xlu1 %v1240_v26 }
 0x86a   : > { %v1853_v27 = vpop.f32.mrb[28].mxu1 }
 0x86b   : > { %1244 = vmax.xlane.f32.xlu0 %v1243_v15  ;;  %v1214_v21 = vpop.f32.mrb[29].mxu1  ;;  %v1235_v29 = vmul.f32 0.25, %v1853_v27 }
 0x86c   : > { %v1233_v28 = vmul.f32 0.25, %v1214_v21  ;;  %v1854_v30 = vpop.f32.mrb[30].mxu1 }
 0x86d   : > { %v1217_v25 = vpop.f32.mrb[31].mxu1  ;;  %v1236_v35 = vmul.f32 0.25, %v1854_v30  ;;  %v1255_v37 = vsel %vm358_vm1, %v1235_v29, -inf }
 0x86e   : > { %v1234_v33 = vmul.f32 0.25, %v1217_v25  ;;  %v1249_v31 = vsel %vm358_vm1, %v1233_v28, -inf }
 0x86f   : > { %1247 = vmax.xlane.f32.xlu0 %v1246_v16  ;;  %1250 = vmax.xlane.f32.xlu1 %v1249_v31  ;;  %v1258_v50 = vsel %vm358_vm1, %v1236_v35, -inf }
 0x870   : > { %v1252_v39 = vsel %vm358_vm1, %v1234_v33, -inf }
 0x873   : > { %1256 = vmax.xlane.f32.xlu1 %v1255_v37  ;;  %1253 = vmax.xlane.f32.xlu0 %v1252_v39 }
 0x877   : > { %1259 = vmax.xlane.f32.xlu0 %v1258_v50 }
 0x884   : > { %1329 = vrot.lane.b32.xlu1 %v2162_v59, %s2046_s29 }
 0x8f4   : > { %v1239_v40 = vpop.xlane.xlu0 %1238 }
 0x8f5   : > { %v1261_v51 = vsub.f32 %v1229_v7, %v1239_v40 }
 0x8f6   : > { %v1242_v45 = vpop.xlane.xlu1 %1241 }
 0x8f7   : > { %v1269_v46 = vmul.f32 1.442695, %v1261_v51  ;;  %v1262_v56 = vsub.f32 %v1230_v23, %v1242_v45 }
 0x8f8   : > { %v1245_v36 = vpop.xlane.xlu0 %1244 }
 0x8f9   : > { %v1263_v53 = vsub.f32 %v1231_v20, %v1245_v36  ;;  %v1271_v17 = vmul.f32 1.442695, %v1262_v56 }
 0x8fb   : > { %v1273_v54 = vmul.f32 1.442695, %v1263_v53 }
 0x8fc   : > { %v1251_v58 = vpop.xlane.xlu1 %1250  ;;  %v1248_v62 = vpop.xlane.xlu0 %1247 }
 0x8fd   : > { %2001 = vpow2.f32 %v1273_v54  ;;  %v1264_v63 = vsub.f32 %v1232_v11, %v1248_v62  ;;  %v1265_v60 = vsub.f32 %v1233_v28, %v1251_v58 }
 0x8fe   : > { %2003 = vpow2.f32 %v1269_v46 }
 0x8ff   : > { %v1275_v3 = vmul.f32 1.442695, %v1264_v63  ;;  %v1277_v59 = vmul.f32 1.442695, %v1265_v60 }
 0x900   : > { %v1257_v10 = vpop.xlane.xlu1 %1256  ;;  %v1254_v8 = vpop.xlane.xlu0 %1253 }
 0x901   : > { %v1267_v24 = vsub.f32 %v1235_v29, %v1257_v10  ;;  %2005 = vpow2.f32 %v1275_v3  ;;  %v1266_v26 = vsub.f32 %v1234_v33, %v1254_v8 }
 0x902   : > { %2007 = vpow2.f32 %v1271_v17 }
 0x903   : > { %v1281_v7 = vmul.f32 1.442695, %v1267_v24  ;;  %v1279_v21 = vmul.f32 1.442695, %v1266_v26 }
 0x904   : > { %v1260_v20 = vpop.xlane.xlu0 %1259  ;;  %v1330_v27 = vpop.permute.xlu1 %1329 }
 0x905   : > { %2009 = vpow2.f32 %v1281_v7  ;;  %v1268_v23 = vsub.f32 %v1236_v35, %v1260_v20  ;;  %1855 = vmatprep.subr.bf16.mxu0 %v1330_v27 }
 0x906   : > { %1856 = vmatpush3.bf16.msra.mxu0 %v1330_v27  ;;  %2011 = vpow2.f32 %v1277_v59 }
 0x907   : > { %v2455_v15 = vpop.eup %2001  ;;  %v1283_v11 = vmul.f32 1.442695, %v1268_v23 }
 0x908   : > { %v1291_v28 = vsel %vm358_vm1, %v2455_v15, 0.0  ;;  %v2459_v30 = vpop.eup %2003 }
 0x909   : > { %2013 = vpow2.f32 %v1283_v11  ;;  %1292 = vadd.xlane.f32.xlu1 %v1291_v28  ;;  %v1285_v29 = vsel %vm358_vm1, %v2459_v30, 0.0 }
 0x90a   : > { %2015 = vpow2.f32 %v1279_v21 }
 0x90b   : > { %v2461_v25 = vpop.eup %2005 }
 0x90c   : > { %v1294_v33 = vsel %vm358_vm1, %v2461_v25, 0.0  ;;  %v2008_v16 = vpop.eup %2007 }
 0x90d   : > { %1286 = vadd.xlane.f32.xlu1 %v1285_v29  ;;  %1295 = vadd.xlane.f32.xlu0 %v1294_v33  ;;  %v1288_v39 = vsel %vm358_vm1, %v2008_v16, 0.0 }
 0x90f   : > { %v2467_v31 = vpop.eup %2009 }
 0x910   : > { %v1303_v35 = vsel %vm358_vm1, %v2467_v31, 0.0  ;;  %v2471_v37 = vpop.eup %2011 }
 0x911   : > { %1304 = vadd.xlane.f32.xlu1 %v1303_v35  ;;  %1289 = vadd.xlane.f32.xlu0 %v1288_v39  ;;  %v1297_v40 = vsel %vm358_vm1, %v2471_v37, 0.0 }
 0x913   : > { %v2474_v50 = vpop.eup %2013 }
 0x914   : > { %v1306_v51 = vsel %vm358_vm1, %v2474_v50, 0.0  ;;  %v2016_v45 = vpop.eup %2015 }
 0x915   : > { %1298 = vadd.xlane.f32.xlu1 %v1297_v40  ;;  %1307 = vadd.xlane.f32.xlu0 %v1306_v51  ;;  %v1300_v36 = vsel %vm358_vm1, %v2016_v45, 0.0 }
 0x919   : > { %1301 = vadd.xlane.f32.xlu0 %v1300_v36 }
 0x926   : > { %1333 = vrot.lane.b32.xlu1 %v2197_v38, %s2046_s29 }
 0x92a   : > { %1335 = vrot.lane.b32.xlu1 %v2203_v41, %s2046_s29 }
 0x92e   : > { %1428 = vrot.lane.b32.xlu1 %v2343_v13, %s2048_s4 }
 0x92f   : > { %1331 = vrot.lane.b32.xlu0 %v2165_v61, %s2046_s29 }
 0x932   : > { %1432 = vrot.lane.b32.xlu1 %v2341_v12, %s2048_s4 }
 0x933   : > { %1426 = vrot.lane.b32.xlu0 %v2339_v1, %s2048_s4 }
 0x936   : > { %1436 = vrot.lane.b32.xlu1 %v2351_v19, %s2048_s4 }
 0x937   : > { %1430 = vrot.lane.b32.xlu0 %v2337_v4, %s2048_s4 }
 0x93a   : > { %1440 = vrot.lane.b32.xlu1 %v2349_v18, %s2048_s4 }
 0x93b   : > { %1434 = vrot.lane.b32.xlu0 %v2347_v6, %s2048_s4 }
 0x93e   : > { %1460 = vrot.lane.b32.xlu1 %v2435_v2, %s2049_s5 }
 0x93f   : > { %1438 = vrot.lane.b32.xlu0 %v2345_v14, %s2048_s4 }
 0x942   : > { %1464 = vrot.lane.b32.xlu1 %v2433_v0, %s2049_s5 }
 0x943   : > { %1458 = vrot.lane.b32.xlu0 %v2431_v55, %s2049_s5 }
 0x946   : > { %1468 = vrot.lane.b32.xlu1 %v2443_v9, %s2049_s5 }
 0x947   : > { %1462 = vrot.lane.b32.xlu0 %v2429_v57, %s2049_s5 }
 0x94a   : > { %1472 = vrot.lane.b32.xlu1 %v2441_v52, %s2049_s5 }
 0x94b   : > { %1466 = vrot.lane.b32.xlu0 %v2439_v22, %s2049_s5 }
 0x94f   : > { %1470 = vrot.lane.b32.xlu0 %v2437_v5, %s2049_s5 }
 0x996   : > { %v1293_v61 = vpop.xlane.xlu1 %1292 }
 0x99a   : > { %v1287_v38 = vpop.xlane.xlu1 %1286  ;;  %v1296_v41 = vpop.xlane.xlu0 %1295 }
 0x99b   : > { %2017 = vrcp.f32 %v1287_v38 }
 0x99e   : > { %v1305_v4 = vpop.xlane.xlu1 %1304  ;;  %v1290_v1 = vpop.xlane.xlu0 %1289 }
 0x99f   : > { %2019 = vrcp.f32 %v1290_v1 }
 0x9a0   : > { %2021 = vrcp.f32 %v1296_v41 }
 0x9a1   : > { %2023 = vrcp.f32 %v1293_v61 }
 0x9a2   : > { %v1308_v12 = vpop.xlane.xlu0 %1307  ;;  %v1299_v13 = vpop.xlane.xlu1 %1298 }
 0x9a3   : > { %2025 = vrcp.f32 %v1299_v13 }
 0x9a5   : > { %v2018_v6 = vpop.eup %2017 }
 0x9a6   : > { %v1302_v14 = vpop.xlane.xlu0 %1301  ;;  %v1334_v19 = vpop.permute.xlu1 %1333  ;;  %v1317_v55 = vmul.f32 %v2018_v6, %v2459_v30 }
 0x9a7   : > { %2027 = vrcp.f32 %v1302_v14 }
 0x9a8   : > { %2029 = vrcp.f32 %v1308_v12 }
 0x9a9   : > { %v2020_v18 = vpop.eup %2019  ;;  %2031 = vrcp.f32 %v1305_v4 }
 0x9aa   : > { %v1332_v57 = vpop.permute.xlu0 %1331  ;;  %v1318_v0 = vmul.f32 %v2020_v18, %v2008_v16  ;;  %v2022_v5 = vpop.eup %2021 }
 0x9ab   : > { %1857 = vmatprep.subr.bf16.mxu0 %v1332_v57  ;;  %v2024_v22 = vpop.eup %2023  ;;  %v1336_v9 = vpop.permute.xlu1 %1335  ;;  %v1320_v46 = vmul.f32 %v2022_v5, %v2461_v25 }
 0x9ac   : > { %1858 = vmatpush3.bf16.msra.mxu0 %v1332_v57  ;;  %v1325_v2 = vpack.c.bf16 %v1318_v0, %v1317_v55  ;;  %v1319_v56 = vmul.f32 %v2024_v22, %v2455_v15 }
 0x9ad   : > { %1859 = vmatprep.subr.bf16.mxu0 %v1334_v19  ;;  %v2026_v52 = vpop.eup %2025 }
 0x9ae   : > { %1863 = vmatprep.mubr.msk.bf16.mxu0 %vm358_vm1, %v1325_v2  ;;  %v1321_v58 = vmul.f32 %v2026_v52, %v2471_v37  ;;  %v1326_v62 = vpack.c.bf16 %v1320_v46, %v1319_v56  ;;  %v1427_v11 = vpop.permute.xlu0 %1426 }
 0x9af   : > { %v1429_v21 = vpop.permute.xlu1 %1428  ;;  %v1514_v12 = vsel %vm260_vm0, %v2247_v34, %v1427_v11 }
 0x9b0   : > { %1860 = vmatpush3.bf16.msra.mxu0 %v1334_v19 }
 0x9b1   : > { %v2028_v53 = vpop.eup %2027  ;;  %1861 = vmatprep.subr.bf16.mxu0 %v1336_v9 }
 0x9b2   : > { %v1322_v54 = vmul.f32 %v2028_v53, %v2016_v45  ;;  %v2030_v63 = vpop.eup %2029  ;;  %v1431_v28 = vpop.permute.xlu0 %1430 }
 0x9b3   : > { %v2032_v3 = vpop.eup %2031  ;;  %v1324_v17 = vmul.f32 %v2030_v63, %v2474_v50  ;;  %v1433_v30 = vpop.permute.xlu1 %1432  ;;  %v1516_v36 = vsel %vm260_vm0, %v2245_v32, %v1431_v28 }
 0x9b4   : > { %1862 = vmatpush3.bf16.msra.mxu0 %v1336_v9  ;;  %v1327_v60 = vpack.c.bf16 %v1322_v54, %v1321_v58  ;;  %v1323_v10 = vmul.f32 %v2032_v3, %v2467_v31  ;;  %v1517_v41 = vsel %vm260_vm0, %v2249_v42, %v1433_v30  ;;  %v1515_v42 = vsel %vm260_vm0, %v2251_v43, %v1429_v21 }
 0x9b6   : > { %v1328_v8 = vpack.c.bf16 %v1324_v17, %v1323_v10  ;;  %v1435_v25 = vpop.permute.xlu0 %1434 }
 0x9b7   : > { %1864 = vmatmul.mubr.msk.bf16.vlgmr.msra.gmra.mrb[24].mxu0 %vm358_vm1, %v1326_v62  ;;  %v1437_v29 = vpop.permute.xlu1 %1436  ;;  %v1518_v55 = vsel %vm260_vm0, %v2255_v47, %v1435_v25 }
 0x9b8   : > { %1867 = vmatprep.mubr.msk.bf16.mxu0 %vm358_vm1, %v1327_v60  ;;  %v1519_v43 = vsel %vm260_vm0, %v2259_v49, %v1437_v29 }
 0x9ba   : > { %v1439_v33 = vpop.permute.xlu0 %1438 }
 0x9bb   : > { %v1441_v16 = vpop.permute.xlu1 %1440  ;;  %v1520_v47 = vsel %vm260_vm0, %v2253_v44, %v1439_v33 }
 0x9bc   : > { %v1521_v49 = vsel %vm260_vm0, %v2257_v48, %v1441_v16 }
 0x9be   : > { %v1459_v31 = vpop.permute.xlu0 %1458 }
 0x9bf   : > { %1868 = vmatmul.mubr.msk.bf16.gmra.mrb[28].mxu0 %vm358_vm1, %v1328_v8  ;;  %v1461_v35 = vpop.permute.xlu1 %1460  ;;  %v1523_v14 = vsel %vm1522_vm3, %v1514_v12, %v1459_v31 }
 0x9c0   : > { %v1524_v19 = vsel %vm1522_vm3, %v1515_v42, %v1461_v35 }
 0x9c2   : > { %v1463_v37 = vpop.permute.xlu0 %1462 }
 0x9c3   : > { %v1465_v39 = vpop.permute.xlu1 %1464  ;;  %v1525_v61 = vsel %vm1522_vm3, %v1516_v36, %v1463_v37 }
 0x9c4   : > { %v1526_v32 = vsel %vm1522_vm3, %v1517_v41, %v1465_v39 }
 0x9c6   : > { %v1467_v50 = vpop.permute.xlu0 %1466 }
 0x9c7   : > { %v1469_v40 = vpop.permute.xlu1 %1468  ;;  %v1527_v0 = vsel %vm1522_vm3, %v1518_v55, %v1467_v50 }
 0x9c8   : > { %v1528_v22 = vsel %vm1522_vm3, %v1519_v43, %v1469_v40 }
 0x9ca   : > { %v1471_v51 = vpop.permute.xlu0 %1470 }
 0x9cb   : > { %v1473_v45 = vpop.permute.xlu1 %1472  ;;  %v1529_v53 = vsel %vm1522_vm3, %v1520_v47, %v1471_v51 }
 0x9cc   : > { %v1530_v56 = vsel %vm1522_vm3, %v1521_v49, %v1473_v45 }
 0xa8a   : > { %v1865_v24 = vpop.f32.mrb[24].mxu0 }
 0xa8b   : > { %1494 = vrot.lane.b32.xlu0 %v1865_v24, %s2050_s6  ;;  %v1387_v59 = vpop.f32.mrb[25].mxu0 }
 0xa8c   : > { %v1866_v7 = vpop.f32.mrb[26].mxu0 }
 0xa8d   : > { %1496 = vrot.lane.b32.xlu1 %v1866_v7, %s2050_s6  ;;  %v1390_v26 = vpop.f32.mrb[27].mxu0 }
 0xa8f   : > { %1490 = vrot.lane.b32.xlu0 %v1387_v59, %s2050_s6 }
 0xa91   : > { %1492 = vrot.lane.b32.xlu1 %v1390_v26, %s2050_s6 }
 0xa92   : > { %v1869_v20 = vpop.f32.mrb[28].mxu0 }
 0xa93   : > { %v1403_v27 = vpop.f32.mrb[29].mxu0 }
 0xa94   : > { %1498 = vrot.lane.b32.xlu0 %v1403_v27, %s2050_s6  ;;  %v1870_v23 = vpop.f32.mrb[30].mxu0 }
 0xa95   : > { %v1406_v15 = vpop.f32.mrb[31].mxu0 }
 0xa96   : > { %1500 = vrot.lane.b32.xlu1 %v1406_v15, %s2050_s6 }
 0xa98   : > { %1502 = vrot.lane.b32.xlu0 %v1869_v20, %s2050_s6 }
 0xa9a   : > { %1504 = vrot.lane.b32.xlu1 %v1870_v23, %s2050_s6 }
 0xafd   : > { %v1495_v38 = vpop.permute.xlu0 %1494 }
 0xafe   : > { %v1534_v4 = vsel %vm1531_vm2, %v1525_v61, %v1495_v38 }
 0xaff   : > { %1543 = vst.msk [vmem:[%s2519_s9 + $0x10] sm:$0xff] %vm1540_vm4, %v1534_v4  ;;  %v1497_v1 = vpop.permute.xlu1 %1496 }
 0xb00   : > { %v1535_v13 = vsel %vm1531_vm2, %v1526_v32, %v1497_v1 }
 0xb01   : > { %1544 = vst.msk [vmem:[%s2519_s9 + $0x18] sm:$0xff] %vm1540_vm4, %v1535_v13  ;;  %v1491_v6 = vpop.permute.xlu0 %1490 }
 0xb02   : > { %v1532_v18 = vsel %vm1531_vm2, %v1523_v14, %v1491_v6 }
 0xb03   : > { %1541 = vst.msk [vmem:[%s2519_s9] sm:$0xff] %vm1540_vm4, %v1532_v18  ;;  %v1493_v57 = vpop.permute.xlu1 %1492 }
 0xb04   : > { %v1533_v34 = vsel %vm1531_vm2, %v1524_v19, %v1493_v57 }
 0xb05   : > { %1542 = vst.msk [vmem:[%s2519_s9 + $0x8] sm:$0xff] %vm1540_vm4, %v1533_v34 }
 0xb06   : > { %v1499_v2 = vpop.permute.xlu0 %1498 }
 0xb07   : > { %v1536_v5 = vsel %vm1531_vm2, %v1527_v0, %v1499_v2 }
 0xb08   : > { %1545 = vst.msk [vmem:[%s2519_s9 + $0x20] sm:$0xff] %vm1540_vm4, %v1536_v5  ;;  %v1501_v52 = vpop.permute.xlu1 %1500 }
 0xb09   : > { %v1537_v9 = vsel %vm1531_vm2, %v1528_v22, %v1501_v52 }
 0xb0a   : > { %1546 = vst.msk [vmem:[%s2519_s9 + $0x28] sm:$0xff] %vm1540_vm4, %v1537_v9  ;;  %v1503_v46 = vpop.permute.xlu0 %1502 }
 0xb0b   : > { %v1538_v54 = vsel %vm1531_vm2, %v1529_v53, %v1503_v46 }
 0xb0c   : > { %1547 = vst.msk [vmem:[%s2519_s9 + $0x30] sm:$0xff] %vm1540_vm4, %v1538_v54  ;;  %v1505_v58 = vpop.permute.xlu1 %1504 }
 0xb0d   : > { %v1539_v62 = vsel %vm1531_vm2, %v1530_v56, %v1505_v58 }
 0xb0e   : > { %1548 = vst.msk [vmem:[%s2519_s9 + $0x38] sm:$0xff] %vm1540_vm4, %v1539_v62 }
 0xb0f PF: > { %s13_s12 = sadd.s32 1, %s2039_s12  }
 0xb10   : > { %p10_p4 = scmp.ge.s32.totalorder %s13_s12, 4  }
 0xb12   :  { %12 = sbr.rel (!%p10_p4) target bundleno = 1 (0x1), region = 68 }

// kernel: tile.19
= control target key start
LH: loop header
LB: loop body
LE: loop exit
PB: predicated region body
PF: predicated region fallthrough
CT: control target
= control target key end

     0   :  { %vm47_vm0 = vcmask 1047556   ;;  %vm49_vm1 = vcmask 64512   ;;  %s130_s24 = smov 24   ;;  %s131_s29 = smov 8   ;;  %vm64_vm2 = vcmask 261312   ;;  %vm81_vm3 = vcmask 195712   ;;  %s199_s0 = inlined_call_operand.vmem [shape: f32[9,4,8], index: 0, kind: input, shape index: {}]   ;;  %s200_s1 = inlined_call_operand.vmem [shape: f32[9,32], index: 1, kind: output, shape index: {}]  }
   0x1   :  { %v114_v0 = vld [vmem:[%s199_s0 + $0x20] sm:$0xf]  ;;  %v115_v1 = vld [vmem:[%s199_s0 + $0x1c] sm:$0xf]  ;;  %v116_v2 = vld [vmem:[%s199_s0 + $0x18] sm:$0xf] }
   0x2   :  { %8 = vst [vmem:[#allocation0 + $0x40] sm:$0xf] %v114_v0  ;;  %13 = vst [vmem:[#allocation0 + $0x38] sm:$0xf] %v115_v1  ;;  %v117_v3 = vld [vmem:[%s199_s0 + $0x14] sm:$0xf] }
   0x3   :  { %v118_v4 = vld [vmem:[%s199_s0 + $0x10] sm:$0xf]  ;;  %18 = vst [vmem:[#allocation0 + $0x30] sm:$0xf] %v116_v2  ;;  %23 = vst [vmem:[#allocation0 + $0x28] sm:$0xf] %v117_v3 }
   0x4   :  { %28 = vst [vmem:[#allocation0 + $0x20] sm:$0xf] %v118_v4  ;;  %v119_v5 = vld [vmem:[%s199_s0 + $0xc] sm:$0xf]  ;;  %v120_v6 = vld [vmem:[%s199_s0 + $0x8] sm:$0xf] }
   0x5   :  { %v121_v7 = vld [vmem:[%s199_s0 + $0x4] sm:$0xf]  ;;  %33 = vst [vmem:[#allocation0 + $0x18] sm:$0xf] %v119_v5  ;;  %38 = vst [vmem:[#allocation0 + $0x10] sm:$0xf] %v120_v6 }
   0x6   :  { %42 = vst [vmem:[#allocation0 + $0x8] sm:$0xf] %v121_v7  ;;  %v43_v8 = vld [vmem:[%s199_s0] sm:$0xf]  ;;  %s129_s0 = smov 16   ;;  %vm98_vm4 = vcmask 130112  }
   0x7   :  { %44 = vst [vmem:[#allocation0] sm:$0xf] %v43_v8 }
   0x9   :  { %v84_v9 = vld [vmem:[#allocation0 + $0x42] sm:$0x1]   ;;  %v67_v10 = vld [vmem:[#allocation0 + $0x43] sm:$0x1]   ;;  %v52_v14 = vld [vmem:[#allocation0 + $0x40] sm:$0x1]  }
   0xa   :  { %85 = vrot.lane.b32.xlu1 %v84_v9, %s129_s0  ;;  %68 = vrot.lane.b32.xlu0 %v67_v10, %s130_s24  ;;  %122 = vst.msk [vmem:[%s200_s1 + $0x8] sm:$0x1] %vm49_vm1, %v52_v14   ;;  %v101_v22 = vld [vmem:[#allocation0 + $0x41] sm:$0x1]  }
   0xb   :  { %v76_v11 = vld [vmem:[#allocation0 + $0x2] ss:$8 sm:$0xf0]   ;;  %v59_v12 = vld [vmem:[#allocation0 + $0x3] ss:$8 sm:$0xf0]  }
   0xc   :  { %v93_v13 = vld [vmem:[#allocation0 + $0x1] ss:$8 sm:$0xf0]   ;;  %v46_v21 = vld [vmem:[#allocation0] ss:$8 sm:$0xf0]  }
   0xe   :  { %v74_v15 = vld [vmem:[#allocation0 + $0x2] ss:$8 sm:$0xf]   ;;  %v57_v16 = vld [vmem:[#allocation0 + $0x3] ss:$8 sm:$0xf]  }
   0xf   :  { %v78_v17 = vsel %vm47_vm0, %v76_v11, %v74_v15  ;;  %v61_v18 = vsel %vm47_vm0, %v59_v12, %v57_v16  ;;  %v91_v19 = vld [vmem:[#allocation0 + $0x1] ss:$8 sm:$0xf]   ;;  %v45_v20 = vld [vmem:[#allocation0] ss:$8 sm:$0xf]  }
  0x10   :  { %79 = vrot.lane.b32.xlu1 %v78_v17, %s129_s0  ;;  %62 = vrot.lane.b32.xlu0 %v61_v18, %s130_s24  ;;  %v95_v23 = vsel %vm47_vm0, %v93_v13, %v91_v19  ;;  %v48_v24 = vsel %vm47_vm0, %v46_v21, %v45_v20 }
  0x11   :  { %50 = vst.msk [vmem:[%s200_s1] sm:$0xff] %vm49_vm1, %v48_v24  }
  0x14   :  { %102 = vrot.lane.b32.xlu1 %v101_v22, %s131_s29  ;;  %96 = vrot.lane.b32.xlu0 %v95_v23, %s131_s29 }
  0x7c   :  { %v86_v25 = vpop.permute.xlu1 %85   ;;  %v69_v26 = vpop.permute.xlu0 %68  }
  0x7d   :  { %123 = vst.msk [vmem:[%s200_s1 + $0x8] sm:$0x1] %vm64_vm2, %v69_v26  }
  0x7e   :  { %124 = vst.msk [vmem:[%s200_s1 + $0x8] sm:$0x1] %vm81_vm3, %v86_v25  }
  0x82   :  { %v80_v27 = vpop.permute.xlu1 %79   ;;  %v63_v28 = vpop.permute.xlu0 %62  }
  0x83   :  { %65 = vst.msk [vmem:[%s200_s1] sm:$0xff] %vm64_vm2, %v63_v28  }
  0x84   :  { %82 = vst.msk [vmem:[%s200_s1] sm:$0xff] %vm81_vm3, %v80_v27  }
  0x86   :  { %v103_v29 = vpop.permute.xlu1 %102   ;;  %v97_v30 = vpop.permute.xlu0 %96  }
  0x87   :  { %125 = vst.msk [vmem:[%s200_s1 + $0x8] sm:$0x1] %vm98_vm4, %v103_v29   ;;  %99 = vst.msk [vmem:[%s200_s1] sm:$0xff] %vm98_vm4, %v97_v30  }

// kernel: cnl_forward.11
= control target key start
LH: loop header
LB: loop body
LE: loop exit
PB: predicated region body
PF: predicated region fallthrough
CT: control target
= control target key end

     0   :  { %s688_s24 = smov 0   ;;  %s743_s0 = inlined_call_operand.vmem [shape: f32[2,64,16], index: 0, kind: input, shape index: {}]   ;;  %s744_s1 = inlined_call_operand.vmem [shape: bf16[64,16], index: 1, kind: input, shape index: {}]   ;;  %s745_s2 = inlined_call_operand.vmem [shape: f32[1,16], index: 2, kind: input, shape index: {}]   ;;  %s746_s3 = inlined_call_operand.vmem [shape: f32[1,16], index: 3, kind: input, shape index: {}]   ;;  %s747_s4 = inlined_call_operand.vmem [shape: f32[1,16], index: 4, kind: input, shape index: {}]   ;;  %s748_s5 = inlined_call_operand.vmem [shape: bf16[16,16], index: 5, kind: input, shape index: {}]   ;;  %s749_s6 = inlined_call_operand.vmem [shape: f32[1,16], index: 6, kind: input, shape index: {}]   ;;  %s750_s7 = inlined_call_operand.vmem [shape: f32[2,16,16], index: 7, kind: output, shape index: {}]  }
   0x1 LB: > { %s565_s25 = sadd.s32 4294967295, %s644_s24   ;;  %p569_p0 = scmp.ge.s32.totalorder %s644_s24, 1  ;;  %s644_s24 = sphi %s688_s24, %s17_s24  }
   0x2   : > { %p237_p1 = scmp.lt.s32.totalorder %s644_s24, 3 }
   0x4   : > { %p238_p2 = pnand %p569_p0, %p237_p1 }
   0x5   : > { %p269_p3 = scmp.lt.s32.totalorder (!%p238_p2), %s565_s25, 1  ;;  %v625_v0 = vld [vmem:[%s744_s1] sm:$0xff] (!%p238_p2)   ;;  %v646_v1 = vmov (!%p238_p2), 0.0   ;;  %v626_v2 = vld [vmem:[%s744_s1 + $0x8] sm:$0xff] (!%p238_p2)   ;;  %vm647_vm0 = vmmov (!%p238_p2), 0   ;;  %v627_v3 = vld [vmem:[%s744_s1 + $0x10] sm:$0xff] (!%p238_p2)  }
   0x6   : > { %241 = sbr.rel (%p238_p2) target bundleno = 889 (0x379), region = 48  ;;  %596 = vmatprep.subr.bf16.mxu0 (!%p238_p2), %v646_v1  ;;  %608 = vmatprep.subr.bf16.mxu1 (!%p238_p2), %v646_v1  ;;  %v628_v12 = vld [vmem:[%s744_s1 + $0x18] sm:$0xff] (!%p238_p2)   ;;  %vm347_vm1 = vcmask (!%p238_p2), 523264   ;;  %v574_v18 = vld [vmem:[%s745_s2] ss:$0 sm:$0xff] (!%p238_p2)  ;;  %vm392_vm2 = vcmask (!%p238_p2), 130048  }
   0x7   : > { %597 = vmatpush3.bf16.msra.mxu0 (!%p238_p2), %v625_v0  ;;  %604 = vmatprep.mubr.msk.bf16.mxu0 (!%p238_p2), %vm647_vm0, %v646_v1  ;;  %v629_v37 = vld [vmem:[%s748_s5] sm:$0xff] (!%p238_p2)  }
   0x8   : > { %598 = vmatprep.subr.bf16.mxu0 (!%p238_p2), %v646_v1  ;;  %610 = vmatprep.mubr.msk.bf16.mxu1 (!%p238_p2), %vm647_vm0, %v646_v1  ;;  %v580_v45 = vld [vmem:[%s746_s3] ss:$0 sm:$0xff] (!%p238_p2) }
   0x9   : > { %609 = vmatpush3.bf16.msra.mxu1 (!%p238_p2), %v629_v37  ;;  %v581_v47 = vld [vmem:[%s747_s4] ss:$0 sm:$0xff] (!%p238_p2) }
   0xb   : > { %599 = vmatpush3.bf16.msra.mxu0 (!%p238_p2), %v626_v2 }
   0xc   : > { %600 = vmatprep.subr.bf16.mxu0 (!%p238_p2), %v646_v1 }
   0xd   : > { %s752_s25 = smov (!%p269_p3, %s565_s25), 1 }
   0xe   : > { %s587_s30 = sshll.u32 %s752_s25, 6  ;;  %s588_s23 = sshll.u32 %s752_s25, 4 }
   0xf   : > { %s273_s10 = scalar_lea.vmem %s743_s0, %s587_s30  ;;  %601 = vmatpush3.bf16.msra.mxu0 %v627_v3  ;;  %s278_s30 = scalar_lea.vmem %s750_s7, %s588_s23 }
  0x10   : > { %v280_v4 = vld [vmem:[%s273_s10] sm:$0xff]  ;;  %v281_v5 = vld [vmem:[%s273_s10 + $0x8] sm:$0xff]  ;;  %v282_v6 = vld [vmem:[%s273_s10 + $0x10] sm:$0xff]  ;;  %602 = vmatprep.subr.bf16.mxu0 %v646_v1 }
  0x11   : > { %v288_v7 = vpack.c.bf16 %v281_v5, %v280_v4  ;;  %v283_v8 = vld [vmem:[%s273_s10 + $0x18] sm:$0xff]  ;;  %v284_v10 = vld [vmem:[%s273_s10 + $0x20] sm:$0xff]  ;;  %v285_v11 = vld [vmem:[%s273_s10 + $0x28] sm:$0xff] }
  0x12   : > { %v289_v9 = vpack.c.bf16 %v283_v8, %v282_v6  ;;  %v290_v13 = vpack.c.bf16 %v285_v11, %v284_v10  ;;  %v286_v14 = vld [vmem:[%s273_s10 + $0x30] sm:$0xff]  ;;  %v287_v15 = vld [vmem:[%s273_s10 + $0x38] sm:$0xff]  ;;  %v582_v1 = vld [vmem:[%s749_s6] ss:$0 sm:$0xff] }
  0x13   : > { %307 = vxpose.xlu0.c.b16.start [1/4] (short) (narrow) %v288_v7, 16  ;;  %603 = vmatpush3.bf16.msra.mxu0 %v628_v12  ;;  %v291_v16 = vpack.c.bf16 %v287_v15, %v286_v14 }
  0x17   : > { %308 = vxpose.xlu0.c.b16.cont [2/4] (short) (narrow) %v289_v9, 16 }
  0x1b   : > { %309 = vxpose.xlu0.c.b16.cont [3/4] (short) (narrow) %v290_v13, 16 }
  0x1f   : > { %310 = vxpose.xlu0.c.b16.end [4/4] (short) (narrow) %v291_v16, 16 }
  0x79   : > { %v315_v17 = vpop.trf.xlu0 }
  0x7a   : > { %605 = vmatmul.mubr.msk.bf16.vlgmr.msra.gmra.mrb[0].mxu0 %vm347_vm1, %v315_v17 }
 0x14d   : > { %v385_v19 = vpop.f32.mrb[0].mxu0 }
 0x14e   : > { %v386_v20 = vadd.f32 %v574_v18, %v385_v19  ;;  %v606_v21 = vpop.f32.mrb[1].mxu0 }
 0x14f   : > { %v388_v22 = vpop.f32.mrb[2].mxu0 }
 0x150   : > { %v389_v23 = vadd.f32 %v574_v18, %v388_v22  ;;  %v607_v24 = vpop.f32.mrb[3].mxu0  ;;  %v393_v25 = vsel %vm392_vm2, %v386_v20, 0.0 }
 0x151   : > { %394 = vadd.xlane.f32.xlu1 %v393_v25 }
 0x152   : > { %v396_v26 = vsel %vm392_vm2, %v389_v23, 0.0 }
 0x155   : > { %397 = vadd.xlane.f32.xlu1 %v396_v26 }
 0x1de   : > { %v395_v27 = vpop.xlane.xlu1 %394 }
 0x1df   : > { %v400_v28 = vmul.f32 0.0625, %v395_v27 }
 0x1e1   : > { %v402_v29 = vsub.f32 %v386_v20, %v400_v28 }
 0x1e2   : > { %v398_v30 = vpop.xlane.xlu1 %397 }
 0x1e3   : > { %v401_v31 = vmul.f32 0.0625, %v398_v30  ;;  %v404_v32 = vmul.f32 %v402_v29, %v402_v29 }
 0x1e5   : > { %v403_v33 = vsub.f32 %v389_v23, %v401_v31  ;;  %v406_v34 = vsel %vm392_vm2, %v404_v32, 0.0 }
 0x1e6   : > { %407 = vadd.xlane.f32.xlu1 %v406_v34 }
 0x1e7   : > { %v405_v35 = vmul.f32 %v403_v33, %v403_v33 }
 0x1e9   : > { %v409_v36 = vsel %vm392_vm2, %v405_v35, 0.0 }
 0x1ea   : > { %410 = vadd.xlane.f32.xlu1 %v409_v36 }
 0x273   : > { %v408_v38 = vpop.xlane.xlu1 %407 }
 0x274   : > { %v412_v39 = vmul.f32 0.0625, %v408_v38 }
 0x276   : > { %v414_v40 = vadd.f32 1e-05, %v412_v39 }
 0x277   : > { %v411_v41 = vpop.xlane.xlu1 %410 }
 0x278   : > { %630 = vrsqrt.f32 %v414_v40  ;;  %v413_v42 = vmul.f32 0.0625, %v411_v41 }
 0x27a   : > { %v415_v43 = vadd.f32 1e-05, %v413_v42 }
 0x27c   : > { %632 = vrsqrt.f32 %v415_v43 }
 0x282   : > { %v631_v44 = vpop.eup %630 }
 0x283   : > { %v418_v46 = vmul.f32 %v631_v44, %v402_v29 }
 0x285   : > { %v427_v48 = vmul.f32 %v580_v45, %v418_v46 }
 0x286   : > { %v633_v49 = vpop.eup %632 }
 0x287   : > { %v419_v50 = vmul.f32 %v633_v49, %v403_v33  ;;  %v436_v51 = vadd.f32 %v581_v47, %v427_v48 }
 0x289   : > { %v428_v52 = vmul.f32 %v580_v45, %v419_v50  ;;  %v440_v53 = vmul.f32 0.70710677, %v436_v51  ;;  %v438_v59 = vmul.f32 0.5, %v436_v51 }
 0x28b   : > { %v437_v54 = vadd.f32 %v581_v47, %v428_v52  ;;  %634 = verf.f32 %v440_v53 }
 0x28d   : > { %v441_v55 = vmul.f32 0.70710677, %v437_v54  ;;  %v439_v60 = vmul.f32 0.5, %v437_v54 }
 0x28f   : > { %636 = verf.f32 %v441_v55 }
 0x295   : > { %v635_v56 = vpop.eup %634 }
 0x296   : > { %v444_v57 = vadd.f32 1.0, %v635_v56 }
 0x298   : > { %v446_v62 = vmul.f32 %v444_v57, %v438_v59 }
 0x299   : > { %v637_v58 = vpop.eup %636 }
 0x29a   : > { %v445_v61 = vadd.f32 1.0, %v637_v58 }
 0x29c   : > { %v447_v63 = vmul.f32 %v445_v61, %v439_v60 }
 0x29e   : > { %v448_v0 = vpack.c.bf16 %v447_v63, %v446_v62 }
 0x2a0   : > { %611 = vmatmul.mubr.msk.bf16.vlgmr.msra.gmra.mrb[0].mxu1 %vm392_vm2, %v448_v0 }
 0x373   : > { %v501_v2 = vpop.f32.mrb[0].mxu1 }
 0x374   : > { %v502_v3 = vadd.f32 %v582_v1, %v501_v2  ;;  %v612_v4 = vpop.f32.mrb[1].mxu1 }
 0x375   : > { %v504_v5 = vpop.f32.mrb[2].mxu1 }
 0x376   : > { %508 = vst.msk [vmem:[%s278_s30] sm:$0xff] %vm392_vm2, %v502_v3  ;;  %v505_v6 = vadd.f32 %v582_v1, %v504_v5  ;;  %v613_v7 = vpop.f32.mrb[3].mxu1 }
 0x378   : > { %509 = vst.msk [vmem:[%s278_s30 + $0x8] sm:$0xff] %vm392_vm2, %v505_v6 }
 0x379 PF: > { %s17_s24 = sadd.s32 1, %s644_s24  }
 0x37a   : > { %p14_p4 = scmp.ge.s32.totalorder %s17_s24, 4  }
 0x37c   :  { %16 = sbr.rel (!%p14_p4) target bundleno = 1 (0x1), region = 78 }

// kernel: cnl_forward.13
= control target key start
LH: loop header
LB: loop body
LE: loop exit
PB: predicated region body
PF: predicated region fallthrough
CT: control target
= control target key end

     0   :  { %s411_s12 = smov 0   ;;  %s450_s0 = inlined_call_operand.vmem [shape: f32[2,6,48], index: 0, kind: input, shape index: {}]   ;;  %s451_s1 = inlined_call_operand.vmem [shape: f32[9,32], index: 1, kind: input, shape index: {}]   ;;  %s452_s2 = inlined_call_operand.vmem [shape: f32[1,32], index: 2, kind: input, shape index: {}]   ;;  %s453_s3 = inlined_call_operand.vmem [shape: f32[2,4,32], index: 3, kind: output, shape index: {}]  }
   0x1 LB: > { %s356_s13 = sadd.s32 4294967295, %s385_s12   ;;  %p360_p0 = scmp.ge.s32.totalorder %s385_s12, 1  ;;  %s385_s12 = sphi %s411_s12, %s13_s12  }
   0x2   : > { %p136_p1 = scmp.lt.s32.totalorder %s385_s12, 3 }
   0x4   : > { %p137_p2 = pnand %p360_p0, %p136_p1 }
   0x5   : > { %v169_v0 = vlaneseq (!%p137_p2)  ;;  %v167_v2 = vld [vmem:[%s451_s1] sm:$0xff] (!%p137_p2)  ;;  %s387_s16 = smov (!%p137_p2), 8   ;;  %s388_s17 = smov (!%p137_p2), 16   ;;  %v363_v13 = vld [vmem:[%s451_s1 + $0x8] ss:$0 sm:$0xff] (!%p137_p2)  ;;  %vm301_vm0 = vcmask (!%p137_p2), 258049  }
   0x6   : > { %140 = sbr.rel (%p137_p2) target bundleno = 500 (0x1f4), region = 32  ;;  %p158_p3 = scmp.lt.s32.totalorder (!%p137_p2), %s356_s13, 1  ;;  %v364_v31 = vld [vmem:[%s452_s2] ss:$0 sm:$0xff] (!%p137_p2) }
   0x7   : > { %v170_v1 = vshrl.u32 (!%p137_p2), %v169_v0, 7  ;;  %s389_s24 = smov (!%p137_p2), 120   ;;  %s390_s25 = smov (!%p137_p2), 112  }
   0x9   : > { %v177_v3 = vsub.s32 (!%p137_p2), 1, %v170_v1  ;;  %v214_v4 = vsub.s32 (!%p137_p2), 4, %v170_v1  ;;  %v191_v5 = vsub.s32 (!%p137_p2), 2, %v170_v1  ;;  %v229_v6 = vsub.s32 (!%p137_p2), 5, %v170_v1 }
   0xa   : > { %v253_v11 = vsub.s32 (!%p137_p2), 7, %v170_v1  ;;  %v171_v32 = vsub.s32 (!%p137_p2), 0, %v170_v1  ;;  %v205_v33 = vsub.s32 (!%p137_p2), 3, %v170_v1  ;;  %v244_v36 = vsub.s32 (!%p137_p2), 6, %v170_v1 }
   0xb   : > { %v178_v7 = vrot.slane (!%p137_p2), %v167_v2, %v177_v3  ;;  %v215_v8 = vrot.slane (!%p137_p2), %v167_v2, %v214_v4  ;;  %v192_v9 = vrot.slane (!%p137_p2), %v167_v2, %v191_v5  ;;  %v230_v10 = vrot.slane (!%p137_p2), %v167_v2, %v229_v6 }
   0xc   : > { %v254_v12 = vrot.slane (!%p137_p2), %v167_v2, %v253_v11  ;;  %v172_v34 = vrot.slane (!%p137_p2), %v167_v2, %v171_v32  ;;  %v206_v35 = vrot.slane (!%p137_p2), %v167_v2, %v205_v33  ;;  %v245_v40 = vrot.slane (!%p137_p2), %v167_v2, %v244_v36 }
   0xd   : > { %180 = vrot.lane.b32.xlu0 %v178_v7, %s387_s16  ;;  %217 = vrot.lane.b32.xlu1 %v215_v8, %s387_s16  ;;  %s455_s13 = smov (!%p158_p3, %s356_s13), 1 }
   0xe   : > { %s361_s20 = sshll.u32 %s455_s13, 3  ;;  %s362_s28 = sshll.u32 %s455_s13, 2 }
   0xf   : > { %s161_s23 = scalar_lea.vmem %s450_s0, %s361_s20  ;;  %s165_s4 = scalar_lea.vmem %s453_s3, %s362_s28 }
  0x10   : > { %v166_v14 = vld [vmem:[%s161_s23] sm:$0x3f] }
  0x11   : > { %194 = vrot.lane.b32.xlu0 %v192_v9, %s388_s17  ;;  %232 = vrot.lane.b32.xlu1 %v230_v10, %s388_s17  ;;  %v173_v37 = vmul.f32 %v172_v34, %v166_v14  ;;  %v207_v38 = vmul.f32 %v206_v35, %v166_v14  ;;  %v246_v45 = vmul.f32 %v245_v40, %v166_v14 }
  0x13   : > { %v209_v42 = vrot.slane %v207_v38, 1  ;;  %v248_v50 = vrot.slane %v246_v45, 2 }
  0x15   : > { %256 = vrot.lane.b32.xlu0 %v254_v12, %s387_s16  ;;  %271 = vrot.lane.b32.xlu1 %v363_v13, %s388_s17 }
  0x7f   : > { %v181_v15 = vpop.permute.xlu0 %180  ;;  %v218_v16 = vpop.permute.xlu1 %217 }
  0x80   : > { %v183_v17 = vmul.f32 %v181_v15, %v166_v14  ;;  %v220_v18 = vmul.f32 %v218_v16, %v166_v14 }
  0x82   : > { %185 = vrot.lane.b32.xlu0 %v183_v17, %s389_s24  ;;  %v222_v19 = vrot.slane %v220_v18, 1 }
  0x83   : > { %v195_v20 = vpop.permute.xlu0 %194  ;;  %v233_v21 = vpop.permute.xlu1 %232 }
  0x84   : > { %v197_v22 = vmul.f32 %v195_v20, %v166_v14  ;;  %v235_v23 = vmul.f32 %v233_v21, %v166_v14 }
  0x86   : > { %199 = vrot.lane.b32.xlu1 %v197_v22, %s390_s25  ;;  %v237_v24 = vrot.slane %v235_v23, 1  ;;  %223 = vrot.lane.b32.xlu0 %v222_v19, %s389_s24 }
  0x87   : > { %v257_v25 = vpop.permute.xlu0 %256  ;;  %v272_v26 = vpop.permute.xlu1 %271 }
  0x88   : > { %v259_v27 = vmul.f32 %v257_v25, %v166_v14  ;;  %v274_v28 = vmul.f32 %v272_v26, %v166_v14 }
  0x8a   : > { %v261_v29 = vrot.slane %v259_v27, 2  ;;  %238 = vrot.lane.b32.xlu1 %v237_v24, %s390_s25  ;;  %v276_v30 = vrot.slane %v274_v28, 2 }
  0x8c   : > { %262 = vrot.lane.b32.xlu0 %v261_v29, %s389_s24 }
  0x8e   : > { %277 = vrot.lane.b32.xlu1 %v276_v30, %s390_s25 }
  0x92   : > { %293 = vrot.lane.b32.xlu1 %v364_v31, %s387_s16 }
  0xf4   : > { %v186_v39 = vpop.permute.xlu0 %185 }
  0xf5   : > { %v188_v41 = vadd.f32 %v186_v39, %v173_v37 }
  0xf8   : > { %v200_v43 = vpop.permute.xlu1 %199  ;;  %v224_v47 = vpop.permute.xlu0 %223 }
  0xf9   : > { %v202_v44 = vadd.f32 %v200_v43, %v188_v41 }
  0xfb   : > { %v211_v46 = vadd.f32 %v209_v42, %v202_v44 }
  0xfc   : > { %v239_v48 = vpop.permute.xlu1 %238 }
  0xfd   : > { %v226_v49 = vadd.f32 %v224_v47, %v211_v46 }
  0xfe   : > { %v263_v52 = vpop.permute.xlu0 %262 }
  0xff   : > { %v241_v51 = vadd.f32 %v239_v48, %v226_v49 }
 0x100   : > { %v278_v54 = vpop.permute.xlu1 %277 }
 0x101   : > { %v250_v53 = vadd.f32 %v248_v50, %v241_v51 }
 0x103   : > { %v265_v55 = vadd.f32 %v263_v52, %v250_v53 }
 0x104   : > { %v294_v59 = vpop.permute.xlu1 %293 }
 0x105   : > { %v280_v56 = vadd.f32 %v278_v54, %v265_v55 }
 0x107   : > { %v282_v57 = vrot.slane %v280_v56, 7 }
 0x109   : > { %283 = vrot.lane.b32.xlu0 %v282_v57, %s387_s16 }
 0x17b   : > { %v284_v58 = vpop.permute.xlu0 %283 }
 0x17c   : > { %v286_v60 = vadd.f32 %v284_v58, %v166_v14 }
 0x17e   : > { %v296_v61 = vadd.f32 %v294_v59, %v286_v60 }
 0x180   : > { %298 = vrot.lane.b32.xlu0 %v296_v61, %s389_s24 }
 0x1f2   : > { %v299_v62 = vpop.permute.xlu0 %298 }
 0x1f3   : > { %302 = vst.msk [vmem:[%s165_s4 - $0x1] sm:$0x1e] %vm301_vm0, %v299_v62 }
 0x1f4 PF: > { %s13_s12 = sadd.s32 1, %s385_s12  }
 0x1f5   : > { %p10_p4 = scmp.ge.s32.totalorder %s13_s12, 4  }
 0x1f7   :  { %12 = sbr.rel (!%p10_p4) target bundleno = 1 (0x1), region = 62 }

// kernel: cnl_forward.10
= control target key start
LH: loop header
LB: loop body
LE: loop exit
PB: predicated region body
PF: predicated region fallthrough
CT: control target
= control target key end

     0   :  { %s422_s12 = smov 0   ;;  %s453_s0 = inlined_call_operand.vmem [shape: f32[2,16,64], index: 0, kind: input, shape index: {}]   ;;  %s454_s1 = inlined_call_operand.vmem [shape: bf16[16,32], index: 1, kind: input, shape index: {}]   ;;  %s455_s2 = inlined_call_operand.vmem [shape: f32[1,32], index: 2, kind: input, shape index: {}]   ;;  %s456_s3 = inlined_call_operand.vmem [shape: f32[2,64,32], index: 3, kind: output, shape index: {}]  }
   0x1 LB: > { %s348_s13 = sadd.s32 4294967295, %s400_s12   ;;  %p352_p0 = scmp.ge.s32.totalorder %s400_s12, 1  ;;  %s400_s12 = sphi %s422_s12, %s13_s12  }
   0x2   : > { %p137_p1 = scmp.lt.s32.totalorder %s400_s12, 3 }
   0x4   : > { %p138_p2 = pnand %p352_p0, %p137_p1 }
   0x5   : > { %p161_p3 = scmp.lt.s32.totalorder (!%p138_p2), %s348_s13, 1  ;;  %v393_v0 = vld [vmem:[%s454_s1] sm:$0xff] (!%p138_p2)   ;;  %vm206_vm0 = vcmask (!%p138_p2), 130048   ;;  %vm284_vm1 = vcmask (!%p138_p2), 261120  }
   0x6   : > { %141 = sbr.rel (%p138_p2) target bundleno = 352 (0x160), region = 32  ;;  %372 = vmatprep.subr.bf16.mxu0 (!%p138_p2), %v393_v0  ;;  %382 = vmatprep.subr.bf16.mxu1 (!%p138_p2), %v393_v0  ;;  %v357_v8 = vld [vmem:[%s455_s2] ss:$0 sm:$0xff] (!%p138_p2) }
   0x7   : > { %373 = vmatpush3.bf16.msra.mxu0 (!%p138_p2), %v393_v0  ;;  %383 = vmatpush3.bf16.msra.mxu1 (!%p138_p2), %v393_v0 }
   0xd   : > { %s458_s13 = smov (!%p161_p3, %s348_s13), 1 }
   0xe   : > { %s365_s16 = sshll.u32 %s458_s13, 4  ;;  %s366_s20 = sshll.u32 %s458_s13, 6 }
   0xf   : > { %s165_s19 = scalar_lea.vmem %s453_s0, %s365_s16  ;;  %s170_s25 = scalar_lea.vmem %s456_s3, %s366_s20 }
  0x10   : > { %v172_v1 = vld [vmem:[%s165_s19] sm:$0xff]  ;;  %v173_v2 = vld [vmem:[%s165_s19 + $0x8] sm:$0xff] }
  0x11   : > { %v174_v3 = vpack.c.bf16 %v173_v2, %v172_v1 }
  0x13   : > { %184 = vxpose.xlu0.c.b16.start.end [1/1] (short) (narrow) %v174_v3, 64 }
  0x79   : > { %v192_v4 = vpop.trf.xlu0 }
  0x7a   : > { %374 = vmatprep.mubr.msk.bf16.mxu0 %vm206_vm0, %v192_v4 }
  0x7d   : > { %v193_v5 = vpop.trf.xlu0 }
  0x7e   : > { %375 = vmatmul.mubr.msk.bf16.vlgmr.msra.gmra.mrb[0].mxu0 %vm206_vm0, %v193_v5 }
  0x81   : > { %v194_v6 = vpop.trf.xlu0 }
  0x82   : > { %378 = vmatprep.mubr.msk.bf16.mxu1 %vm206_vm0, %v194_v6 }
  0x85   : > { %v195_v7 = vpop.trf.xlu0 }
  0x86   : > { %379 = vmatmul.mubr.msk.bf16.vlgmr.msra.gmra.mrb[0].mxu1 %vm206_vm0, %v195_v7 }
 0x151   : > { %v376_v9 = vpop.f32.mrb[0].mxu0 }
 0x152   : > { %v262_v10 = vadd.f32 %v376_v9, %v357_v8  ;;  %v253_v11 = vpop.f32.mrb[1].mxu0 }
 0x153   : > { %v254_v12 = vadd.f32 %v357_v8, %v253_v11  ;;  %v377_v13 = vpop.f32.mrb[2].mxu0 }
 0x154   : > { %287 = vst.msk [vmem:[%s170_s25 + $0x10] sm:$0xff] %vm284_vm1, %v262_v10  ;;  %v265_v14 = vadd.f32 %v377_v13, %v357_v8  ;;  %v256_v15 = vpop.f32.mrb[3].mxu0 }
 0x155   : > { %285 = vst.msk [vmem:[%s170_s25] sm:$0xff] %vm284_vm1, %v254_v12  ;;  %v257_v16 = vadd.f32 %v357_v8, %v256_v15 }
 0x156   : > { %288 = vst.msk [vmem:[%s170_s25 + $0x18] sm:$0xff] %vm284_vm1, %v265_v14 }
 0x157   : > { %286 = vst.msk [vmem:[%s170_s25 + $0x8] sm:$0xff] %vm284_vm1, %v257_v16 }
 0x159   : > { %v380_v17 = vpop.f32.mrb[0].mxu1 }
 0x15a   : > { %v278_v18 = vadd.f32 %v380_v17, %v357_v8  ;;  %v269_v19 = vpop.f32.mrb[1].mxu1 }
 0x15b   : > { %v270_v20 = vadd.f32 %v357_v8, %v269_v19  ;;  %v381_v21 = vpop.f32.mrb[2].mxu1 }
 0x15c   : > { %291 = vst.msk [vmem:[%s170_s25 + $0x30] sm:$0xff] %vm284_vm1, %v278_v18  ;;  %v281_v22 = vadd.f32 %v381_v21, %v357_v8  ;;  %v272_v23 = vpop.f32.mrb[3].mxu1 }
 0x15d   : > { %289 = vst.msk [vmem:[%s170_s25 + $0x20] sm:$0xff] %vm284_vm1, %v270_v20  ;;  %v273_v24 = vadd.f32 %v357_v8, %v272_v23 }
 0x15e   : > { %292 = vst.msk [vmem:[%s170_s25 + $0x38] sm:$0xff] %vm284_vm1, %v281_v22 }
 0x15f   : > { %290 = vst.msk [vmem:[%s170_s25 + $0x28] sm:$0xff] %vm284_vm1, %v273_v24 }
 0x160 PF: > { %s13_s12 = sadd.s32 1, %s400_s12  }
 0x161   : > { %p10_p4 = scmp.ge.s32.totalorder %s13_s12, 4  }
 0x163   :  { %12 = sbr.rel (!%p10_p4) target bundleno = 1 (0x1), region = 62 }

// kernel: cnl_forward.15
= control target key start
LH: loop header
LB: loop body
LE: loop exit
PB: predicated region body
PF: predicated region fallthrough
CT: control target
= control target key end

     0   :  { %s1866_s12 = smov 0   ;;  %s2351_s0 = inlined_call_operand.vmem [shape: f32[2,64,32], index: 0, kind: input, shape index: {}]   ;;  %s2352_s1 = inlined_call_operand.vmem [shape: f32[2,16,16], index: 1, kind: input, shape index: {}]   ;;  %s2353_s2 = inlined_call_operand.vmem [shape: f32[2,16,8], index: 2, kind: input, shape index: {}]   ;;  %s2354_s3 = inlined_call_operand.vmem [shape: f32[2,64,8], index: 3, kind: output, shape index: {}]  }
   0x1 LB: > { %s1515_s13 = sadd.s32 4294967295, %s1838_s12   ;;  %p1519_p0 = scmp.ge.s32.totalorder %s1838_s12, 1  ;;  %s1838_s12 = sphi %s1866_s12, %s13_s12  }
   0x2   : > { %p157_p1 = scmp.lt.s32.totalorder %s1838_s12, 3 }
   0x4   : > { %p158_p2 = pnand %p1519_p0, %p157_p1 }
   0x5   : > { %p191_p3 = scmp.lt.s32.totalorder (!%p158_p2), %s1515_s13, 1  ;;  %vm230_vm0 = vcmask (!%p158_p2), 15360   ;;  %vm319_vm1 = vcmask (!%p158_p2), 130048   ;;  %s1840_s25 = smov (!%p158_p2), 126   ;;  %vm1409_vm2 = vcmask (!%p158_p2), 31744   ;;  %vm1418_vm3 = vcmask (!%p158_p2), 48128  }
   0x6   : > { %161 = sbr.rel (%p158_p2) target bundleno = 1528 (0x5f8), region = 32  ;;  %s1841_s26 = smov (!%p158_p2), 124   ;;  %vm1427_vm4 = vcmask (!%p158_p2), 64512  }
   0x7   : > { %s1842_s27 = smov (!%p158_p2), 122   ;;  %s1843_s28 = smov (!%p158_p2), 2  }
   0x8   : > { %s1844_s29 = smov (!%p158_p2), 4   ;;  %s1845_s30 = smov (!%p158_p2), 6  }
   0xd   : > { %s2356_s13 = smov (!%p191_p3, %s1515_s13), 1 }
   0xe   : > { %s1562_s14 = sshll.u32 %s2356_s13, 6  ;;  %s1563_s15 = sshll.u32 %s2356_s13, 4 }
   0xf   : > { %s195_s18 = scalar_lea.vmem %s2351_s0, %s1562_s14  ;;  %s200_s21 = scalar_lea.vmem %s2352_s1, %s1563_s15 }
  0x10   : > { %v220_v0 = vld [vmem:[%s200_s21] sm:$0xff]  ;;  %v221_v1 = vld [vmem:[%s200_s21 + $0x8] sm:$0xff]  ;;  %v214_v7 = vld [vmem:[%s195_s18 + $0x10] sm:$0xff]  ;;  %s205_s24 = scalar_lea.vmem %s2353_s2, %s1563_s15  ;;  %s2300_s6 = scalar_lea.vmem %s2354_s3, %s1562_s14 }
  0x11   : > { %v212_v2 = vld [vmem:[%s195_s18] sm:$0xff]  ;;  %v1888_v3 = vpack.c.bf16 %v221_v1, %v220_v0  ;;  %v213_v4 = vld [vmem:[%s195_s18 + $0x8] sm:$0xff]  ;;  %v215_v8 = vld [vmem:[%s195_s18 + $0x18] sm:$0xff] }
  0x12   : > { %v1890_v5 = vpack.c.bf16 %v213_v4, %v212_v2  ;;  %v216_v9 = vld [vmem:[%s195_s18 + $0x20] sm:$0xff]  ;;  %v217_v10 = vld [vmem:[%s195_s18 + $0x28] sm:$0xff]  ;;  %v1898_v11 = vpack.c.bf16 %v215_v8, %v214_v7  ;;  %v218_v13 = vld [vmem:[%s195_s18 + $0x30] sm:$0xff] }
  0x13   : > { %1686 = vmatprep.subr.msk.bf16.mxu0 %vm230_vm0, %v1888_v3  ;;  %v244_v6 = vsel %vm230_vm0, %v1888_v3, 0  ;;  %v1900_v12 = vpack.c.bf16 %v217_v10, %v216_v9  ;;  %v219_v14 = vld [vmem:[%s195_s18 + $0x38] sm:$0xff] }
  0x14   : > { %1607 = vmatpush3.bf16.xpose.msra.mxu0 %v244_v6  ;;  %1608 = vmatprep.mubr.msk.bf16.mxu0 %vm230_vm0, %v1890_v5  ;;  %v1906_v15 = vpack.c.bf16 %v219_v14, %v218_v13 }
  0x1b   : > { %1609 = vmatmul.mubr.msk.bf16.vlgmr.msra.gmra.mrb[0].mxu0 %vm230_vm0, %v1898_v11 }
  0x1c   : > { %1612 = vmatprep.mubr.msk.bf16.mxu0 %vm230_vm0, %v1900_v12 }
  0x23   : > { %1613 = vmatmul.mubr.msk.bf16.gmra.mrb[4].mxu0 %vm230_vm0, %v1906_v15 }
  0xee   : > { %v1610_v16 = vpop.f32.mrb[0].mxu0 }
  0xef   : > { %v313_v17 = vmul.f32 0.25, %v1610_v16  ;;  %v280_v18 = vpop.f32.mrb[1].mxu0 }
  0xf0   : > { %v311_v19 = vmul.f32 0.25, %v280_v18  ;;  %v1611_v20 = vpop.f32.mrb[2].mxu0 }
  0xf1   : > { %v314_v21 = vmul.f32 0.25, %v1611_v20  ;;  %v283_v22 = vpop.f32.mrb[3].mxu0  ;;  %v326_v23 = vsel %vm319_vm1, %v313_v17, -inf }
  0xf2   : > { %v312_v24 = vmul.f32 0.25, %v283_v22  ;;  %327 = vmax.xlane.f32.xlu1 %v326_v23  ;;  %v320_v25 = vsel %vm319_vm1, %v311_v19, -inf  ;;  %v223_v22 = vld [vmem:[%s205_s24 + $0x8] sm:$0xff] }
  0xf3   : > { %321 = vmax.xlane.f32.xlu0 %v320_v25  ;;  %v329_v26 = vsel %vm319_vm1, %v314_v21, -inf }
  0xf4   : > { %v323_v28 = vsel %vm319_vm1, %v312_v24, -inf }
  0xf6   : > { %330 = vmax.xlane.f32.xlu1 %v329_v26  ;;  %v1614_v27 = vpop.f32.mrb[4].mxu0 }
  0xf7   : > { %324 = vmax.xlane.f32.xlu0 %v323_v28  ;;  %v296_v29 = vpop.f32.mrb[5].mxu0  ;;  %v317_v33 = vmul.f32 0.25, %v1614_v27 }
  0xf8   : > { %v315_v30 = vmul.f32 0.25, %v296_v29  ;;  %v1615_v31 = vpop.f32.mrb[6].mxu0 }
  0xf9   : > { %v299_v32 = vpop.f32.mrb[7].mxu0  ;;  %v318_v36 = vmul.f32 0.25, %v1615_v31  ;;  %v338_v38 = vsel %vm319_vm1, %v317_v33, -inf }
  0xfa   : > { %v316_v34 = vmul.f32 0.25, %v299_v32  ;;  %v332_v35 = vsel %vm319_vm1, %v315_v30, -inf }
  0xfb   : > { %333 = vmax.xlane.f32.xlu0 %v332_v35  ;;  %v341_v39 = vsel %vm319_vm1, %v318_v36, -inf }
  0xfc   : > { %v335_v37 = vsel %vm319_vm1, %v316_v34, -inf }
  0xfd   : > { %336 = vmax.xlane.f32.xlu1 %v335_v37 }
  0xff   : > { %339 = vmax.xlane.f32.xlu0 %v338_v38 }
 0x101   : > { %342 = vmax.xlane.f32.xlu1 %v341_v39 }
 0x17f   : > { %v328_v40 = vpop.xlane.xlu1 %327 }
 0x180   : > { %v346_v41 = vsub.f32 %v313_v17, %v328_v40  ;;  %v322_v42 = vpop.xlane.xlu0 %321 }
 0x181   : > { %v344_v43 = vsub.f32 %v311_v19, %v322_v42 }
 0x182   : > { %v356_v44 = vmul.f32 1.442695, %v346_v41 }
 0x183   : > { %v352_v45 = vmul.f32 1.442695, %v344_v43  ;;  %v331_v46 = vpop.xlane.xlu1 %330 }
 0x184   : > { %1704 = vpow2.f32 %v356_v44  ;;  %v347_v47 = vsub.f32 %v314_v21, %v331_v46  ;;  %v325_v48 = vpop.xlane.xlu0 %324  ;;  %v222_v21 = vld [vmem:[%s205_s24] sm:$0xff] }
 0x185   : > { %v345_v49 = vsub.f32 %v312_v24, %v325_v48  ;;  %1706 = vpow2.f32 %v352_v45  ;;  %v1955_v23 = vpack.c.bf16 %v223_v22, %v222_v21 }
 0x186   : > { %v358_v50 = vmul.f32 1.442695, %v347_v47 }
 0x187   : > { %v354_v51 = vmul.f32 1.442695, %v345_v49  ;;  %1616 = vmatprep.subr.bf16.mxu1 %v1955_v23 }
 0x188   : > { %1708 = vpow2.f32 %v358_v50  ;;  %v334_v52 = vpop.xlane.xlu0 %333  ;;  %1617 = vmatpush3.bf16.msra.mxu1 %v1955_v23 }
 0x189   : > { %1710 = vpow2.f32 %v354_v51  ;;  %v348_v53 = vsub.f32 %v315_v30, %v334_v52 }
 0x18a   : > { %v337_v54 = vpop.xlane.xlu1 %336 }
 0x18b   : > { %v349_v56 = vsub.f32 %v316_v34, %v337_v54  ;;  %v360_v59 = vmul.f32 1.442695, %v348_v53 }
 0x18c   : > { %v340_v55 = vpop.xlane.xlu0 %339 }
 0x18d   : > { %v350_v57 = vsub.f32 %v317_v33, %v340_v55  ;;  %v362_v1 = vmul.f32 1.442695, %v349_v56 }
 0x18e   : > { %v1918_v58 = vpop.eup %1704  ;;  %v343_v60 = vpop.xlane.xlu1 %342 }
 0x18f   : > { %v364_v61 = vmul.f32 1.442695, %v350_v57  ;;  %v351_v62 = vsub.f32 %v318_v36, %v343_v60  ;;  %v374_v63 = vsel %vm319_vm1, %v1918_v58, 0.0  ;;  %v1922_v0 = vpop.eup %1706 }
 0x190   : > { %375 = vadd.xlane.f32.xlu0 %v374_v63  ;;  %v368_v6 = vsel %vm319_vm1, %v1922_v0, 0.0 }
 0x191   : > { %1712 = vpow2.f32 %v364_v61  ;;  %v366_v2 = vmul.f32 1.442695, %v351_v62 }
 0x192   : > { %v1924_v4 = vpop.eup %1708  ;;  %1714 = vpow2.f32 %v360_v59 }
 0x193   : > { %1716 = vpow2.f32 %v366_v2  ;;  %v377_v7 = vsel %vm319_vm1, %v1924_v4, 0.0  ;;  %v1930_v8 = vpop.eup %1710 }
 0x194   : > { %369 = vadd.xlane.f32.xlu0 %v368_v6  ;;  %378 = vadd.xlane.f32.xlu1 %v377_v7  ;;  %1718 = vpow2.f32 %v362_v1  ;;  %v371_v9 = vsel %vm319_vm1, %v1930_v8, 0.0 }
 0x198   : > { %372 = vadd.xlane.f32.xlu1 %v371_v9 }
 0x19b   : > { %v1934_v10 = vpop.eup %1712 }
 0x19c   : > { %v1936_v13 = vpop.eup %1714  ;;  %v386_v14 = vsel %vm319_vm1, %v1934_v10, 0.0 }
 0x19d   : > { %v1940_v16 = vpop.eup %1716  ;;  %387 = vadd.xlane.f32.xlu0 %v386_v14  ;;  %v380_v19 = vsel %vm319_vm1, %v1936_v13, 0.0 }
 0x19e   : > { %v389_v17 = vsel %vm319_vm1, %v1940_v16, 0.0  ;;  %v1944_v18 = vpop.eup %1718 }
 0x19f   : > { %390 = vadd.xlane.f32.xlu1 %v389_v17  ;;  %v383_v20 = vsel %vm319_vm1, %v1944_v18, 0.0 }
 0x1a1   : > { %381 = vadd.xlane.f32.xlu0 %v380_v19 }
 0x1a3   : > { %384 = vadd.xlane.f32.xlu1 %v383_v20 }
 0x1b4   : > { %493 = vrot.lane.b32.xlu1 %v1890_v5, %s1840_s25 }
 0x1b7   : > { %502 = vrot.lane.b32.xlu0 %v1888_v3, %s1840_s25 }
 0x1b8   : > { %495 = vrot.lane.b32.xlu1 %v1898_v11, %s1840_s25 }
 0x1bb   : > { %499 = vrot.lane.b32.xlu0 %v1906_v15, %s1840_s25 }
 0x1bc   : > { %497 = vrot.lane.b32.xlu1 %v1900_v12, %s1840_s25 }
 0x1bf   : > { %765 = vrot.lane.b32.xlu0 %v1890_v5, %s1841_s26 }
 0x1c0   : > { %773 = vrot.lane.b32.xlu1 %v1888_v3, %s1841_s26 }
 0x1c3   : > { %769 = vrot.lane.b32.xlu0 %v1900_v12, %s1841_s26 }
 0x1c4   : > { %767 = vrot.lane.b32.xlu1 %v1898_v11, %s1841_s26 }
 0x1c7   : > { %1043 = vrot.lane.b32.xlu0 %v1888_v3, %s1842_s27 }
 0x1c8   : > { %771 = vrot.lane.b32.xlu1 %v1906_v15, %s1841_s26 }
 0x1cb   : > { %1037 = vrot.lane.b32.xlu0 %v1898_v11, %s1842_s27 }
 0x1cc   : > { %1035 = vrot.lane.b32.xlu1 %v1890_v5, %s1842_s27 }
 0x1cf   : > { %1041 = vrot.lane.b32.xlu0 %v1906_v15, %s1842_s27 }
 0x1d0   : > { %1039 = vrot.lane.b32.xlu1 %v1900_v12, %s1842_s27 }
 0x21d   : > { %v376_v24 = vpop.xlane.xlu0 %375 }
 0x221   : > { %v370_v25 = vpop.xlane.xlu0 %369  ;;  %v379_v26 = vpop.xlane.xlu1 %378 }
 0x222   : > { %1720 = vrcp.f32 %v379_v26 }
 0x223   : > { %1722 = vrcp.f32 %v370_v25 }
 0x224   : > { %1724 = vrcp.f32 %v376_v24 }
 0x225   : > { %v373_v3 = vpop.xlane.xlu1 %372 }
 0x226   : > { %1726 = vrcp.f32 %v373_v3 }
 0x22a   : > { %v388_v27 = vpop.xlane.xlu0 %387 }
 0x22c   : > { %v391_v28 = vpop.xlane.xlu1 %390  ;;  %v1721_v11 = vpop.eup %1720 }
 0x22d   : > { %v1723_v29 = vpop.eup %1722  ;;  %1728 = vrcp.f32 %v391_v28  ;;  %v403_v12 = vmul.f32 %v1721_v11, %v1924_v4 }
 0x22e   : > { %v382_v5 = vpop.xlane.xlu0 %381  ;;  %v1725_v30 = vpop.eup %1724  ;;  %v400_v32 = vmul.f32 %v1723_v29, %v1922_v0 }
 0x22f   : > { %1730 = vrcp.f32 %v382_v5  ;;  %v402_v34 = vmul.f32 %v1725_v30, %v1918_v58 }
 0x230   : > { %v1727_v15 = vpop.eup %1726  ;;  %1732 = vrcp.f32 %v388_v27  ;;  %v385_v31 = vpop.xlane.xlu1 %384 }
 0x231   : > { %1734 = vrcp.f32 %v385_v31  ;;  %v401_v33 = vmul.f32 %v1727_v15, %v1930_v8  ;;  %v409_v37 = vpack.c.bf16 %v403_v12, %v402_v34 }
 0x232   : > { %v503_v35 = vpop.permute.xlu0 %502 }
 0x233   : > { %v408_v36 = vpack.c.bf16 %v401_v33, %v400_v32  ;;  %1687 = vmatprep.subr.msk.bf16.mxu1 %vm230_vm0, %v503_v35  ;;  %v517_v38 = vsel %vm230_vm0, %v503_v35, 0 }
 0x234   : > { %v494_v39 = vpop.permute.xlu1 %493 }
 0x235   : > { %1618 = vmatprep.mubr.msk.bf16.mxu1 %vm319_vm1, %v408_v36 }
 0x236   : > { %1619 = vmatmul.mubr.msk.bf16.vlgmr.msra.gmra.mrb[0].mxu1 %vm319_vm1, %v409_v37  ;;  %v500_v42 = vpop.permute.xlu0 %499 }
 0x237   : > { %1627 = vmatpush3.bf16.xpose.msra.mxu1 %v517_v38  ;;  %v1729_v40 = vpop.eup %1728 }
 0x238   : > { %v496_v41 = vpop.permute.xlu1 %495  ;;  %v407_v46 = vmul.f32 %v1729_v40, %v1940_v16 }
 0x239   : > { %v1731_v43 = vpop.eup %1730 }
 0x23a   : > { %v1733_v44 = vpop.eup %1732  ;;  %v404_v47 = vmul.f32 %v1731_v43, %v1936_v13  ;;  %v766_v50 = vpop.permute.xlu0 %765 }
 0x23b   : > { %v1735_v45 = vpop.eup %1734  ;;  %v406_v51 = vmul.f32 %v1733_v44, %v1934_v10 }
 0x23c   : > { %v405_v48 = vmul.f32 %v1735_v45, %v1944_v18  ;;  %v498_v49 = vpop.permute.xlu1 %497 }
 0x23d   : > { %v411_v53 = vpack.c.bf16 %v407_v46, %v406_v51 }
 0x23e   : > { %v410_v52 = vpack.c.bf16 %v405_v48, %v404_v47  ;;  %v770_v55 = vpop.permute.xlu0 %769 }
 0x240   : > { %1622 = vmatprep.mubr.msk.bf16.mxu1 %vm319_vm1, %v410_v52  ;;  %v774_v54 = vpop.permute.xlu1 %773 }
 0x241   : > { %1623 = vmatmul.mubr.msk.bf16.gmra.mrb[4].mxu1 %vm319_vm1, %v411_v53  ;;  %1688 = vmatprep.subr.msk.bf16.mxu1 %vm230_vm0, %v774_v54  ;;  %v788_v56 = vsel %vm230_vm0, %v774_v54, 0 }
 0x242   : > { %1628 = vmatprep.mubr.msk.bf16.mxu1 %vm230_vm0, %v494_v39  ;;  %v1044_v57 = vpop.permute.xlu0 %1043 }
 0x243   : > { %v1058_v59 = vsel %vm230_vm0, %v1044_v57, 0 }
 0x244   : > { %v768_v58 = vpop.permute.xlu1 %767 }
 0x246   : > { %v1038_v62 = vpop.permute.xlu0 %1037 }
 0x248   : > { %v772_v60 = vpop.permute.xlu1 %771 }
 0x249   : > { %1629 = vmatmul.mubr.msk.bf16.vlgmr.msra.gmra.mrb[8].mxu1 %vm230_vm0, %v496_v41 }
 0x24a   : > { %1632 = vmatprep.mubr.msk.bf16.mxu1 %vm230_vm0, %v498_v49  ;;  %1647 = vmatpush3.bf16.xpose.msra.mxu1 %v788_v56  ;;  %v1042_v0 = vpop.permute.xlu0 %1041 }
 0x24b   : > { %1689 = vmatprep.subr.msk.bf16.mxu1 %vm230_vm0, %v1044_v57 }
 0x24c   : > { %v1036_v61 = vpop.permute.xlu1 %1035 }
 0x250   : > { %v1040_v63 = vpop.permute.xlu1 %1039 }
 0x251   : > { %1633 = vmatmul.mubr.msk.bf16.gmra.mrb[12].mxu1 %vm230_vm0, %v500_v42 }
 0x252   : > { %1648 = vmatprep.mubr.msk.bf16.mxu1 %vm230_vm0, %v766_v50 }
 0x259   : > { %1649 = vmatmul.mubr.msk.bf16.vlgmr.msra.gmra.mrb[16].mxu1 %vm230_vm0, %v768_v58 }
 0x25a   : > { %1652 = vmatprep.mubr.msk.bf16.mxu1 %vm230_vm0, %v770_v55  ;;  %1667 = vmatpush3.bf16.xpose.msra.mxu1 %v1058_v59 }
 0x261   : > { %1653 = vmatmul.mubr.msk.bf16.gmra.mrb[20].mxu1 %vm230_vm0, %v772_v60 }
 0x262   : > { %1668 = vmatprep.mubr.msk.bf16.mxu1 %vm230_vm0, %v1036_v61 }
 0x269   : > { %1669 = vmatmul.mubr.msk.bf16.vlgmr.msra.gmra.mrb[24].mxu1 %vm230_vm0, %v1038_v62 }
 0x26a   : > { %1672 = vmatprep.mubr.msk.bf16.mxu1 %vm230_vm0, %v1040_v63 }
 0x271   : > { %1673 = vmatmul.mubr.msk.bf16.gmra.mrb[28].mxu1 %vm230_vm0, %v1042_v0 }
 0x309   : > { %v2019_v1 = vpop.f32.mrb[0].mxu1 }
 0x30a   : > { %v2021_v2 = vpop.f32.mrb[1].mxu1 }
 0x30b   : > { %v2023_v4 = vpop.f32.mrb[2].mxu1 }
 0x30c   : > { %v2025_v6 = vpop.f32.mrb[3].mxu1 }
 0x314   : > { %v2027_v7 = vpop.f32.mrb[4].mxu1 }
 0x315   : > { %v2029_v8 = vpop.f32.mrb[5].mxu1 }
 0x316   : > { %v2031_v9 = vpop.f32.mrb[6].mxu1 }
 0x317   : > { %v2033_v10 = vpop.f32.mrb[7].mxu1 }
 0x31c   : > { %v1630_v13 = vpop.f32.mrb[8].mxu1 }
 0x31d   : > { %v2035_v14 = vmul.f32 0.25, %v1630_v13  ;;  %v553_v16 = vpop.f32.mrb[9].mxu1 }
 0x31e   : > { %v2037_v17 = vmul.f32 0.25, %v553_v16  ;;  %v1631_v18 = vpop.f32.mrb[10].mxu1 }
 0x31f   : > { %v2039_v19 = vmul.f32 0.25, %v1631_v18  ;;  %v556_v20 = vpop.f32.mrb[11].mxu1  ;;  %v598_v21 = vsel %vm319_vm1, %v2035_v14, -inf }
 0x320   : > { %599 = vmax.xlane.f32.xlu0 %v598_v21  ;;  %v592_v22 = vsel %vm319_vm1, %v2037_v17, -inf  ;;  %v2045_v24 = vmul.f32 0.25, %v556_v20 }
 0x321   : > { %593 = vmax.xlane.f32.xlu1 %v592_v22  ;;  %v601_v25 = vsel %vm319_vm1, %v2039_v19, -inf }
 0x322   : > { %v595_v30 = vsel %vm319_vm1, %v2045_v24, -inf }
 0x324   : > { %602 = vmax.xlane.f32.xlu0 %v601_v25  ;;  %v1634_v26 = vpop.f32.mrb[12].mxu1 }
 0x325   : > { %v2049_v3 = vmul.f32 0.25, %v1634_v26  ;;  %v569_v27 = vpop.f32.mrb[13].mxu1 }
 0x326   : > { %v1635_v28 = vpop.f32.mrb[14].mxu1  ;;  %v2051_v11 = vmul.f32 0.25, %v569_v27 }
 0x327   : > { %v2053_v29 = vmul.f32 0.25, %v1635_v28  ;;  %v572_v5 = vpop.f32.mrb[15].mxu1  ;;  %v610_v15 = vsel %vm319_vm1, %v2049_v3, -inf }
 0x328   : > { %596 = vmax.xlane.f32.xlu0 %v595_v30  ;;  %611 = vmax.xlane.f32.xlu1 %v610_v15  ;;  %v2059_v31 = vmul.f32 0.25, %v572_v5  ;;  %v604_v12 = vsel %vm319_vm1, %v2051_v11, -inf }
 0x329   : > { %v613_v32 = vsel %vm319_vm1, %v2053_v29, -inf }
 0x32a   : > { %v607_v40 = vsel %vm319_vm1, %v2059_v31, -inf }
 0x32c   : > { %605 = vmax.xlane.f32.xlu1 %v604_v12  ;;  %614 = vmax.xlane.f32.xlu0 %v613_v32  ;;  %v1650_v33 = vpop.f32.mrb[16].mxu1 }
 0x32d   : > { %v2065_v34 = vmul.f32 0.25, %v1650_v33  ;;  %v824_v35 = vpop.f32.mrb[17].mxu1 }
 0x32e   : > { %v1651_v36 = vpop.f32.mrb[18].mxu1  ;;  %v2067_v37 = vmul.f32 0.25, %v824_v35 }
 0x32f   : > { %v2069_v38 = vmul.f32 0.25, %v1651_v36  ;;  %v827_v39 = vpop.f32.mrb[19].mxu1  ;;  %v869_v41 = vsel %vm319_vm1, %v2065_v34, -inf }
 0x330   : > { %608 = vmax.xlane.f32.xlu0 %v607_v40  ;;  %870 = vmax.xlane.f32.xlu1 %v869_v41  ;;  %v2075_v42 = vmul.f32 0.25, %v827_v39  ;;  %v863_v43 = vsel %vm319_vm1, %v2067_v37, -inf }
 0x331   : > { %v872_v44 = vsel %vm319_vm1, %v2069_v38, -inf }
 0x332   : > { %v866_v52 = vsel %vm319_vm1, %v2075_v42, -inf }
 0x334   : > { %864 = vmax.xlane.f32.xlu1 %v863_v43  ;;  %873 = vmax.xlane.f32.xlu0 %v872_v44  ;;  %v1654_v45 = vpop.f32.mrb[20].mxu1 }
 0x335   : > { %v2081_v46 = vmul.f32 0.25, %v1654_v45  ;;  %v840_v47 = vpop.f32.mrb[21].mxu1 }
 0x336   : > { %v1655_v48 = vpop.f32.mrb[22].mxu1  ;;  %v2083_v49 = vmul.f32 0.25, %v840_v47 }
 0x337   : > { %v2085_v50 = vmul.f32 0.25, %v1655_v48  ;;  %v843_v51 = vpop.f32.mrb[23].mxu1  ;;  %v881_v53 = vsel %vm319_vm1, %v2081_v46, -inf }
 0x338   : > { %867 = vmax.xlane.f32.xlu0 %v866_v52  ;;  %882 = vmax.xlane.f32.xlu1 %v881_v53  ;;  %v2091_v54 = vmul.f32 0.25, %v843_v51  ;;  %v875_v55 = vsel %vm319_vm1, %v2083_v49, -inf }
 0x339   : > { %v884_v56 = vsel %vm319_vm1, %v2085_v50, -inf }
 0x33a   : > { %v878_v63 = vsel %vm319_vm1, %v2091_v54, -inf }
 0x33c   : > { %876 = vmax.xlane.f32.xlu1 %v875_v55  ;;  %885 = vmax.xlane.f32.xlu0 %v884_v56  ;;  %v1670_v57 = vpop.f32.mrb[24].mxu1 }
 0x33d   : > { %v2097_v58 = vmul.f32 0.25, %v1670_v57  ;;  %v1094_v59 = vpop.f32.mrb[25].mxu1 }
 0x33e   : > { %v2099_v60 = vmul.f32 0.25, %v1094_v59  ;;  %v1671_v61 = vpop.f32.mrb[26].mxu1 }
 0x33f   : > { %v2101_v62 = vmul.f32 0.25, %v1671_v61  ;;  %v1139_v0 = vsel %vm319_vm1, %v2097_v58, -inf  ;;  %v1097_v13 = vpop.f32.mrb[27].mxu1 }
 0x340   : > { %879 = vmax.xlane.f32.xlu0 %v878_v63  ;;  %1140 = vmax.xlane.f32.xlu1 %v1139_v0  ;;  %v1133_v16 = vsel %vm319_vm1, %v2099_v60, -inf  ;;  %v2111_v20 = vmul.f32 0.25, %v1097_v13 }
 0x341   : > { %v1142_v18 = vsel %vm319_vm1, %v2101_v62, -inf }
 0x342   : > { %v1136_v28 = vsel %vm319_vm1, %v2111_v20, -inf }
 0x344   : > { %1134 = vmax.xlane.f32.xlu1 %v1133_v16  ;;  %1143 = vmax.xlane.f32.xlu0 %v1142_v18  ;;  %v1674_v21 = vpop.f32.mrb[28].mxu1 }
 0x345   : > { %v2113_v22 = vmul.f32 0.25, %v1674_v21  ;;  %v1110_v25 = vpop.f32.mrb[29].mxu1 }
 0x346   : > { %v2115_v26 = vmul.f32 0.25, %v1110_v25  ;;  %v1675_v27 = vpop.f32.mrb[30].mxu1 }
 0x347   : > { %v1151_v5 = vsel %vm319_vm1, %v2113_v22, -inf  ;;  %v2121_v30 = vmul.f32 0.25, %v1675_v27  ;;  %v1113_v15 = vpop.f32.mrb[31].mxu1 }
 0x348   : > { %1137 = vmax.xlane.f32.xlu0 %v1136_v28  ;;  %1152 = vmax.xlane.f32.xlu1 %v1151_v5  ;;  %v1145_v12 = vsel %vm319_vm1, %v2115_v26, -inf  ;;  %v2127_v33 = vmul.f32 0.25, %v1113_v15 }
 0x349   : > { %v1154_v32 = vsel %vm319_vm1, %v2121_v30, -inf }
 0x34a   : > { %v1148_v35 = vsel %vm319_vm1, %v2127_v33, -inf }
 0x34c   : > { %1146 = vmax.xlane.f32.xlu1 %v1145_v12  ;;  %1155 = vmax.xlane.f32.xlu0 %v1154_v32 }
 0x350   : > { %1149 = vmax.xlane.f32.xlu0 %v1148_v35 }
 0x35d   : > { %685 = vrot.lane.b32.xlu1 %v1955_v23, %s1840_s25 }
 0x3ad   : > { %v600_v36 = vpop.xlane.xlu0 %599 }
 0x3ae   : > { %v618_v39 = vsub.f32 %v2035_v14, %v600_v36  ;;  %v594_v40 = vpop.xlane.xlu1 %593 }
 0x3af   : > { %v616_v41 = vsub.f32 %v2037_v17, %v594_v40 }
 0x3b0   : > { %v628_v43 = vmul.f32 1.442695, %v618_v39 }
 0x3b1   : > { %v624_v44 = vmul.f32 1.442695, %v616_v41  ;;  %v603_v45 = vpop.xlane.xlu0 %602 }
 0x3b2   : > { %1736 = vpow2.f32 %v628_v43  ;;  %v619_v47 = vsub.f32 %v2039_v19, %v603_v45 }
 0x3b3   : > { %1738 = vpow2.f32 %v624_v44 }
 0x3b4   : > { %v630_v48 = vmul.f32 1.442695, %v619_v47 }
 0x3b5   : > { %v597_v51 = vpop.xlane.xlu0 %596  ;;  %v612_v52 = vpop.xlane.xlu1 %611 }
 0x3b6   : > { %1740 = vpow2.f32 %v630_v48  ;;  %v617_v53 = vsub.f32 %v2045_v24, %v597_v51  ;;  %v622_v55 = vsub.f32 %v2049_v3, %v612_v52 }
 0x3b8   : > { %v626_v56 = vmul.f32 1.442695, %v617_v53  ;;  %v636_v14 = vmul.f32 1.442695, %v622_v55 }
 0x3b9   : > { %v615_v57 = vpop.xlane.xlu0 %614  ;;  %v606_v59 = vpop.xlane.xlu1 %605 }
 0x3ba   : > { %1742 = vpow2.f32 %v626_v56  ;;  %v623_v17 = vsub.f32 %v2053_v29, %v615_v57  ;;  %v620_v61 = vsub.f32 %v2051_v11, %v606_v59 }
 0x3bb   : > { %1744 = vpow2.f32 %v636_v14 }
 0x3bc   : > { %v2140_v19 = vpop.eup %1736  ;;  %v638_v63 = vmul.f32 1.442695, %v623_v17  ;;  %v632_v0 = vmul.f32 1.442695, %v620_v61 }
 0x3bd   : > { %v609_v13 = vpop.xlane.xlu0 %608  ;;  %v871_v16 = vpop.xlane.xlu1 %870  ;;  %v646_v24 = vsel %vm319_vm1, %v2140_v19, 0.0 }
 0x3be   : > { %v2144_v3 = vpop.eup %1738  ;;  %1746 = vpow2.f32 %v638_v63  ;;  %v621_v18 = vsub.f32 %v2059_v31, %v609_v13  ;;  %v889_v21 = vsub.f32 %v2065_v34, %v871_v16  ;;  %647 = vadd.xlane.f32.xlu1 %v646_v24 }
 0x3bf   : > { %1748 = vpow2.f32 %v632_v0  ;;  %v640_v15 = vsel %vm319_vm1, %v2144_v3, 0.0 }
 0x3c0   : > { %v2148_v11 = vpop.eup %1740  ;;  %v634_v29 = vmul.f32 1.442695, %v621_v18  ;;  %v899_v25 = vmul.f32 1.442695, %v889_v21 }
 0x3c1   : > { %v874_v27 = vpop.xlane.xlu0 %873  ;;  %v865_v28 = vpop.xlane.xlu1 %864  ;;  %v649_v5 = vsel %vm319_vm1, %v2148_v11, 0.0 }
 0x3c2   : > { %1750 = vpow2.f32 %v634_v29  ;;  %v890_v12 = vsub.f32 %v2069_v38, %v874_v27  ;;  %v887_v31 = vsub.f32 %v2067_v37, %v865_v28  ;;  %650 = vadd.xlane.f32.xlu0 %v649_v5  ;;  %641 = vadd.xlane.f32.xlu1 %v640_v15 }
 0x3c3   : > { %1752 = vpow2.f32 %v899_v25 }
 0x3c4   : > { %v2156_v34 = vpop.eup %1742  ;;  %v901_v32 = vmul.f32 1.442695, %v890_v12  ;;  %v895_v35 = vmul.f32 1.442695, %v887_v31 }
 0x3c5   : > { %v2158_v36 = vpop.eup %1744  ;;  %v868_v39 = vpop.xlane.xlu0 %867  ;;  %v643_v41 = vsel %vm319_vm1, %v2156_v34, 0.0 }
 0x3c6   : > { %v883_v40 = vpop.xlane.xlu1 %882  ;;  %1754 = vpow2.f32 %v901_v32  ;;  %v888_v43 = vsub.f32 %v2075_v42, %v868_v39  ;;  %644 = vadd.xlane.f32.xlu0 %v643_v41  ;;  %v658_v37 = vsel %vm319_vm1, %v2158_v36, 0.0 }
 0x3c7   : > { %v893_v38 = vsub.f32 %v2081_v46, %v883_v40  ;;  %1756 = vpow2.f32 %v895_v35  ;;  %659 = vadd.xlane.f32.xlu1 %v658_v37 }
 0x3c8   : > { %v2166_v44 = vpop.eup %1746  ;;  %v897_v45 = vmul.f32 1.442695, %v888_v43 }
 0x3c9   : > { %v907_v47 = vmul.f32 1.442695, %v893_v38  ;;  %v2168_v48 = vpop.eup %1748  ;;  %v886_v51 = vpop.xlane.xlu0 %885  ;;  %v661_v53 = vsel %vm319_vm1, %v2166_v44, 0.0 }
 0x3ca   : > { %v877_v52 = vpop.xlane.xlu1 %876  ;;  %1758 = vpow2.f32 %v897_v45  ;;  %v894_v42 = vsub.f32 %v2085_v50, %v886_v51  ;;  %662 = vadd.xlane.f32.xlu0 %v661_v53  ;;  %v652_v55 = vsel %vm319_vm1, %v2168_v48, 0.0 }
 0x3cb   : > { %v891_v46 = vsub.f32 %v2083_v49, %v877_v52  ;;  %1760 = vpow2.f32 %v907_v47  ;;  %653 = vadd.xlane.f32.xlu1 %v652_v55 }
 0x3cc   : > { %v2176_v56 = vpop.eup %1750  ;;  %v909_v14 = vmul.f32 1.442695, %v894_v42 }
 0x3cd   : > { %v903_v57 = vmul.f32 1.442695, %v891_v46  ;;  %v2178_v59 = vpop.eup %1752  ;;  %v880_v17 = vpop.xlane.xlu0 %879  ;;  %v655_v63 = vsel %vm319_vm1, %v2176_v56, 0.0 }
 0x3ce   : > { %v1141_v61 = vpop.xlane.xlu1 %1140  ;;  %1762 = vpow2.f32 %v909_v14  ;;  %v892_v49 = vsub.f32 %v2091_v54, %v880_v17  ;;  %656 = vadd.xlane.f32.xlu0 %v655_v63  ;;  %v917_v0 = vsel %vm319_vm1, %v2178_v59, 0.0 }
 0x3cf   : > { %v1159_v50 = vsub.f32 %v2097_v58, %v1141_v61  ;;  %1764 = vpow2.f32 %v903_v57  ;;  %918 = vadd.xlane.f32.xlu1 %v917_v0 }
 0x3d0   : > { %v2186_v13 = vpop.eup %1754  ;;  %v905_v16 = vmul.f32 1.442695, %v892_v49 }
 0x3d1   : > { %v1169_v24 = vmul.f32 1.442695, %v1159_v50  ;;  %v2188_v18 = vpop.eup %1756  ;;  %v1144_v21 = vpop.xlane.xlu0 %1143  ;;  %v920_v25 = vsel %vm319_vm1, %v2186_v13, 0.0 }
 0x3d2   : > { %v1135_v29 = vpop.xlane.xlu1 %1134  ;;  %1766 = vpow2.f32 %v905_v16  ;;  %921 = vadd.xlane.f32.xlu0 %v920_v25  ;;  %v911_v58 = vsel %vm319_vm1, %v2188_v18, 0.0  ;;  %v1160_v28 = vsub.f32 %v2101_v62, %v1144_v21 }
 0x3d3   : > { %v1157_v54 = vsub.f32 %v2099_v60, %v1135_v29  ;;  %912 = vadd.xlane.f32.xlu1 %v911_v58  ;;  %1768 = vpow2.f32 %v1169_v24 }
 0x3d4   : > { %v2195_v27 = vpop.eup %1758  ;;  %v1171_v39 = vmul.f32 1.442695, %v1160_v28 }
 0x3d5   : > { %v1165_v5 = vmul.f32 1.442695, %v1157_v54  ;;  %v2198_v15 = vpop.eup %1760  ;;  %v1138_v12 = vpop.xlane.xlu0 %1137  ;;  %v914_v32 = vsel %vm319_vm1, %v2195_v27, 0.0 }
 0x3d6   : > { %v1153_v31 = vpop.xlane.xlu1 %1152  ;;  %915 = vadd.xlane.f32.xlu0 %v914_v32  ;;  %v929_v60 = vsel %vm319_vm1, %v2198_v15, 0.0  ;;  %v1158_v40 = vsub.f32 %v2111_v20, %v1138_v12 }
 0x3d7   : > { %930 = vadd.xlane.f32.xlu1 %v929_v60  ;;  %1770 = vpow2.f32 %v1165_v5  ;;  %v1163_v20 = vsub.f32 %v2113_v22, %v1153_v31 }
 0x3d8   : > { %v2204_v35 = vpop.eup %1762  ;;  %1772 = vpow2.f32 %v1171_v39  ;;  %v1167_v51 = vmul.f32 1.442695, %v1158_v40 }
 0x3d9   : > { %v2207_v62 = vpop.eup %1764  ;;  %v932_v43 = vsel %vm319_vm1, %v2204_v35, 0.0  ;;  %v1156_v45 = vpop.xlane.xlu0 %1155 }
 0x3da   : > { %v1147_v41 = vpop.xlane.xlu1 %1146  ;;  %933 = vadd.xlane.f32.xlu0 %v932_v43  ;;  %v923_v37 = vsel %vm319_vm1, %v2207_v62, 0.0  ;;  %v1164_v55 = vsub.f32 %v2121_v30, %v1156_v45 }
 0x3db   : > { %v1161_v38 = vsub.f32 %v2115_v26, %v1147_v41  ;;  %924 = vadd.xlane.f32.xlu1 %v923_v37  ;;  %v1177_v26 = vmul.f32 1.442695, %v1163_v20 }
 0x3dc   : > { %v2214_v47 = vpop.eup %1766  ;;  %v1179_v17 = vmul.f32 1.442695, %v1164_v55 }
 0x3dd   : > { %v1173_v52 = vmul.f32 1.442695, %v1161_v38  ;;  %v926_v53 = vsel %vm319_vm1, %v2214_v47, 0.0  ;;  %v2219_v46 = vpop.eup %1768  ;;  %v1150_v14 = vpop.xlane.xlu0 %1149 }
 0x3de   : > { %v686_v42 = vpop.permute.xlu1 %685  ;;  %927 = vadd.xlane.f32.xlu0 %v926_v53  ;;  %v1187_v57 = vsel %vm319_vm1, %v2219_v46, 0.0  ;;  %v1162_v61 = vsub.f32 %v2127_v33, %v1150_v14 }
 0x3df   : > { %1636 = vmatprep.subr.bf16.mxu0 %v686_v42  ;;  %1774 = vpow2.f32 %v1173_v52 }
 0x3e0   : > { %1637 = vmatpush3.bf16.msra.mxu0 %v686_v42  ;;  %1776 = vpow2.f32 %v1167_v51  ;;  %v1175_v50 = vmul.f32 1.442695, %v1162_v61 }
 0x3e1   : > { %v2224_v22 = vpop.eup %1770  ;;  %1778 = vpow2.f32 %v1177_v26 }
 0x3e2   : > { %1188 = vadd.xlane.f32.xlu0 %v1187_v57  ;;  %v1181_v63 = vsel %vm319_vm1, %v2224_v22, 0.0  ;;  %v2229_v49 = vpop.eup %1772  ;;  %1780 = vpow2.f32 %v1179_v17 }
 0x3e3   : > { %v1190_v0 = vsel %vm319_vm1, %v2229_v49, 0.0  ;;  %1782 = vpow2.f32 %v1175_v50 }
 0x3e6   : > { %1182 = vadd.xlane.f32.xlu0 %v1181_v63 }
 0x3e9   : > { %v2231_v30 = vpop.eup %1774 }
 0x3ea   : > { %v2235_v16 = vpop.eup %1776  ;;  %1191 = vadd.xlane.f32.xlu0 %v1190_v0  ;;  %v1193_v24 = vsel %vm319_vm1, %v2231_v30, 0.0 }
 0x3eb   : > { %1194 = vadd.xlane.f32.xlu1 %v1193_v24  ;;  %v1184_v33 = vsel %vm319_vm1, %v2235_v16, 0.0  ;;  %v2241_v21 = vpop.eup %1778 }
 0x3ec   : > { %v1199_v29 = vsel %vm319_vm1, %v2241_v21, 0.0  ;;  %v2245_v25 = vpop.eup %1780 }
 0x3ed   : > { %v1202_v54 = vsel %vm319_vm1, %v2245_v25, 0.0  ;;  %v2249_v58 = vpop.eup %1782 }
 0x3ee   : > { %1185 = vadd.xlane.f32.xlu0 %v1184_v33  ;;  %v1196_v28 = vsel %vm319_vm1, %v2249_v58, 0.0 }
 0x3f2   : > { %1200 = vadd.xlane.f32.xlu0 %v1199_v29 }
 0x3f6   : > { %1203 = vadd.xlane.f32.xlu0 %v1202_v54 }
 0x3fa   : > { %1197 = vadd.xlane.f32.xlu0 %v1196_v28 }
 0x3fc   : > { %1225 = vrot.lane.b32.xlu1 %v1955_v23, %s1842_s27 }
 0x410   : > { %955 = vrot.lane.b32.xlu0 %v1955_v23, %s1841_s26 }
 0x44b   : > { %v648_v5 = vpop.xlane.xlu1 %647 }
 0x44f   : > { %v651_v12 = vpop.xlane.xlu0 %650  ;;  %v642_v31 = vpop.xlane.xlu1 %641 }
 0x450   : > { %1784 = vrcp.f32 %v651_v12 }
 0x451   : > { %1786 = vrcp.f32 %v642_v31 }
 0x452   : > { %1788 = vrcp.f32 %v648_v5 }
 0x453   : > { %v645_v32 = vpop.xlane.xlu0 %644 }
 0x454   : > { %1790 = vrcp.f32 %v645_v32  ;;  %v660_v60 = vpop.xlane.xlu1 %659 }
 0x457   : > { %v663_v39 = vpop.xlane.xlu0 %662 }
 0x458   : > { %v654_v40 = vpop.xlane.xlu1 %653  ;;  %1792 = vrcp.f32 %v663_v39 }
 0x459   : > { %1794 = vrcp.f32 %v654_v40 }
 0x45a   : > { %v1785_v41 = vpop.eup %1784  ;;  %1796 = vrcp.f32 %v660_v60 }
 0x45b   : > { %v657_v43 = vpop.xlane.xlu0 %656  ;;  %v1787_v38 = vpop.eup %1786  ;;  %v675_v51 = vmul.f32 %v1785_v41, %v2148_v11 }
 0x45c   : > { %1798 = vrcp.f32 %v657_v43  ;;  %v919_v37 = vpop.xlane.xlu1 %918  ;;  %v1789_v23 = vpop.eup %1788  ;;  %v672_v52 = vmul.f32 %v1787_v38, %v2144_v3 }
 0x45d   : > { %v674_v42 = vmul.f32 %v1789_v23, %v2140_v19 }
 0x45e   : > { %v1791_v45 = vpop.eup %1790 }
 0x45f   : > { %v922_v20 = vpop.xlane.xlu0 %921  ;;  %v673_v53 = vmul.f32 %v1791_v45, %v2156_v34  ;;  %v681_v14 = vpack.c.bf16 %v675_v51, %v674_v42 }
 0x460   : > { %v913_v26 = vpop.xlane.xlu1 %912 }
 0x461   : > { %v680_v55 = vpack.c.bf16 %v673_v53, %v672_v52  ;;  %1800 = vrcp.f32 %v913_v26 }
 0x462   : > { %v1793_v57 = vpop.eup %1792 }
 0x463   : > { %v916_v17 = vpop.xlane.xlu0 %915  ;;  %1638 = vmatprep.mubr.msk.bf16.mxu0 %vm319_vm1, %v680_v55  ;;  %v1795_v61 = vpop.eup %1794  ;;  %v679_v3 = vmul.f32 %v1793_v57, %v2166_v44 }
 0x464   : > { %1802 = vrcp.f32 %v916_v17  ;;  %1639 = vmatmul.mubr.msk.bf16.vlgmr.msra.gmra.mrb[8].mxu0 %vm319_vm1, %v681_v14  ;;  %v1797_v11 = vpop.eup %1796  ;;  %v676_v34 = vmul.f32 %v1795_v61, %v2168_v48 }
 0x465   : > { %v678_v0 = vmul.f32 %v1797_v11, %v2158_v36  ;;  %1804 = vrcp.f32 %v922_v20 }
 0x466   : > { %v1799_v63 = vpop.eup %1798 }
 0x467   : > { %v934_v50 = vpop.xlane.xlu0 %933  ;;  %v677_v19 = vmul.f32 %v1799_v63, %v2176_v56  ;;  %v683_v33 = vpack.c.bf16 %v679_v3, %v678_v0  ;;  %v931_v56 = vpop.xlane.xlu1 %930 }
 0x469   : > { %v682_v24 = vpack.c.bf16 %v677_v19, %v676_v34 }
 0x46b   : > { %v928_v29 = vpop.xlane.xlu0 %927  ;;  %1642 = vmatprep.mubr.msk.bf16.mxu0 %vm319_vm1, %v682_v24  ;;  %v1801_v54 = vpop.eup %1800 }
 0x46c   : > { %1643 = vmatmul.mubr.msk.bf16.gmra.mrb[12].mxu0 %vm319_vm1, %v683_v33  ;;  %v943_v12 = vmul.f32 %v1801_v54, %v2188_v18  ;;  %v925_v60 = vpop.xlane.xlu1 %924  ;;  %1806 = vrcp.f32 %v928_v29 }
 0x46d   : > { %1808 = vrcp.f32 %v919_v37 }
 0x46e   : > { %v1803_v28 = vpop.eup %1802  ;;  %1810 = vrcp.f32 %v925_v60 }
 0x46f   : > { %v1189_v5 = vpop.xlane.xlu0 %1188  ;;  %v944_v44 = vmul.f32 %v1803_v28, %v2195_v27  ;;  %1812 = vrcp.f32 %v934_v50  ;;  %v1805_v41 = vpop.eup %1804 }
 0x470   : > { %v946_v45 = vmul.f32 %v1805_v41, %v2186_v13 }
 0x471   : > { %v951_v31 = vpack.c.bf16 %v944_v44, %v943_v12 }
 0x473   : > { %v1183_v48 = vpop.xlane.xlu0 %1182  ;;  %1658 = vmatprep.mubr.msk.bf16.mxu0 %vm319_vm1, %v951_v31 }
 0x476   : > { %v1807_v43 = vpop.eup %1806 }
 0x477   : > { %v1192_v36 = vpop.xlane.xlu0 %1191  ;;  %v1809_v38 = vpop.eup %1808  ;;  %v948_v20 = vmul.f32 %v1807_v43, %v2214_v47 }
 0x478   : > { %v1195_v18 = vpop.xlane.xlu1 %1194  ;;  %v1811_v23 = vpop.eup %1810  ;;  %v945_v37 = vmul.f32 %v1809_v38, %v2178_v59 }
 0x479   : > { %v947_v53 = vmul.f32 %v1811_v23, %v2207_v62  ;;  %v1813_v26 = vpop.eup %1812 }
 0x47a   : > { %v952_v42 = vpack.c.bf16 %v946_v45, %v945_v37  ;;  %v950_v47 = vmul.f32 %v1813_v26, %v2204_v35 }
 0x47b   : > { %v1186_v32 = vpop.xlane.xlu0 %1185  ;;  %v953_v55 = vpack.c.bf16 %v948_v20, %v947_v53 }
 0x47c   : > { %1814 = vrcp.f32 %v1186_v32  ;;  %v1226_v52 = vpop.permute.xlu1 %1225 }
 0x47d   : > { %1816 = vrcp.f32 %v931_v56 }
 0x47e   : > { %1818 = vrcp.f32 %v1183_v48 }
 0x47f   : > { %v1201_v39 = vpop.xlane.xlu0 %1200  ;;  %1820 = vrcp.f32 %v1192_v36 }
 0x483   : > { %v1204_v40 = vpop.xlane.xlu0 %1203 }
 0x486   : > { %v1815_v14 = vpop.eup %1814 }
 0x487   : > { %v1198_v27 = vpop.xlane.xlu0 %1197  ;;  %v1817_v13 = vpop.eup %1816  ;;  %v1214_v57 = vmul.f32 %v1815_v14, %v2235_v16 }
 0x488   : > { %1822 = vrcp.f32 %v1198_v27  ;;  %v1819_v59 = vpop.eup %1818  ;;  %v949_v62 = vmul.f32 %v1817_v13, %v2198_v15 }
 0x489   : > { %1824 = vrcp.f32 %v1189_v5  ;;  %v1213_v17 = vmul.f32 %v1819_v59, %v2224_v22  ;;  %v1821_v11 = vpop.eup %1820 }
 0x48a   : > { %1826 = vrcp.f32 %v1195_v18  ;;  %v954_v61 = vpack.c.bf16 %v950_v47, %v949_v62  ;;  %v1216_v35 = vmul.f32 %v1821_v11, %v2229_v49 }
 0x48b   : > { %v956_v51 = vpop.permute.xlu0 %955  ;;  %1828 = vrcp.f32 %v1204_v40  ;;  %v1221_v63 = vpack.c.bf16 %v1214_v57, %v1213_v17 }
 0x48c   : > { %1656 = vmatprep.subr.bf16.mxu0 %v956_v51  ;;  %1830 = vrcp.f32 %v1201_v39 }
 0x48d   : > { %1657 = vmatpush3.bf16.msra.mxu0 %v956_v51 }
 0x48e   : > { %1676 = vmatprep.subr.bf16.mxu0 %v1226_v52 }
 0x490   : > { %1659 = vmatmul.mubr.msk.bf16.vlgmr.msra.gmra.mrb[16].mxu0 %vm319_vm1, %v952_v42 }
 0x491   : > { %1662 = vmatprep.mubr.msk.bf16.mxu0 %vm319_vm1, %v953_v55  ;;  %1677 = vmatpush3.bf16.msra.mxu0 %v1226_v52 }
 0x492   : > { %v1823_v3 = vpop.eup %1822 }
 0x493   : > { %v1825_v50 = vpop.eup %1824  ;;  %v1218_v16 = vmul.f32 %v1823_v3, %v2249_v58 }
 0x494   : > { %v1827_v34 = vpop.eup %1826  ;;  %v1215_v15 = vmul.f32 %v1825_v50, %v2219_v46 }
 0x495   : > { %v1217_v19 = vmul.f32 %v1827_v34, %v2231_v30  ;;  %v1829_v0 = vpop.eup %1828 }
 0x496   : > { %v1222_v22 = vpack.c.bf16 %v1216_v35, %v1215_v15  ;;  %v1831_v33 = vpop.eup %1830  ;;  %v1220_v29 = vmul.f32 %v1829_v0, %v2245_v25 }
 0x497   : > { %v1223_v24 = vpack.c.bf16 %v1218_v16, %v1217_v19  ;;  %v1219_v54 = vmul.f32 %v1831_v33, %v2241_v21 }
 0x498   : > { %1663 = vmatmul.mubr.msk.bf16.gmra.mrb[20].mxu0 %vm319_vm1, %v954_v61 }
 0x499   : > { %1678 = vmatprep.mubr.msk.bf16.mxu0 %vm319_vm1, %v1221_v63  ;;  %v1224_v28 = vpack.c.bf16 %v1220_v29, %v1219_v54 }
 0x4a0   : > { %1679 = vmatmul.mubr.msk.bf16.vlgmr.msra.gmra.mrb[24].mxu0 %vm319_vm1, %v1222_v22 }
 0x4a1   : > { %1682 = vmatprep.mubr.msk.bf16.mxu0 %vm319_vm1, %v1223_v24 }
 0x4a8   : > { %1683 = vmatmul.mubr.msk.bf16.gmra.mrb[28].mxu0 %vm319_vm1, %v1224_v28 }
 0x537   : > { %v1640_v49 = vpop.f32.mrb[8].mxu0 }
 0x538   : > { %1317 = vrot.lane.b32.xlu0 %v1640_v49, %s1843_s28  ;;  %v734_v46 = vpop.f32.mrb[9].mxu0 }
 0x539   : > { %v1641_v30 = vpop.f32.mrb[10].mxu0 }
 0x53a   : > { %v737_v58 = vpop.f32.mrb[11].mxu0 }
 0x53c   : > { %1313 = vrot.lane.b32.xlu0 %v734_v46, %s1843_s28 }
 0x53f   : > { %v1644_v5 = vpop.f32.mrb[12].mxu0 }
 0x540   : > { %1319 = vrot.lane.b32.xlu0 %v1641_v30, %s1843_s28  ;;  %v750_v12 = vpop.f32.mrb[13].mxu0 }
 0x541   : > { %v1645_v44 = vpop.f32.mrb[14].mxu0 }
 0x542   : > { %1327 = vrot.lane.b32.xlu1 %v1645_v44, %s1843_s28  ;;  %v753_v31 = vpop.f32.mrb[15].mxu0 }
 0x544   : > { %1315 = vrot.lane.b32.xlu0 %v737_v58, %s1843_s28 }
 0x546   : > { %1323 = vrot.lane.b32.xlu1 %v753_v31, %s1843_s28 }
 0x548   : > { %1325 = vrot.lane.b32.xlu0 %v1644_v5, %s1843_s28 }
 0x54c   : > { %1321 = vrot.lane.b32.xlu0 %v750_v12, %s1843_s28 }
 0x563   : > { %v1660_v21 = vpop.f32.mrb[16].mxu0 }
 0x564   : > { %1349 = vrot.lane.b32.xlu0 %v1660_v21, %s1844_s29  ;;  %v1004_v25 = vpop.f32.mrb[17].mxu0 }
 0x565   : > { %v1661_v48 = vpop.f32.mrb[18].mxu0 }
 0x566   : > { %1351 = vrot.lane.b32.xlu1 %v1661_v48, %s1844_s29  ;;  %v1007_v56 = vpop.f32.mrb[19].mxu0 }
 0x568   : > { %1345 = vrot.lane.b32.xlu0 %v1004_v25, %s1844_s29 }
 0x56a   : > { %1347 = vrot.lane.b32.xlu1 %v1007_v56, %s1844_s29 }
 0x56b   : > { %v1664_v36 = vpop.f32.mrb[20].mxu0 }
 0x56c   : > { %1357 = vrot.lane.b32.xlu0 %v1664_v36, %s1844_s29  ;;  %v1020_v32 = vpop.f32.mrb[21].mxu0 }
 0x56d   : > { %v1665_v60 = vpop.f32.mrb[22].mxu0 }
 0x56e   : > { %1359 = vrot.lane.b32.xlu1 %v1665_v60, %s1844_s29  ;;  %v1023_v39 = vpop.f32.mrb[23].mxu0 }
 0x570   : > { %1353 = vrot.lane.b32.xlu0 %v1020_v32, %s1844_s29 }
 0x572   : > { %1355 = vrot.lane.b32.xlu1 %v1023_v39, %s1844_s29 }
 0x573   : > { %v1680_v40 = vpop.f32.mrb[24].mxu0 }
 0x574   : > { %1381 = vrot.lane.b32.xlu0 %v1680_v40, %s1845_s30  ;;  %v1274_v41 = vpop.f32.mrb[25].mxu0 }
 0x575   : > { %v1681_v18 = vpop.f32.mrb[26].mxu0 }
 0x576   : > { %1383 = vrot.lane.b32.xlu1 %v1681_v18, %s1845_s30  ;;  %v1277_v27 = vpop.f32.mrb[27].mxu0 }
 0x578   : > { %1377 = vrot.lane.b32.xlu0 %v1274_v41, %s1845_s30 }
 0x57a   : > { %1379 = vrot.lane.b32.xlu1 %v1277_v27, %s1845_s30 }
 0x57b   : > { %v1684_v43 = vpop.f32.mrb[28].mxu0 }
 0x57c   : > { %v1290_v38 = vpop.f32.mrb[29].mxu0 }
 0x57d   : > { %1385 = vrot.lane.b32.xlu0 %v1290_v38, %s1845_s30  ;;  %v1685_v23 = vpop.f32.mrb[30].mxu0 }
 0x57e   : > { %v1293_v45 = vpop.f32.mrb[31].mxu0 }
 0x57f   : > { %1387 = vrot.lane.b32.xlu1 %v1293_v45, %s1845_s30 }
 0x581   : > { %1389 = vrot.lane.b32.xlu0 %v1684_v43, %s1845_s30 }
 0x583   : > { %1391 = vrot.lane.b32.xlu1 %v1685_v23, %s1845_s30 }
 0x5aa   : > { %v1318_v51 = vpop.permute.xlu0 %1317 }
 0x5ab   : > { %v1403_v11 = vsel %vm230_vm0, %v2019_v1, %v1318_v51 }
 0x5ae   : > { %v1314_v20 = vpop.permute.xlu0 %1313 }
 0x5af   : > { %v1401_v16 = vsel %vm230_vm0, %v2021_v2, %v1314_v20 }
 0x5b2   : > { %v1320_v52 = vpop.permute.xlu0 %1319 }
 0x5b3   : > { %v1404_v50 = vsel %vm230_vm0, %v2023_v4, %v1320_v52 }
 0x5b4   : > { %v1328_v42 = vpop.permute.xlu1 %1327 }
 0x5b6   : > { %v1316_v37 = vpop.permute.xlu0 %1315 }
 0x5b7   : > { %v1402_v4 = vsel %vm230_vm0, %v2025_v6, %v1316_v37 }
 0x5b8   : > { %v1324_v55 = vpop.permute.xlu1 %1323 }
 0x5b9   : > { %v1406_v6 = vsel %vm230_vm0, %v2033_v10, %v1324_v55  ;;  %v1408_v10 = vsel %vm230_vm0, %v2031_v9, %v1328_v42 }
 0x5ba   : > { %v1326_v53 = vpop.permute.xlu0 %1325 }
 0x5be   : > { %v1322_v26 = vpop.permute.xlu0 %1321 }
 0x5bf   : > { %v1405_v29 = vsel %vm230_vm0, %v2029_v8, %v1322_v26  ;;  %v1407_v8 = vsel %vm230_vm0, %v2027_v7, %v1326_v53 }
 0x5d6   : > { %v1350_v14 = vpop.permute.xlu0 %1349 }
 0x5d7   : > { %v1412_v63 = vsel %vm1409_vm2, %v1403_v11, %v1350_v14 }
 0x5d8   : > { %v1352_v13 = vpop.permute.xlu1 %1351 }
 0x5d9   : > { %v1413_v1 = vsel %vm1409_vm2, %v1404_v50, %v1352_v13 }
 0x5da   : > { %v1346_v59 = vpop.permute.xlu0 %1345 }
 0x5db   : > { %v1410_v19 = vsel %vm1409_vm2, %v1401_v16, %v1346_v59 }
 0x5dc   : > { %v1348_v47 = vpop.permute.xlu1 %1347 }
 0x5dd   : > { %v1411_v24 = vsel %vm1409_vm2, %v1402_v4, %v1348_v47 }
 0x5de   : > { %v1358_v57 = vpop.permute.xlu0 %1357 }
 0x5df   : > { %v1416_v5 = vsel %vm1409_vm2, %v1407_v8, %v1358_v57 }
 0x5e0   : > { %v1360_v62 = vpop.permute.xlu1 %1359 }
 0x5e1   : > { %v1417_v31 = vsel %vm1409_vm2, %v1408_v10, %v1360_v62 }
 0x5e2   : > { %v1354_v17 = vpop.permute.xlu0 %1353 }
 0x5e3   : > { %v1414_v54 = vsel %vm1409_vm2, %v1405_v29, %v1354_v17 }
 0x5e4   : > { %v1356_v61 = vpop.permute.xlu1 %1355 }
 0x5e5   : > { %v1415_v46 = vsel %vm1409_vm2, %v1406_v6, %v1356_v61 }
 0x5e6   : > { %v1382_v3 = vpop.permute.xlu0 %1381 }
 0x5e7   : > { %v1421_v34 = vsel %vm1418_vm3, %v1412_v63, %v1382_v3 }
 0x5e8   : > { %1430 = vst.msk [vmem:[%s2300_s6 + $0x10] sm:$0xff] %vm1427_vm4, %v1421_v34  ;;  %v1384_v35 = vpop.permute.xlu1 %1383 }
 0x5e9   : > { %v1422_v15 = vsel %vm1418_vm3, %v1413_v1, %v1384_v35 }
 0x5ea   : > { %1431 = vst.msk [vmem:[%s2300_s6 + $0x18] sm:$0xff] %vm1427_vm4, %v1422_v15  ;;  %v1378_v22 = vpop.permute.xlu0 %1377 }
 0x5eb   : > { %v1419_v0 = vsel %vm1418_vm3, %v1410_v19, %v1378_v22 }
 0x5ec   : > { %1428 = vst.msk [vmem:[%s2300_s6] sm:$0xff] %vm1427_vm4, %v1419_v0  ;;  %v1380_v33 = vpop.permute.xlu1 %1379 }
 0x5ed   : > { %v1420_v2 = vsel %vm1418_vm3, %v1411_v24, %v1380_v33 }
 0x5ee   : > { %1429 = vst.msk [vmem:[%s2300_s6 + $0x8] sm:$0xff] %vm1427_vm4, %v1420_v2 }
 0x5ef   : > { %v1386_v28 = vpop.permute.xlu0 %1385 }
 0x5f0   : > { %v1423_v49 = vsel %vm1418_vm3, %v1414_v54, %v1386_v28 }
 0x5f1   : > { %1432 = vst.msk [vmem:[%s2300_s6 + $0x20] sm:$0xff] %vm1427_vm4, %v1423_v49  ;;  %v1388_v30 = vpop.permute.xlu1 %1387 }
 0x5f2   : > { %v1424_v58 = vsel %vm1418_vm3, %v1415_v46, %v1388_v30 }
 0x5f3   : > { %1433 = vst.msk [vmem:[%s2300_s6 + $0x28] sm:$0xff] %vm1427_vm4, %v1424_v58  ;;  %v1390_v12 = vpop.permute.xlu0 %1389 }
 0x5f4   : > { %v1425_v44 = vsel %vm1418_vm3, %v1416_v5, %v1390_v12 }
 0x5f5   : > { %1434 = vst.msk [vmem:[%s2300_s6 + $0x30] sm:$0xff] %vm1427_vm4, %v1425_v44  ;;  %v1392_v21 = vpop.permute.xlu1 %1391 }
 0x5f6   : > { %v1426_v25 = vsel %vm1418_vm3, %v1417_v31, %v1392_v21 }
 0x5f7   : > { %1435 = vst.msk [vmem:[%s2300_s6 + $0x38] sm:$0xff] %vm1427_vm4, %v1426_v25 }
 0x5f8 PF: > { %s13_s12 = sadd.s32 1, %s1838_s12  }
 0x5f9   : > { %p10_p4 = scmp.ge.s32.totalorder %s13_s12, 4  }
 0x5fb   :  { %12 = sbr.rel (!%p10_p4) target bundleno = 1 (0x1), region = 68 }

// kernel: cnl_forward.17
= control target key start
LH: loop header
LB: loop body
LE: loop exit
PB: predicated region body
PF: predicated region fallthrough
CT: control target
= control target key end

     0   :  { %s1086_s24 = smov 0   ;;  %s1202_s0 = inlined_call_operand.vmem [shape: f32[2,64,32], index: 0, kind: input, shape index: {}]   ;;  %s1203_s1 = inlined_call_operand.vmem [shape: f32[2,64,32], index: 1, kind: input, shape index: {}]   ;;  %s1204_s2 = inlined_call_operand.vmem [shape: f32[2,64,8], index: 2, kind: input, shape index: {}]   ;;  %s1205_s3 = inlined_call_operand.vmem [shape: f32[2,64,8], index: 3, kind: input, shape index: {}]   ;;  %s1206_s4 = inlined_call_operand.vmem [shape: f32[2,32,64], index: 4, kind: input, shape index: {}]   ;;  %s1207_s5 = inlined_call_operand.vmem [shape: bf16[32,32], index: 5, kind: input, shape index: {}]   ;;  %s1208_s6 = inlined_call_operand.vmem [shape: f32[32,1], index: 6, kind: input, shape index: {}]   ;;  %s1209_s7 = inlined_call_operand.vmem [shape: f32[2,32,64], index: 7, kind: output, shape index: {}]  }
   0x1 LB: > { %s886_s25 = sadd.s32 4294967295, %s1038_s24   ;;  %p890_p0 = scmp.ge.s32.totalorder %s1038_s24, 1  ;;  %s1038_s24 = sphi %s1086_s24, %s17_s24  }
   0x2   : > { %p277_p1 = scmp.lt.s32.totalorder %s1038_s24, 3 }
   0x4   : > { %p278_p2 = pnand %p890_p0, %p277_p1 }
   0x5   : > { %p329_p3 = scmp.lt.s32.totalorder (!%p278_p2), %s886_s25, 1  ;;  %s1040_s10 = smov (!%p278_p2), 112   ;;  %v1041_v11 = vmov (!%p278_p2), 0.0   ;;  %vm1042_vm0 = vmmov (!%p278_p2), 0   ;;  %vm432_vm1 = vcmask (!%p278_p2), 523264   ;;  %vm478_vm2 = vcmask (!%p278_p2), 130048  }
   0x6   : > { %281 = sbr.rel (%p278_p2) target bundleno = 1048 (0x418), region = 48  ;;  %936 = vmatprep.subr.bf16.mxu0 (!%p278_p2), %v1041_v11  ;;  %944 = vmatprep.mubr.msk.bf16.mxu0 (!%p278_p2), %vm1042_vm0, %v1041_v11  ;;  %s1043_s14 = smov (!%p278_p2), 8   ;;  %vm703_vm3 = vcmask (!%p278_p2), 261120   ;;  %vm644_vm4 = vcmask (!%p278_p2), 64512  }
   0x7   : > { %s1044_s15 = smov (!%p278_p2), 16  }
   0xd   : > { %s1211_s25 = smov (!%p329_p3, %s886_s25), 1 }
   0xe   : > { %s1097_s26 = sshll.u32 %s1211_s25, 6 }
   0xf   : > { %s338_s29 = scalar_lea.vmem %s1203_s1, %s1097_s26  ;;  %s333_s9 = scalar_lea.vmem %s1202_s0, %s1097_s26 }
  0x10   : > { %v372_v0 = vld [vmem:[%s338_s29] sm:$0xff]  ;;  %v373_v1 = vld [vmem:[%s338_s29 + $0x8] sm:$0xff]  ;;  %v374_v2 = vld [vmem:[%s338_s29 + $0x10] sm:$0xff]  ;;  %s1116_s13 = scalar_lea.vmem %s1205_s3, %s1097_s26  ;;  %s1150_s8 = scalar_lea.vmem %s1204_s2, %s1097_s26 }
  0x11   : > { %v380_v3 = vpack.c.bf16 %v373_v1, %v372_v0  ;;  %v375_v4 = vld [vmem:[%s338_s29 + $0x18] sm:$0xff]  ;;  %v376_v5 = vld [vmem:[%s338_s29 + $0x20] sm:$0xff]  ;;  %v377_v6 = vld [vmem:[%s338_s29 + $0x28] sm:$0xff] }
  0x12   : > { %v382_v7 = vpack.c.bf16 %v377_v6, %v376_v5  ;;  %v378_v8 = vld [vmem:[%s338_s29 + $0x30] sm:$0xff]  ;;  %v379_v9 = vld [vmem:[%s338_s29 + $0x38] sm:$0xff]  ;;  %v381_v10 = vpack.c.bf16 %v375_v4, %v374_v2  ;;  %v360_v13 = vld [vmem:[%s333_s9] sm:$0xff] }
  0x13   : > { %388 = vrot.lane.b32.xlu0 %v380_v3, %s1040_s10  ;;  %v383_v12 = vpack.c.bf16 %v379_v9, %v378_v8  ;;  %v361_v14 = vld [vmem:[%s333_s9 + $0x8] sm:$0xff]  ;;  %v362_v15 = vld [vmem:[%s333_s9 + $0x10] sm:$0xff]  ;;  %v363_v16 = vld [vmem:[%s333_s9 + $0x18] sm:$0xff]  ;;  %v1045_v8 = vmov 0  }
  0x14   : > { %392 = vrot.lane.b32.xlu1 %v382_v7, %s1040_s10  ;;  %v368_v17 = vpack.c.bf16 %v361_v14, %v360_v13  ;;  %v369_v18 = vpack.c.bf16 %v363_v16, %v362_v15  ;;  %v364_v19 = vld [vmem:[%s333_s9 + $0x20] sm:$0xff]  ;;  %v365_v20 = vld [vmem:[%s333_s9 + $0x28] sm:$0xff]  ;;  %v366_v21 = vld [vmem:[%s333_s9 + $0x30] sm:$0xff] }
  0x15   : > { %v367_v22 = vld [vmem:[%s333_s9 + $0x38] sm:$0xff]  ;;  %v370_v23 = vpack.c.bf16 %v365_v20, %v364_v19  ;;  %v572_v39 = vld [vmem:[%s1116_s13] sm:$0xff]  ;;  %v573_v40 = vld [vmem:[%s1116_s13 + $0x8] sm:$0xff]  ;;  %1028 = vset.pattern.permute.xlu1 %v1045_v8 }
  0x16   : > { %v371_v24 = vpack.c.bf16 %v367_v22, %v366_v21  ;;  %v988_v41 = vpack.i.bf16 %v573_v40, %v572_v39  ;;  %v574_v51 = vld [vmem:[%s1116_s13 + $0x10] sm:$0xff]  ;;  %v575_v52 = vld [vmem:[%s1116_s13 + $0x18] sm:$0xff]  ;;  %v576_v0 = vld [vmem:[%s1116_s13 + $0x20] sm:$0xff] }
  0x17   : > { %390 = vrot.lane.b32.xlu0 %v381_v10, %s1040_s10  ;;  %v998_v54 = vpack.i.bf16 %v575_v52, %v574_v51  ;;  %v577_v1 = vld [vmem:[%s1116_s13 + $0x28] sm:$0xff]  ;;  %v578_v4 = vld [vmem:[%s1116_s13 + $0x30] sm:$0xff]  ;;  %v579_v5 = vld [vmem:[%s1116_s13 + $0x38] sm:$0xff] }
  0x18   : > { %394 = vrot.lane.b32.xlu1 %v383_v12, %s1040_s10  ;;  %v1018_v6 = vpack.i.bf16 %v579_v5, %v578_v4  ;;  %v669_v9 = vld [vmem:[%s1208_s6] sm:$0xff]  ;;  %v1031_v5 = vld [vmem:[%s1207_s5 + $0x8] sm:$0xff]  }
  0x19   : > { %v564_v16 = vld [vmem:[%s1150_s8] sm:$0xff] }
  0x1b   : > { %420 = vrot.lane.b32.xlu0 %v368_v17, %s1040_s10  ;;  %v565_v17 = vld [vmem:[%s1150_s8 + $0x8] sm:$0xff] }
  0x1c   : > { %422 = vrot.lane.b32.xlu1 %v369_v18, %s1040_s10 }
  0x1f   : > { %424 = vrot.lane.b32.xlu0 %v370_v23, %s1040_s10 }
  0x20   : > { %426 = vrot.lane.b32.xlu1 %v371_v24, %s1040_s10  ;;  %s918_s10 = sshll.u32 %s1211_s25, 5 }
  0x21   : > { %s353_s13 = scalar_lea.vmem %s1206_s4, %s918_s10  ;;  %s358_s16 = scalar_lea.vmem %s1209_s7, %s918_s10 }
  0x24   : > { %989 = vrot.lane.b32.xlu1 %v988_v41, %s1043_s14 }
  0x85   : > { %v389_v25 = vpop.permute.xlu0 %388 }
  0x86   : > { %400 = vxpose.xlu0.c.b16.start [1/4] (short) (narrow) %v389_v25, 16  ;;  %v393_v26 = vpop.permute.xlu1 %392 }
  0x89   : > { %v391_v27 = vpop.permute.xlu0 %390 }
  0x8a   : > { %401 = vxpose.xlu0.c.b16.cont [2/4] (short) (narrow) %v391_v27, 16  ;;  %v395_v28 = vpop.permute.xlu1 %394 }
  0x8d   : > { %v421_v29 = vpop.permute.xlu0 %420 }
  0x8e   : > { %402 = vxpose.xlu0.c.b16.cont [3/4] (short) (narrow) %v393_v26, 16  ;;  %937 = vmatpush3.bf16.msra.mxu0 %v421_v29  ;;  %v423_v30 = vpop.permute.xlu1 %422 }
  0x8f   : > { %938 = vmatprep.subr.bf16.mxu0 %v1041_v11 }
  0x91   : > { %v425_v31 = vpop.permute.xlu0 %424 }
  0x92   : > { %403 = vxpose.xlu0.c.b16.end [4/4] (short) (narrow) %v395_v28, 16  ;;  %939 = vmatpush3.bf16.msra.mxu0 %v423_v30  ;;  %v427_v32 = vpop.permute.xlu1 %426  ;;  %v566_v30 = vld [vmem:[%s1150_s8 + $0x10] sm:$0xff] }
  0x93   : > { %940 = vmatprep.subr.bf16.mxu0 %v1041_v11 }
  0x96   : > { %941 = vmatpush3.bf16.msra.mxu0 %v425_v31  ;;  %v990_v13 = vpop.permute.xlu1 %989  ;;  %v567_v31 = vld [vmem:[%s1150_s8 + $0x18] sm:$0xff] }
  0x97   : > { %942 = vmatprep.subr.bf16.mxu0 %v1041_v11  ;;  %v670_v11 = vld [vmem:[%s1208_s6 + $0x8] sm:$0xff]  ;;  %v992_v14 = vunpack.i.h.bf16 %v990_v13  ;;  %v991_v15 = vunpack.i.l.bf16 %v990_v13 }
  0x99   : > { %v645_v21 = vsel %vm644_vm4, %v564_v16, %v991_v15  ;;  %v646_v22 = vsel %vm644_vm4, %v565_v17, %v992_v14  ;;  %v771_v14 = vld [vmem:[%s353_s13] sm:$0xff]  ;;  %v774_v17 = vld [vmem:[%s353_s13 + $0x18] sm:$0xff] }
  0x9a   : > { %943 = vmatpush3.bf16.msra.mxu0 %v427_v32 }
  0x9b   : > { %1029 = vset.pattern.permute.xlu0 %v1045_v8 }
  0xec   : > { %v408_v33 = vpop.trf.xlu0 }
  0xed   : > { %945 = vmatmul.mubr.msk.bf16.vlgmr.msra.gmra.mrb[0].mxu0 %vm432_vm1, %v408_v33 }
  0xee   : > { %950 = vmatprep.mubr.msk.bf16.mxu0 %vm478_vm2, %v380_v3  ;;  %v1008_v3 = vpack.i.bf16 %v577_v1, %v576_v0 }
 0x1c0   : > { %v470_v34 = vpop.f32.mrb[0].mxu0 }
 0x1c1   : > { %v946_v35 = vpop.f32.mrb[1].mxu0 }
 0x1c2   : > { %v473_v36 = vpop.f32.mrb[2].mxu0 }
 0x1c3   : > { %v477_v37 = vpack.c.bf16 %v473_v36, %v470_v34  ;;  %v947_v38 = vpop.f32.mrb[3].mxu0 }
 0x1c5   : > { %948 = vmatprep.subr.bf16.mxu0 %v477_v37 }
 0x1c6   : > { %949 = vmatpush3.bf16.msra.mxu0 %v477_v37 }
 0x1c9   : > { %951 = vmatmul.mubr.msk.bf16.vlgmr.msra.gmra.mrb[4].mxu0 %vm478_vm2, %v381_v10  ;;  %v672_v10 = vld [vmem:[%s1208_s6 + $0x18] sm:$0xff] }
 0x1ca   : > { %954 = vmatprep.mubr.msk.bf16.mxu0 %vm478_vm2, %v382_v7  ;;  %v1030_v7 = vld [vmem:[%s1207_s5] sm:$0xff]   ;;  %690 = vperm.xlu0 %1029, %v672_v10   ;;  %v773_v10 = vld [vmem:[%s353_s13 + $0x10] sm:$0xff] }
 0x1cb   : > { %966 = vmatprep.mubr.msk.bf16.mxu1 %vm703_vm3, %v1030_v7 }
 0x1d1   : > { %955 = vmatmul.mubr.msk.bf16.gmra.mrb[8].mxu0 %vm478_vm2, %v383_v12  ;;  %v671_v12 = vld [vmem:[%s1208_s6 + $0x10] sm:$0xff] }
 0x29c   : > { %v952_v42 = vpop.f32.mrb[4].mxu0 }
 0x29d   : > { %v525_v43 = vpop.f32.mrb[5].mxu0  ;;  %v558_v45 = vmul.f32 0.0625, %v952_v42 }
 0x29e   : > { %v953_v44 = vpop.f32.mrb[6].mxu0  ;;  %v556_v48 = vmul.f32 0.0625, %v525_v43 }
 0x29f   : > { %v559_v46 = vmul.f32 0.0625, %v953_v44  ;;  %v528_v47 = vpop.f32.mrb[7].mxu0  ;;  %v568_v44 = vld [vmem:[%s1150_s8 + $0x20] sm:$0xff] }
 0x2a0   : > { %v557_v49 = vmul.f32 0.0625, %v528_v47 }
 0x2a1   : > { %v1003_v50 = vpack.i.bf16 %v559_v46, %v558_v45  ;;  %v569_v45 = vld [vmem:[%s1150_s8 + $0x28] sm:$0xff] }
 0x2a2   : > { %v993_v53 = vpack.i.bf16 %v557_v49, %v556_v48 }
 0x2a4   : > { %994 = vrot.lane.b32.xlu1 %v993_v53, %s1044_s15  ;;  %v956_v55 = vpop.f32.mrb[8].mxu0 }
 0x2a5   : > { %v562_v56 = vmul.f32 0.0625, %v956_v55  ;;  %v541_v57 = vpop.f32.mrb[9].mxu0 }
 0x2a6   : > { %v560_v58 = vmul.f32 0.0625, %v541_v57  ;;  %v957_v59 = vpop.f32.mrb[10].mxu0 }
 0x2a7   : > { %v563_v60 = vmul.f32 0.0625, %v957_v59  ;;  %v544_v61 = vpop.f32.mrb[11].mxu0  ;;  %v571_v59 = vld [vmem:[%s1150_s8 + $0x38] sm:$0xff] }
 0x2a8   : > { %999 = vrot.lane.b32.xlu1 %v998_v54, %s1043_s14  ;;  %v561_v62 = vmul.f32 0.0625, %v544_v61 }
 0x2a9   : > { %v1023_v63 = vpack.i.bf16 %v563_v60, %v562_v56 }
 0x2aa   : > { %v1013_v2 = vpack.i.bf16 %v561_v62, %v560_v58  ;;  %v570_v58 = vld [vmem:[%s1150_s8 + $0x30] sm:$0xff] }
 0x2ac   : > { %1004 = vrot.lane.b32.xlu1 %v1003_v50, %s1044_s15 }
 0x2b0   : > { %1009 = vrot.lane.b32.xlu1 %v1008_v3, %s1043_s14 }
 0x2b4   : > { %1014 = vrot.lane.b32.xlu1 %v1013_v2, %s1044_s15 }
 0x2b8   : > { %1019 = vrot.lane.b32.xlu1 %v1018_v6, %s1043_s14 }
 0x2bc   : > { %1024 = vrot.lane.b32.xlu1 %v1023_v63, %s1044_s15 }
 0x2c0   : > { %675 = vperm.xlu1 %1028, %v669_v9  }
 0x2c4   : > { %680 = vperm.xlu1 %1028, %v670_v11   ;;  %v691_v11 = vpop.permute.xlu0 %690 }
 0x2c8   : > { %685 = vperm.xlu1 %1028, %v671_v12  }
 0x316   : > { %v995_v18 = vpop.permute.xlu1 %994 }
 0x317   : > { %v997_v19 = vunpack.i.h.bf16 %v995_v18  ;;  %v996_v20 = vunpack.i.l.bf16 %v995_v18 }
 0x319   : > { %v653_v23 = vsel %vm478_vm2, %v645_v21, %v996_v20  ;;  %v654_v24 = vsel %vm478_vm2, %v646_v22, %v997_v19  ;;  %v772_v20 = vld [vmem:[%s353_s13 + $0x8] sm:$0xff] }
 0x31a   : > { %v1000_v25 = vpop.permute.xlu1 %999  ;;  %v661_v26 = vpack.c.bf16 %v654_v24, %v653_v23 }
 0x31b   : > { %v1002_v27 = vunpack.i.h.bf16 %v1000_v25  ;;  %v1001_v28 = vunpack.i.l.bf16 %v1000_v25 }
 0x31c   : > { %970 = vmatprep.subr.msk.bf16.mxu1 %vm703_vm3, %v661_v26  ;;  %v711_v29 = vsel %vm703_vm3, %v661_v26, 0 }
 0x31d   : > { %959 = vmatpush3.bf16.xpose.msra.mxu1 %v711_v29  ;;  %v648_v35 = vsel %vm644_vm4, %v567_v31, %v1002_v27  ;;  %v647_v36 = vsel %vm644_vm4, %v566_v30, %v1001_v28 }
 0x31e   : > { %v1005_v32 = vpop.permute.xlu1 %1004 }
 0x31f   : > { %v1007_v33 = vunpack.i.h.bf16 %v1005_v32  ;;  %v1006_v34 = vunpack.i.l.bf16 %v1005_v32 }
 0x321   : > { %v655_v37 = vsel %vm478_vm2, %v647_v36, %v1006_v34  ;;  %v656_v38 = vsel %vm478_vm2, %v648_v35, %v1007_v33 }
 0x322   : > { %v662_v39 = vpack.c.bf16 %v656_v38, %v655_v37  ;;  %v1010_v40 = vpop.permute.xlu1 %1009 }
 0x323   : > { %v1012_v41 = vunpack.i.h.bf16 %v1010_v40  ;;  %v1011_v42 = vunpack.i.l.bf16 %v1010_v40 }
 0x324   : > { %971 = vmatprep.subr.msk.bf16.mxu1 %vm703_vm3, %v662_v39  ;;  %v714_v43 = vsel %vm703_vm3, %v662_v39, 0 }
 0x325   : > { %961 = vmatpush3.bf16.xpose.msra.mxu1 %v714_v43  ;;  %v650_v49 = vsel %vm644_vm4, %v569_v45, %v1012_v41  ;;  %v649_v50 = vsel %vm644_vm4, %v568_v44, %v1011_v42 }
 0x326   : > { %v1015_v46 = vpop.permute.xlu1 %1014 }
 0x327   : > { %v1017_v47 = vunpack.i.h.bf16 %v1015_v46  ;;  %v1016_v48 = vunpack.i.l.bf16 %v1015_v46 }
 0x329   : > { %v658_v51 = vsel %vm478_vm2, %v650_v49, %v1017_v47  ;;  %v657_v52 = vsel %vm478_vm2, %v649_v50, %v1016_v48 }
 0x32a   : > { %v663_v53 = vpack.c.bf16 %v658_v51, %v657_v52  ;;  %v1020_v54 = vpop.permute.xlu1 %1019 }
 0x32b   : > { %v1022_v55 = vunpack.i.h.bf16 %v1020_v54  ;;  %v1021_v56 = vunpack.i.l.bf16 %v1020_v54 }
 0x32c   : > { %972 = vmatprep.subr.msk.bf16.mxu1 %vm703_vm3, %v663_v53  ;;  %v717_v57 = vsel %vm703_vm3, %v663_v53, 0 }
 0x32d   : > { %963 = vmatpush3.bf16.xpose.msra.mxu1 %v717_v57  ;;  %v652_v63 = vsel %vm644_vm4, %v571_v59, %v1022_v55  ;;  %v651_v0 = vsel %vm644_vm4, %v570_v58, %v1021_v56 }
 0x32e   : > { %v1025_v60 = vpop.permute.xlu1 %1024 }
 0x32f   : > { %v1027_v61 = vunpack.i.h.bf16 %v1025_v60  ;;  %v1026_v62 = vunpack.i.l.bf16 %v1025_v60 }
 0x331   : > { %v659_v1 = vsel %vm478_vm2, %v651_v0, %v1026_v62  ;;  %v660_v2 = vsel %vm478_vm2, %v652_v63, %v1027_v61 }
 0x332   : > { %v664_v3 = vpack.c.bf16 %v660_v2, %v659_v1 }
 0x334   : > { %973 = vmatprep.subr.msk.bf16.mxu1 %vm703_vm3, %v664_v3  ;;  %v720_v4 = vsel %vm703_vm3, %v664_v3, 0 }
 0x335   : > { %965 = vmatpush3.bf16.xpose.msra.mxu1 %v720_v4 }
 0x33c   : > { %967 = vmatmul.mubr.msk.bf16.vlgmr.msra.gmra.mrb[0].mxu1 %vm703_vm3, %v1031_v5 }
 0x33f   : > { %v676_v6 = vpop.permute.xlu1 %675 }
 0x343   : > { %v681_v7 = vpop.permute.xlu1 %680 }
 0x347   : > { %v686_v8 = vpop.permute.xlu1 %685 }
 0x40f   : > { %v968_v9 = vpop.f32.mrb[0].mxu1 }
 0x410   : > { %v765_v12 = vadd.f32 %v968_v9, %v686_v8  ;;  %v756_v13 = vpop.f32.mrb[1].mxu1 }
 0x411   : > { %v757_v15 = vadd.f32 %v756_v13, %v676_v6  ;;  %v969_v16 = vpop.f32.mrb[2].mxu1 }
 0x412   : > { %v777_v18 = vadd.f32 %v773_v10, %v765_v12  ;;  %v759_v19 = vpop.f32.mrb[3].mxu1  ;;  %v768_v21 = vadd.f32 %v969_v16, %v691_v11 }
 0x413   : > { %v775_v22 = vadd.f32 %v771_v14, %v757_v15  ;;  %v760_v23 = vadd.f32 %v759_v19, %v681_v7 }
 0x414   : > { %781 = vst.msk [vmem:[%s358_s16 + $0x10] sm:$0xff] %vm432_vm1, %v777_v18  ;;  %v778_v24 = vadd.f32 %v774_v17, %v768_v21 }
 0x415   : > { %779 = vst.msk [vmem:[%s358_s16] sm:$0xff] %vm432_vm1, %v775_v22  ;;  %v776_v25 = vadd.f32 %v772_v20, %v760_v23 }
 0x416   : > { %782 = vst.msk [vmem:[%s358_s16 + $0x18] sm:$0xff] %vm432_vm1, %v778_v24 }
 0x417   : > { %780 = vst.msk [vmem:[%s358_s16 + $0x8] sm:$0xff] %vm432_vm1, %v776_v25 }
 0x418 PF: > { %s17_s24 = sadd.s32 1, %s1038_s24  }
 0x419   : > { %p14_p4 = scmp.ge.s32.totalorder %s17_s24, 4  }
 0x41b   :  { %16 = sbr.rel (!%p14_p4) target bundleno = 1 (0x1), region = 90 }

</bundles_post_ra>
